<compile_context>
chip_gen: v6e
topology: v6e:2x2x1
jax: 0.10.0
libtpu: 0.0.40
codegen_flags: <defaults>
</compile_context>

<pallas_src>
import functools

import jax
import jax.numpy as jnp
from jax.experimental import pallas as pl
from jax.experimental.pallas import tpu as pltpu


# ----------------------------------------------------------------------------
# Kernel 1: fused per-branch chain  (encoder -> fc_feature -> fc_projector)
# grid=(3,) over branches; all intermediates stay in VMEM.
# ----------------------------------------------------------------------------
def _branch_kernel(x_ref, ew_ref, eb_ref, f1w_ref, f1b_ref, f2w_ref, f2b_ref,
                   p1w_ref, p1b_ref, p2w_ref, p2b_ref, feat_ref, proj_ref):
    x = x_ref[0]                                                   # (B, n_flat)
    # stand-in encoder: Linear + ReLU
    h = jnp.dot(x, ew_ref[0], preferred_element_type=jnp.float32) + eb_ref[0]
    h = jnp.maximum(h, 0.0)
    # fc_feature: Linear + BN(folded) + ReLU + Dropout(eval=id) + Linear
    h = jnp.dot(h, f1w_ref[0], preferred_element_type=jnp.float32) + f1b_ref[0]
    h = jnp.maximum(h, 0.0)
    feat = jnp.dot(h, f2w_ref[0], preferred_element_type=jnp.float32) + f2b_ref[0]
    feat_ref[0] = feat
    # fc_projector: Linear + BN(folded) + ReLU + Dropout(eval=id) + Linear
    p = jnp.dot(feat, p1w_ref[0], preferred_element_type=jnp.float32) + p1b_ref[0]
    p = jnp.maximum(p, 0.0)
    proj_ref[0] = jnp.dot(p, p2w_ref[0], preferred_element_type=jnp.float32) + p2b_ref[0]


def run_branches(x_stack, p):
    """x_stack: (3, B, n_flat) -> (feat (3,B,feat_dim), proj (3,B,proj_dim))."""
    nb, B, _ = x_stack.shape
    feat_dim = p["f2w"].shape[2]
    proj_dim = p["p2w"].shape[2]

    def spec(arr):
        shp = arr.shape
        return pl.BlockSpec((1,) + shp[1:], lambda i: (i,) + (0,) * (len(shp) - 1))

    args = [x_stack, p["ew"], p["eb"], p["f1w"], p["f1b"], p["f2w"], p["f2b"],
            p["p1w"], p["p1b"], p["p2w"], p["p2b"]]

    return pl.pallas_call(
        _branch_kernel,
        out_shape=(
            jax.ShapeDtypeStruct((nb, B, feat_dim), jnp.float32),
            jax.ShapeDtypeStruct((nb, B, proj_dim), jnp.float32),
        ),
        grid=(nb,),
        in_specs=[spec(a) for a in args],
        out_specs=(
            pl.BlockSpec((1, B, feat_dim), lambda i: (i, 0, 0)),
            pl.BlockSpec((1, B, proj_dim), lambda i: (i, 0, 0)),
        ),
        compiler_params=pltpu.CompilerParams(dimension_semantics=("parallel",)),
    )(*args)


# ----------------------------------------------------------------------------
# Kernel 2: fused head  (fc_feature_all -> fc_statistics -> VIB -> fc_decode)
# Single invocation, everything resident in VMEM; bf16 weights on the
# statistics MLP with f32 accumulation; mu/std/logit packed lane-dense.
# ----------------------------------------------------------------------------
def _head_kernel(feat_ref, eps_ref,
                 a1w_ref, a1b_ref, a2w_ref, a2b_ref,
                 s1w_ref, s1b_ref, s2w_ref, s2b_ref, s3w_ref, s3b_ref,
                 d1w_ref, d1b_ref, d2w_ref, d2b_ref,
                 out_ref, *, latent_dim, num_class):
    B = eps_ref.shape[0]
    # torch.concatenate([feat, feat_ft, feat_wt], dim=1)
    feat_cat = jnp.concatenate([feat_ref[0], feat_ref[1], feat_ref[2]], axis=1)

    # fc_feature_all: Linear+BN(folded)+ReLU+Drop(id)+Linear+BN(folded)+ReLU
    h = jnp.dot(feat_cat, a1w_ref[...], preferred_element_type=jnp.float32) + a1b_ref[...]
    h = jnp.maximum(h, 0.0)
    h = jnp.dot(h, a2w_ref[...], preferred_element_type=jnp.float32) + a2b_ref[...]
    feat_all = jnp.maximum(h, 0.0)

    # fc_statistics: bf16 weights, bf16 MXU inputs, f32 accumulation/epilogue
    h = jnp.dot(feat_all.astype(jnp.bfloat16), s1w_ref[...],
                preferred_element_type=jnp.float32) + s1b_ref[...]
    h = jnp.maximum(h, 0.0)
    h = jnp.dot(h.astype(jnp.bfloat16), s2w_ref[...],
                preferred_element_type=jnp.float32) + s2b_ref[...]
    h = jnp.maximum(h, 0.0)
    stats = jnp.dot(h.astype(jnp.bfloat16), s3w_ref[...],
                    preferred_element_type=jnp.float32) + s3b_ref[...]

    # VIB: mu, std = softplus(stats_hi - 5), encoding = mu + eps * std
    mu = stats[:, :latent_dim]
    x = stats[:, latent_dim:] - 5.0
    std = jnp.maximum(x, 0.0) + jnp.log1p(jnp.exp(-jnp.abs(x)))   # stable softplus
    enc = mu + eps_ref[...] * std

    # fc_decode: Linear + ReLU + Linear
    h = jnp.dot(enc, d1w_ref[...], preferred_element_type=jnp.float32) + d1b_ref[...]
    h = jnp.maximum(h, 0.0)
    logit = jnp.dot(h, d2w_ref[...], preferred_element_type=jnp.float32) + d2b_ref[...]

    # Pack [mu | std | logit | zero pad] into one lane-dense (B, slab) store.
    pad = out_ref.shape[1] - (2 * latent_dim + num_class)
    out_ref[...] = jnp.concatenate(
        [mu, std, logit, jnp.zeros((B, pad), jnp.float32)], axis=1)


def run_head(feat, eps, p, *, latent_dim, num_class):
    B = eps.shape[0]
    used = 2 * latent_dim + num_class
    slab = max(128, ((used + 127) // 128) * 128)

    def full_spec(arr):
        shp = arr.shape
        return pl.BlockSpec(shp, lambda: (0,) * len(shp))

    args = [feat, eps,
            p["a1w"], p["a1b"], p["a2w"], p["a2b"],
            p["s1w"], p["s1b"], p["s2w"], p["s2b"], p["s3w"], p["s3b"],
            p["d1w"], p["d1b"], p["d2w"], p["d2b"]]

    return pl.pallas_call(
        functools.partial(_head_kernel, latent_dim=latent_dim, num_class=num_class),
        out_shape=jax.ShapeDtypeStruct((B, slab), jnp.float32),
        in_specs=[full_spec(a) for a in args],
        out_specs=pl.BlockSpec((B, slab), lambda: (0, 0)),
    )(*args)


# ----------------------------------------------------------------------------
# Parameter setup (deterministic, in-script) + eval-mode BN folding
# ----------------------------------------------------------------------------
def init_linear(key, fan_in, fan_out):
    w = jax.random.normal(key, (fan_in, fan_out), jnp.float32) / jnp.sqrt(
        jnp.float32(fan_in))
    b = jnp.zeros((fan_out,), jnp.float32)
    return w, b


def fold_bn(w, b, gamma, beta, mean, var, eps=1e-5):
    """Fold eval-mode BatchNorm1d into the preceding Linear."""
    scale = gamma / jnp.sqrt(var + eps)
    return w * scale[None, :], (b - mean) * scale + beta


def bn_identity(n):
    return (
        jnp.ones((n,), jnp.float32),   # gamma
        jnp.zeros((n,), jnp.float32),  # beta
        jnp.zeros((n,), jnp.float32),  # running_mean
        jnp.ones((n,), jnp.float32),   # running_var
    )


def build_branch_params(key, n_flat, enc_dim, feat_dim, proj_dim):
    """Three independent (encoder, fc_feature, fc_projector) stacks -> (3,...)."""
    keys = jax.random.split(key, 15)
    acc = {k: [] for k in
           ("ew", "eb", "f1w", "f1b", "f2w", "f2b", "p1w", "p1b", "p2w", "p2b")}
    ki = iter(keys)
    for _ in range(3):
        ew, eb = init_linear(next(ki), n_flat, enc_dim)   # stand-in encoder
        f1w, f1b = init_linear(next(ki), enc_dim, feat_dim)
        f1w, f1b = fold_bn(f1w, f1b, *bn_identity(feat_dim))
        f2w, f2b = init_linear(next(ki), feat_dim, feat_dim)
        p1w, p1b = init_linear(next(ki), feat_dim, proj_dim)
        p1w, p1b = fold_bn(p1w, p1b, *bn_identity(proj_dim))
        p2w, p2b = init_linear(next(ki), proj_dim, proj_dim)
        for name, (w, b) in (("e", (ew, eb)), ("f1", (f1w, f1b)),
                             ("f2", (f2w, f2b)), ("p1", (p1w, p1b)),
                             ("p2", (p2w, p2b))):
            acc[name + "w"].append(w)
            acc[name + "b"].append(b.reshape(1, -1))
    return {k: jnp.stack(v, axis=0) for k, v in acc.items()}


def build_head_params(key, feat_dim, latent_dim, num_class):
    k = jax.random.split(key, 7)
    a1w, a1b = init_linear(k[0], 3 * feat_dim, feat_dim)
    a1w, a1b = fold_bn(a1w, a1b, *bn_identity(feat_dim))
    a2w, a2b = init_linear(k[1], feat_dim, feat_dim)
    a2w, a2b = fold_bn(a2w, a2b, *bn_identity(feat_dim))
    s1w, s1b = init_linear(k[2], feat_dim, 1024)
    s2w, s2b = init_linear(k[3], 1024, 1024)
    s3w, s3b = init_linear(k[4], 1024, 2 * latent_dim)
    d1w, d1b = init_linear(k[5], latent_dim, 512)
    d2w, d2b = init_linear(k[6], 512, num_class)
    r = lambda b: b.reshape(1, -1)
    return {
        "a1w": a1w, "a1b": r(a1b), "a2w": a2w, "a2b": r(a2b),
        # fc_statistics weights in bf16 (halves the dominant weight DMA);
        # biases / accumulation stay f32.
        "s1w": s1w.astype(jnp.bfloat16), "s1b": r(s1b),
        "s2w": s2w.astype(jnp.bfloat16), "s2b": r(s2b),
        "s3w": s3w.astype(jnp.bfloat16), "s3b": r(s3b),
        "d1w": d1w, "d1b": r(d1b), "d2w": d2w, "d2b": r(d2b),
    }


def build_params(key, *, num_channels, T, enc_dim, feat_dim, proj_dim,
                 latent_dim, num_class):
    kb, kh = jax.random.split(key)
    n_flat = num_channels * T
    return {
        "branch": build_branch_params(kb, n_flat, enc_dim, feat_dim, proj_dim),
        "head": build_head_params(kh, feat_dim, latent_dim, num_class),
    }


# ----------------------------------------------------------------------------
# Full forward pass (num_sample == 1 path)
# ----------------------------------------------------------------------------
def forward(params, eeg, eeg_ft, eeg_wt, eps, latent_dim, num_class):
    B = eeg.shape[0]
    x_stack = jnp.stack(
        [eeg.reshape(B, -1), eeg_ft.reshape(B, -1), eeg_wt.reshape(B, -1)],
        axis=0)                                              # (3, B, n_flat)

    feat, proj = run_branches(x_stack, params["branch"])      # (3,B,F), (3,B,P)
    packed = run_head(feat, eps, params["head"],
                      latent_dim=latent_dim, num_class=num_class)

    mu = packed[:, :latent_dim]
    std = packed[:, latent_dim:2 * latent_dim]
    logit = packed[:, 2 * latent_dim:2 * latent_dim + num_class]
    return (mu, std), logit, proj[0], proj[1], proj[2]


# ----------------------------------------------------------------------------
# Main
# ----------------------------------------------------------------------------
if __name__ == "__main__":
    # args (small, consistent with the module's __init__)
    batch_size = 2
    num_channels = 4
    chunk_second, freq_rate = 2, 8
    T = chunk_second * freq_rate          # 16
    enc_dim = 64                          # n_feature from stand-in encoder
    feat_dim = 32
    proj_dim = 32
    latent_dim = 16
    num_class = 4

    root = jax.random.PRNGKey(0)
    k_param, k_eeg, k_ft, k_wt, k_eps = jax.random.split(root, 5)

    params = build_params(
        k_param,
        num_channels=num_channels, T=T, enc_dim=enc_dim,
        feat_dim=feat_dim, proj_dim=proj_dim,
        latent_dim=latent_dim, num_class=num_class,
    )

    eeg = jax.random.normal(k_eeg, (batch_size, num_channels, T), jnp.float32)
    eeg_ft = jax.random.normal(k_ft, (batch_size, num_channels, T), jnp.float32)
    eeg_wt = jax.random.normal(k_wt, (batch_size, num_channels, T), jnp.float32)
    eps = jax.random.normal(k_eps, (batch_size, latent_dim), jnp.float32)

    fwd = jax.jit(functools.partial(forward, latent_dim=latent_dim,
                                    num_class=num_class))
    (mu, std), logit, proj, proj_ft, proj_wt = fwd(params, eeg, eeg_ft, eeg_wt, eps)
    jax.block_until_ready((mu, std, logit, proj, proj_ft, proj_wt))

    assert mu.shape == (batch_size, latent_dim)
    assert std.shape == (batch_size, latent_dim)
    assert logit.shape == (batch_size, num_class)
    assert proj.shape == (batch_size, proj_dim)
    assert proj_ft.shape == (batch_size, proj_dim)
    assert proj_wt.shape == (batch_size, proj_dim)
    assert bool(jnp.all(std > 0.0))       # softplus output must be positive

    print("KERNEL_OK")
</pallas_src>

<mosaic_0001>
module attributes {stable_mosaic.version = 11 : i64} {
  func.func @_branch_kernel(%arg0: i32, %arg1: memref<1x2x64xf32, #tpu.memory_space<vmem>>, %arg2: memref<1x64x64xf32, #tpu.memory_space<vmem>>, %arg3: memref<1x1x64xf32, #tpu.memory_space<vmem>>, %arg4: memref<1x64x32xf32, #tpu.memory_space<vmem>>, %arg5: memref<1x1x32xf32, #tpu.memory_space<vmem>>, %arg6: memref<1x32x32xf32, #tpu.memory_space<vmem>>, %arg7: memref<1x1x32xf32, #tpu.memory_space<vmem>>, %arg8: memref<1x32x32xf32, #tpu.memory_space<vmem>>, %arg9: memref<1x1x32xf32, #tpu.memory_space<vmem>>, %arg10: memref<1x32x32xf32, #tpu.memory_space<vmem>>, %arg11: memref<1x1x32xf32, #tpu.memory_space<vmem>>, %arg12: memref<1x2x32xf32, #tpu.memory_space<vmem>>, %arg13: memref<1x2x32xf32, #tpu.memory_space<vmem>>) attributes {dimension_semantics = [#tpu.dimension_semantics<parallel>], iteration_bounds = array<i64: 3>, scalar_prefetch = 0 : i64, scratch_operands = 0 : i64, tpu.core_type = #tpu.core_type<tc>, window_params = [{transform_indices = @transform_0, window_bounds = array<i64: 1, 2, 64>}, {transform_indices = @transform_1, window_bounds = array<i64: 1, 64, 64>}, {transform_indices = @transform_2, window_bounds = array<i64: 1, 1, 64>}, {transform_indices = @transform_3, window_bounds = array<i64: 1, 64, 32>}, {transform_indices = @transform_4, window_bounds = array<i64: 1, 1, 32>}, {transform_indices = @transform_5, window_bounds = array<i64: 1, 32, 32>}, {transform_indices = @transform_6, window_bounds = array<i64: 1, 1, 32>}, {transform_indices = @transform_7, window_bounds = array<i64: 1, 32, 32>}, {transform_indices = @transform_8, window_bounds = array<i64: 1, 1, 32>}, {transform_indices = @transform_9, window_bounds = array<i64: 1, 32, 32>}, {transform_indices = @transform_10, window_bounds = array<i64: 1, 1, 32>}, {transform_indices = @transform_11, window_bounds = array<i64: 1, 2, 32>}, {transform_indices = @transform_12, window_bounds = array<i64: 1, 2, 32>}]} {
    %c0 = arith.constant 0 : index
    %c0_0 = arith.constant 0 : index
    %c0_1 = arith.constant 0 : index
    %0 = vector.load %arg1[%c0, %c0_0, %c0_1] : memref<1x2x64xf32, #tpu.memory_space<vmem>>, vector<1x2x64xf32>
    %1 = vector.shape_cast %0 : vector<1x2x64xf32> to vector<2x64xf32>
    %c0_2 = arith.constant 0 : index
    %c0_3 = arith.constant 0 : index
    %c0_4 = arith.constant 0 : index
    %2 = vector.load %arg2[%c0_2, %c0_3, %c0_4] : memref<1x64x64xf32, #tpu.memory_space<vmem>>, vector<1x64x64xf32>
    %3 = vector.shape_cast %2 : vector<1x64x64xf32> to vector<64x64xf32>
    %cst = arith.constant dense<0.000000e+00> : vector<2x64xf32>
    %4 = tpu.matmul %1, %3, %cst {dimension_numbers = #tpu.dot_dimension_numbers<[1], [0], [0], [1], [0, 0, 1, 1], [], []>} : vector<2x64xf32>, vector<64x64xf32>, vector<2x64xf32> -> vector<2x64xf32>
    %c0_5 = arith.constant 0 : index
    %c0_6 = arith.constant 0 : index
    %c0_7 = arith.constant 0 : index
    %5 = vector.load %arg3[%c0_5, %c0_6, %c0_7] : memref<1x1x64xf32, #tpu.memory_space<vmem>>, vector<1x1x64xf32>
    %6 = vector.shape_cast %5 : vector<1x1x64xf32> to vector<1x64xf32>
    %7 = vector.broadcast %6 : vector<1x64xf32> to vector<2x64xf32>
    %8 = arith.addf %4, %7 : vector<2x64xf32>
    %cst_8 = arith.constant 0.000000e+00 : f32
    %9 = vector.broadcast %cst_8 : f32 to vector<2x64xf32>
    %10 = arith.maximumf %8, %9 : vector<2x64xf32>
    %c0_9 = arith.constant 0 : index
    %c0_10 = arith.constant 0 : index
    %c0_11 = arith.constant 0 : index
    %11 = vector.load %arg4[%c0_9, %c0_10, %c0_11] : memref<1x64x32xf32, #tpu.memory_space<vmem>>, vector<1x64x32xf32>
    %12 = vector.shape_cast %11 : vector<1x64x32xf32> to vector<64x32xf32>
    %cst_12 = arith.constant dense<0.000000e+00> : vector<2x32xf32>
    %13 = tpu.matmul %10, %12, %cst_12 {dimension_numbers = #tpu.dot_dimension_numbers<[1], [0], [0], [1], [0, 0, 1, 1], [], []>} : vector<2x64xf32>, vector<64x32xf32>, vector<2x32xf32> -> vector<2x32xf32>
    %c0_13 = arith.constant 0 : index
    %c0_14 = arith.constant 0 : index
    %c0_15 = arith.constant 0 : index
    %14 = vector.load %arg5[%c0_13, %c0_14, %c0_15] : memref<1x1x32xf32, #tpu.memory_space<vmem>>, vector<1x1x32xf32>
    %15 = vector.shape_cast %14 : vector<1x1x32xf32> to vector<1x32xf32>
    %16 = vector.broadcast %15 : vector<1x32xf32> to vector<2x32xf32>
    %17 = arith.addf %13, %16 : vector<2x32xf32>
    %cst_16 = arith.constant 0.000000e+00 : f32
    %18 = vector.broadcast %cst_16 : f32 to vector<2x32xf32>
    %19 = arith.maximumf %17, %18 : vector<2x32xf32>
    %c0_17 = arith.constant 0 : index
    %c0_18 = arith.constant 0 : index
    %c0_19 = arith.constant 0 : index
    %20 = vector.load %arg6[%c0_17, %c0_18, %c0_19] : memref<1x32x32xf32, #tpu.memory_space<vmem>>, vector<1x32x32xf32>
    %21 = vector.shape_cast %20 : vector<1x32x32xf32> to vector<32x32xf32>
    %cst_20 = arith.constant dense<0.000000e+00> : vector<2x32xf32>
    %22 = tpu.matmul %19, %21, %cst_20 {dimension_numbers = #tpu.dot_dimension_numbers<[1], [0], [0], [1], [0, 0, 1, 1], [], []>} : vector<2x32xf32>, vector<32x32xf32>, vector<2x32xf32> -> vector<2x32xf32>
    %c0_21 = arith.constant 0 : index
    %c0_22 = arith.constant 0 : index
    %c0_23 = arith.constant 0 : index
    %23 = vector.load %arg7[%c0_21, %c0_22, %c0_23] : memref<1x1x32xf32, #tpu.memory_space<vmem>>, vector<1x1x32xf32>
    %24 = vector.shape_cast %23 : vector<1x1x32xf32> to vector<1x32xf32>
    %25 = vector.broadcast %24 : vector<1x32xf32> to vector<2x32xf32>
    %26 = arith.addf %22, %25 : vector<2x32xf32>
    %c0_24 = arith.constant 0 : index
    %c0_25 = arith.constant 0 : index
    %c0_26 = arith.constant 0 : index
    %27 = vector.load %arg12[%c0_24, %c0_25, %c0_26] : memref<1x2x32xf32, #tpu.memory_space<vmem>>, vector<1x2x32xf32>
    %28 = vector.shape_cast %27 : vector<1x2x32xf32> to vector<2x32xf32>
    %29 = vector.shape_cast %26 : vector<2x32xf32> to vector<1x2x32xf32>
    tpu.vector_store %arg12[%c0_24, %c0_25, %c0_26], %29 {strides = array<i32>} : memref<1x2x32xf32, #tpu.memory_space<vmem>>, vector<1x2x32xf32>,
    %c0_27 = arith.constant 0 : index
    %c0_28 = arith.constant 0 : index
    %c0_29 = arith.constant 0 : index
    %30 = vector.load %arg8[%c0_27, %c0_28, %c0_29] : memref<1x32x32xf32, #tpu.memory_space<vmem>>, vector<1x32x32xf32>
    %31 = vector.shape_cast %30 : vector<1x32x32xf32> to vector<32x32xf32>
    %cst_30 = arith.constant dense<0.000000e+00> : vector<2x32xf32>
    %32 = tpu.matmul %26, %31, %cst_30 {dimension_numbers = #tpu.dot_dimension_numbers<[1], [0], [0], [1], [0, 0, 1, 1], [], []>} : vector<2x32xf32>, vector<32x32xf32>, vector<2x32xf32> -> vector<2x32xf32>
    %c0_31 = arith.constant 0 : index
    %c0_32 = arith.constant 0 : index
    %c0_33 = arith.constant 0 : index
    %33 = vector.load %arg9[%c0_31, %c0_32, %c0_33] : memref<1x1x32xf32, #tpu.memory_space<vmem>>, vector<1x1x32xf32>
    %34 = vector.shape_cast %33 : vector<1x1x32xf32> to vector<1x32xf32>
    %35 = vector.broadcast %34 : vector<1x32xf32> to vector<2x32xf32>
    %36 = arith.addf %32, %35 : vector<2x32xf32>
    %cst_34 = arith.constant 0.000000e+00 : f32
    %37 = vector.broadcast %cst_34 : f32 to vector<2x32xf32>
    %38 = arith.maximumf %36, %37 : vector<2x32xf32>
    %c0_35 = arith.constant 0 : index
    %c0_36 = arith.constant 0 : index
    %c0_37 = arith.constant 0 : index
    %39 = vector.load %arg10[%c0_35, %c0_36, %c0_37] : memref<1x32x32xf32, #tpu.memory_space<vmem>>, vector<1x32x32xf32>
    %40 = vector.shape_cast %39 : vector<1x32x32xf32> to vector<32x32xf32>
    %cst_38 = arith.constant dense<0.000000e+00> : vector<2x32xf32>
    %41 = tpu.matmul %38, %40, %cst_38 {dimension_numbers = #tpu.dot_dimension_numbers<[1], [0], [0], [1], [0, 0, 1, 1], [], []>} : vector<2x32xf32>, vector<32x32xf32>, vector<2x32xf32> -> vector<2x32xf32>
    %c0_39 = arith.constant 0 : index
    %c0_40 = arith.constant 0 : index
    %c0_41 = arith.constant 0 : index
    %42 = vector.load %arg11[%c0_39, %c0_40, %c0_41] : memref<1x1x32xf32, #tpu.memory_space<vmem>>, vector<1x1x32xf32>
    %43 = vector.shape_cast %42 : vector<1x1x32xf32> to vector<1x32xf32>
    %44 = vector.broadcast %43 : vector<1x32xf32> to vector<2x32xf32>
    %45 = arith.addf %41, %44 : vector<2x32xf32>
    %c0_42 = arith.constant 0 : index
    %c0_43 = arith.constant 0 : index
    %c0_44 = arith.constant 0 : index
    %46 = vector.load %arg13[%c0_42, %c0_43, %c0_44] : memref<1x2x32xf32, #tpu.memory_space<vmem>>, vector<1x2x32xf32>
    %47 = vector.shape_cast %46 : vector<1x2x32xf32> to vector<2x32xf32>
    %48 = vector.shape_cast %45 : vector<2x32xf32> to vector<1x2x32xf32>
    tpu.vector_store %arg13[%c0_42, %c0_43, %c0_44], %48 {strides = array<i32>} : memref<1x2x32xf32, #tpu.memory_space<vmem>>, vector<1x2x32xf32>,
    return
  }
  func.func @transform_0(%arg0: i32) -> (i32, i32, i32) {
    %c0_i32 = arith.constant 0 : i32
    %c0_i32_0 = arith.constant 0 : i32
    %c0_i32_1 = arith.constant 0 : i32
    return %arg0, %c0_i32, %c0_i32_0 : i32, i32, i32
  }
  func.func @transform_1(%arg0: i32) -> (i32, i32, i32) {
    %c0_i32 = arith.constant 0 : i32
    %c0_i32_0 = arith.constant 0 : i32
    %c0_i32_1 = arith.constant 0 : i32
    return %arg0, %c0_i32, %c0_i32_0 : i32, i32, i32
  }
  func.func @transform_2(%arg0: i32) -> (i32, i32, i32) {
    %c0_i32 = arith.constant 0 : i32
    %c0_i32_0 = arith.constant 0 : i32
    %c0_i32_1 = arith.constant 0 : i32
    return %arg0, %c0_i32, %c0_i32_0 : i32, i32, i32
  }
  func.func @transform_3(%arg0: i32) -> (i32, i32, i32) {
    %c0_i32 = arith.constant 0 : i32
    %c0_i32_0 = arith.constant 0 : i32
    %c0_i32_1 = arith.constant 0 : i32
    return %arg0, %c0_i32, %c0_i32_0 : i32, i32, i32
  }
  func.func @transform_4(%arg0: i32) -> (i32, i32, i32) {
    %c0_i32 = arith.constant 0 : i32
    %c0_i32_0 = arith.constant 0 : i32
    %c0_i32_1 = arith.constant 0 : i32
    return %arg0, %c0_i32, %c0_i32_0 : i32, i32, i32
  }
  func.func @transform_5(%arg0: i32) -> (i32, i32, i32) {
    %c0_i32 = arith.constant 0 : i32
    %c0_i32_0 = arith.constant 0 : i32
    %c0_i32_1 = arith.constant 0 : i32
    return %arg0, %c0_i32, %c0_i32_0 : i32, i32, i32
  }
  func.func @transform_6(%arg0: i32) -> (i32, i32, i32) {
    %c0_i32 = arith.constant 0 : i32
    %c0_i32_0 = arith.constant 0 : i32
    %c0_i32_1 = arith.constant 0 : i32
    return %arg0, %c0_i32, %c0_i32_0 : i32, i32, i32
  }
  func.func @transform_7(%arg0: i32) -> (i32, i32, i32) {
    %c0_i32 = arith.constant 0 : i32
    %c0_i32_0 = arith.constant 0 : i32
    %c0_i32_1 = arith.constant 0 : i32
    return %arg0, %c0_i32, %c0_i32_0 : i32, i32, i32
  }
  func.func @transform_8(%arg0: i32) -> (i32, i32, i32) {
    %c0_i32 = arith.constant 0 : i32
    %c0_i32_0 = arith.constant 0 : i32
    %c0_i32_1 = arith.constant 0 : i32
    return %arg0, %c0_i32, %c0_i32_0 : i32, i32, i32
  }
  func.func @transform_9(%arg0: i32) -> (i32, i32, i32) {
    %c0_i32 = arith.constant 0 : i32
    %c0_i32_0 = arith.constant 0 : i32
    %c0_i32_1 = arith.constant 0 : i32
    return %arg0, %c0_i32, %c0_i32_0 : i32, i32, i32
  }
  func.func @transform_10(%arg0: i32) -> (i32, i32, i32) {
    %c0_i32 = arith.constant 0 : i32
    %c0_i32_0 = arith.constant 0 : i32
    %c0_i32_1 = arith.constant 0 : i32
    return %arg0, %c0_i32, %c0_i32_0 : i32, i32, i32
  }
  func.func @transform_11(%arg0: i32) -> (i32, i32, i32) {
    %c0_i32 = arith.constant 0 : i32
    %c0_i32_0 = arith.constant 0 : i32
    %c0_i32_1 = arith.constant 0 : i32
    return %arg0, %c0_i32, %c0_i32_0 : i32, i32, i32
  }
  func.func @transform_12(%arg0: i32) -> (i32, i32, i32) {
    %c0_i32 = arith.constant 0 : i32
    %c0_i32_0 = arith.constant 0 : i32
    %c0_i32_1 = arith.constant 0 : i32
    return %arg0, %c0_i32, %c0_i32_0 : i32, i32, i32
  }
}

module attributes {stable_mosaic.version = 11 : i64} {
  func.func @_head_kernel(%arg0: memref<3x2x32xf32, #tpu.memory_space<vmem>>, %arg1: memref<2x16xf32, #tpu.memory_space<vmem>>, %arg2: memref<96x32xf32, #tpu.memory_space<vmem>>, %arg3: memref<1x32xf32, #tpu.memory_space<vmem>>, %arg4: memref<32x32xf32, #tpu.memory_space<vmem>>, %arg5: memref<1x32xf32, #tpu.memory_space<vmem>>, %arg6: memref<32x1024xbf16, #tpu.memory_space<vmem>>, %arg7: memref<1x1024xf32, #tpu.memory_space<vmem>>, %arg8: memref<1024x1024xbf16, #tpu.memory_space<vmem>>, %arg9: memref<1x1024xf32, #tpu.memory_space<vmem>>, %arg10: memref<1024x32xbf16, #tpu.memory_space<vmem>>, %arg11: memref<1x32xf32, #tpu.memory_space<vmem>>, %arg12: memref<16x512xf32, #tpu.memory_space<vmem>>, %arg13: memref<1x512xf32, #tpu.memory_space<vmem>>, %arg14: memref<512x4xf32, #tpu.memory_space<vmem>>, %arg15: memref<1x4xf32, #tpu.memory_space<vmem>>, %arg16: memref<2x128xf32, #tpu.memory_space<vmem>>) attributes {dimension_semantics = [], scalar_prefetch = 0 : i64, scratch_operands = 0 : i64, tpu.core_type = #tpu.core_type<tc>} {
    %c0 = arith.constant 0 : index
    %c0_0 = arith.constant 0 : index
    %c0_1 = arith.constant 0 : index
    %0 = vector.load %arg0[%c0, %c0_0, %c0_1] : memref<3x2x32xf32, #tpu.memory_space<vmem>>, vector<1x2x32xf32>
    %1 = vector.shape_cast %0 : vector<1x2x32xf32> to vector<2x32xf32>
    %c1 = arith.constant 1 : index
    %c0_2 = arith.constant 0 : index
    %c0_3 = arith.constant 0 : index
    %2 = vector.load %arg0[%c1, %c0_2, %c0_3] : memref<3x2x32xf32, #tpu.memory_space<vmem>>, vector<1x2x32xf32>
    %3 = vector.shape_cast %2 : vector<1x2x32xf32> to vector<2x32xf32>
    %c2 = arith.constant 2 : index
    %c0_4 = arith.constant 0 : index
    %c0_5 = arith.constant 0 : index
    %4 = vector.load %arg0[%c2, %c0_4, %c0_5] : memref<3x2x32xf32, #tpu.memory_space<vmem>>, vector<1x2x32xf32>
    %5 = vector.shape_cast %4 : vector<1x2x32xf32> to vector<2x32xf32>
    %6 = tpu.concatenate %1, %3, %5 in 1 : vector<2x32xf32>, vector<2x32xf32>, vector<2x32xf32> -> vector<2x96xf32>
    %c0_6 = arith.constant 0 : index
    %c0_7 = arith.constant 0 : index
    %7 = vector.load %arg2[%c0_6, %c0_7] : memref<96x32xf32, #tpu.memory_space<vmem>>, vector<96x32xf32>
    %cst = arith.constant dense<0.000000e+00> : vector<2x32xf32>
    %8 = tpu.matmul %6, %7, %cst {dimension_numbers = #tpu.dot_dimension_numbers<[1], [0], [0], [1], [0, 0, 1, 1], [], []>} : vector<2x96xf32>, vector<96x32xf32>, vector<2x32xf32> -> vector<2x32xf32>
    %c0_8 = arith.constant 0 : index
    %c0_9 = arith.constant 0 : index
    %9 = vector.load %arg3[%c0_8, %c0_9] : memref<1x32xf32, #tpu.memory_space<vmem>>, vector<1x32xf32>
    %10 = vector.broadcast %9 : vector<1x32xf32> to vector<2x32xf32>
    %11 = arith.addf %8, %10 : vector<2x32xf32>
    %cst_10 = arith.constant 0.000000e+00 : f32
    %12 = vector.broadcast %cst_10 : f32 to vector<2x32xf32>
    %13 = arith.maximumf %11, %12 : vector<2x32xf32>
    %c0_11 = arith.constant 0 : index
    %c0_12 = arith.constant 0 : index
    %14 = vector.load %arg4[%c0_11, %c0_12] : memref<32x32xf32, #tpu.memory_space<vmem>>, vector<32x32xf32>
    %cst_13 = arith.constant dense<0.000000e+00> : vector<2x32xf32>
    %15 = tpu.matmul %13, %14, %cst_13 {dimension_numbers = #tpu.dot_dimension_numbers<[1], [0], [0], [1], [0, 0, 1, 1], [], []>} : vector<2x32xf32>, vector<32x32xf32>, vector<2x32xf32> -> vector<2x32xf32>
    %c0_14 = arith.constant 0 : index
    %c0_15 = arith.constant 0 : index
    %16 = vector.load %arg5[%c0_14, %c0_15] : memref<1x32xf32, #tpu.memory_space<vmem>>, vector<1x32xf32>
    %17 = vector.broadcast %16 : vector<1x32xf32> to vector<2x32xf32>
    %18 = arith.addf %15, %17 : vector<2x32xf32>
    %cst_16 = arith.constant 0.000000e+00 : f32
    %19 = vector.broadcast %cst_16 : f32 to vector<2x32xf32>
    %20 = arith.maximumf %18, %19 : vector<2x32xf32>
    %21 = arith.truncf %20 : vector<2x32xf32> to vector<2x32xbf16>
    %c0_17 = arith.constant 0 : index
    %c0_18 = arith.constant 0 : index
    %22 = vector.load %arg6[%c0_17, %c0_18] : memref<32x1024xbf16, #tpu.memory_space<vmem>>, vector<32x1024xbf16>
    %cst_19 = arith.constant dense<0.000000e+00> : vector<2x1024xf32>
    %23 = tpu.matmul %21, %22, %cst_19 {dimension_numbers = #tpu.dot_dimension_numbers<[1], [0], [0], [1], [0, 0, 1, 1], [], []>} : vector<2x32xbf16>, vector<32x1024xbf16>, vector<2x1024xf32> -> vector<2x1024xf32>
    %c0_20 = arith.constant 0 : index
    %c0_21 = arith.constant 0 : index
    %24 = vector.load %arg7[%c0_20, %c0_21] : memref<1x1024xf32, #tpu.memory_space<vmem>>, vector<1x1024xf32>
    %25 = vector.broadcast %24 : vector<1x1024xf32> to vector<2x1024xf32>
    %26 = arith.addf %23, %25 : vector<2x1024xf32>
    %cst_22 = arith.constant 0.000000e+00 : f32
    %27 = vector.broadcast %cst_22 : f32 to vector<2x1024xf32>
    %28 = arith.maximumf %26, %27 : vector<2x1024xf32>
    %29 = arith.truncf %28 : vector<2x1024xf32> to vector<2x1024xbf16>
    %c0_23 = arith.constant 0 : index
    %c0_24 = arith.constant 0 : index
    %30 = vector.load %arg8[%c0_23, %c0_24] : memref<1024x1024xbf16, #tpu.memory_space<vmem>>, vector<1024x1024xbf16>
    %cst_25 = arith.constant dense<0.000000e+00> : vector<2x1024xf32>
    %31 = tpu.matmul %29, %30, %cst_25 {dimension_numbers = #tpu.dot_dimension_numbers<[1], [0], [0], [1], [0, 0, 1, 1], [], []>} : vector<2x1024xbf16>, vector<1024x1024xbf16>, vector<2x1024xf32> -> vector<2x1024xf32>
    %c0_26 = arith.constant 0 : index
    %c0_27 = arith.constant 0 : index
    %32 = vector.load %arg9[%c0_26, %c0_27] : memref<1x1024xf32, #tpu.memory_space<vmem>>, vector<1x1024xf32>
    %33 = vector.broadcast %32 : vector<1x1024xf32> to vector<2x1024xf32>
    %34 = arith.addf %31, %33 : vector<2x1024xf32>
    %cst_28 = arith.constant 0.000000e+00 : f32
    %35 = vector.broadcast %cst_28 : f32 to vector<2x1024xf32>
    %36 = arith.maximumf %34, %35 : vector<2x1024xf32>
    %37 = arith.truncf %36 : vector<2x1024xf32> to vector<2x1024xbf16>
    %c0_29 = arith.constant 0 : index
    %c0_30 = arith.constant 0 : index
    %38 = vector.load %arg10[%c0_29, %c0_30] : memref<1024x32xbf16, #tpu.memory_space<vmem>>, vector<1024x32xbf16>
    %cst_31 = arith.constant dense<0.000000e+00> : vector<2x32xf32>
    %39 = tpu.matmul %37, %38, %cst_31 {dimension_numbers = #tpu.dot_dimension_numbers<[1], [0], [0], [1], [0, 0, 1, 1], [], []>} : vector<2x1024xbf16>, vector<1024x32xbf16>, vector<2x32xf32> -> vector<2x32xf32>
    %c0_32 = arith.constant 0 : index
    %c0_33 = arith.constant 0 : index
    %40 = vector.load %arg11[%c0_32, %c0_33] : memref<1x32xf32, #tpu.memory_space<vmem>>, vector<1x32xf32>
    %41 = vector.broadcast %40 : vector<1x32xf32> to vector<2x32xf32>
    %42 = arith.addf %39, %41 : vector<2x32xf32>
    %43 = vector.extract_strided_slice %42 {offsets = [0, 0], sizes = [2, 16], strides = [1, 1]} : vector<2x32xf32> to vector<2x16xf32>
    %44 = vector.extract_strided_slice %42 {offsets = [0, 16], sizes = [2, 16], strides = [1, 1]} : vector<2x32xf32> to vector<2x16xf32>
    %cst_34 = arith.constant 5.000000e+00 : f32
    %45 = vector.broadcast %cst_34 : f32 to vector<2x16xf32>
    %46 = arith.subf %44, %45 : vector<2x16xf32>
    %cst_35 = arith.constant 0.000000e+00 : f32
    %47 = vector.broadcast %cst_35 : f32 to vector<2x16xf32>
    %48 = arith.maximumf %46, %47 : vector<2x16xf32>
    %49 = math.absf %46 : vector<2x16xf32>
    %cst_36 = arith.constant 0.000000e+00 : f32
    %50 = vector.broadcast %cst_36 : f32 to vector<2x16xf32>
    %51 = arith.subf %50, %49 : vector<2x16xf32>
    %52 = math.exp %51 : vector<2x16xf32>
    %53 = math.log1p %52 : vector<2x16xf32>
    %54 = arith.addf %48, %53 : vector<2x16xf32>
    %c0_37 = arith.constant 0 : index
    %c0_38 = arith.constant 0 : index
    %55 = vector.load %arg1[%c0_37, %c0_38] : memref<2x16xf32, #tpu.memory_space<vmem>>, vector<2x16xf32>
    %56 = arith.mulf %55, %54 : vector<2x16xf32>
    %57 = arith.addf %43, %56 : vector<2x16xf32>
    %c0_39 = arith.constant 0 : index
    %c0_40 = arith.constant 0 : index
    %58 = vector.load %arg12[%c0_39, %c0_40] : memref<16x512xf32, #tpu.memory_space<vmem>>, vector<16x512xf32>
    %cst_41 = arith.constant dense<0.000000e+00> : vector<2x512xf32>
    %59 = tpu.matmul %57, %58, %cst_41 {dimension_numbers = #tpu.dot_dimension_numbers<[1], [0], [0], [1], [0, 0, 1, 1], [], []>} : vector<2x16xf32>, vector<16x512xf32>, vector<2x512xf32> -> vector<2x512xf32>
    %c0_42 = arith.constant 0 : index
    %c0_43 = arith.constant 0 : index
    %60 = vector.load %arg13[%c0_42, %c0_43] : memref<1x512xf32, #tpu.memory_space<vmem>>, vector<1x512xf32>
    %61 = vector.broadcast %60 : vector<1x512xf32> to vector<2x512xf32>
    %62 = arith.addf %59, %61 : vector<2x512xf32>
    %cst_44 = arith.constant 0.000000e+00 : f32
    %63 = vector.broadcast %cst_44 : f32 to vector<2x512xf32>
    %64 = arith.maximumf %62, %63 : vector<2x512xf32>
    %c0_45 = arith.constant 0 : index
    %c0_46 = arith.constant 0 : index
    %65 = vector.load %arg14[%c0_45, %c0_46] : memref<512x4xf32, #tpu.memory_space<vmem>>, vector<512x4xf32>
    %cst_47 = arith.constant dense<0.000000e+00> : vector<2x4xf32>
    %66 = tpu.matmul %64, %65, %cst_47 {dimension_numbers = #tpu.dot_dimension_numbers<[1], [0], [0], [1], [0, 0, 1, 1], [], []>} : vector<2x512xf32>, vector<512x4xf32>, vector<2x4xf32> -> vector<2x4xf32>
    %c0_48 = arith.constant 0 : index
    %c0_49 = arith.constant 0 : index
    %67 = vector.load %arg15[%c0_48, %c0_49] : memref<1x4xf32, #tpu.memory_space<vmem>>, vector<1x4xf32>
    %68 = vector.broadcast %67 : vector<1x4xf32> to vector<2x4xf32>
    %69 = arith.addf %66, %68 : vector<2x4xf32>
    %cst_50 = arith.constant 0.000000e+00 : f32
    %70 = vector.broadcast %cst_50 : f32 to vector<2x92xf32>
    %71 = tpu.concatenate %43, %54, %69, %70 in 1 : vector<2x16xf32>, vector<2x16xf32>, vector<2x4xf32>, vector<2x92xf32> -> vector<2x128xf32>
    %c0_51 = arith.constant 0 : index
    %c0_52 = arith.constant 0 : index
    %72 = vector.load %arg16[%c0_51, %c0_52] : memref<2x128xf32, #tpu.memory_space<vmem>>, vector<2x128xf32>
    tpu.vector_store %arg16[%c0_51, %c0_52], %71 {strides = array<i32>} : memref<2x128xf32, #tpu.memory_space<vmem>>, vector<2x128xf32>,
    return
  }
}

</mosaic_0001>

<bundles_post_ra>
// kernel: forward.2
= control target key start
LH: loop header
LB: loop body
LE: loop exit
PB: predicated region body
PF: predicated region fallthrough
CT: control target
= control target key end

     0   :  { %s2582_s0 = inlined_call_operand.vmem [shape: f32[3,2,64], index: 0, kind: input, shape index: {}]   ;;  %s2583_s1 = inlined_call_operand.hbm [shape: f32[3,64,64], index: 1, kind: input, shape index: {}]   ;;  %s2584_s2 = inlined_call_operand.hbm [shape: f32[3,1,64], index: 2, kind: input, shape index: {}]   ;;  %s2585_s3 = inlined_call_operand.vmem [shape: f32[3,64,32], index: 3, kind: input, shape index: {}]   ;;  %s2586_s4 = inlined_call_operand.hbm [shape: f32[3,1,32], index: 4, kind: input, shape index: {}]   ;;  %s2587_s5 = inlined_call_operand.hbm [shape: f32[3,32,32], index: 5, kind: input, shape index: {}]   ;;  %s2588_s6 = inlined_call_operand.hbm [shape: f32[3,1,32], index: 6, kind: input, shape index: {}]   ;;  %s2589_s7 = inlined_call_operand.hbm [shape: f32[3,32,32], index: 7, kind: input, shape index: {}]   ;;  %s2590_s8 = inlined_call_operand.hbm [shape: f32[3,1,32], index: 8, kind: input, shape index: {}]   ;;  %s2591_s9 = inlined_call_operand.hbm [shape: f32[3,32,32], index: 9, kind: input, shape index: {}]   ;;  %s2592_s10 = inlined_call_operand.hbm [shape: f32[3,1,32], index: 10, kind: input, shape index: {}]   ;;  %s2593_s11 = inlined_call_operand.vmem [shape: f32[3,2,32], index: 11, kind: output, shape index: {0}]   ;;  %s2594_s12 = inlined_call_operand.vmem [shape: f32[3,2,32], index: 12, kind: output, shape index: {1}]  }
   0x1   :  { %2603 = sst [smem:[#allocation25_spill]] %s2582_s0 }
   0x2   :  { %2604 = sst [smem:[#allocation26_spill]] %s2583_s1 }
   0x3   :  { %2605 = sst [smem:[#allocation27_spill]] %s2584_s2 }
   0x4   :  { %2606 = sst [smem:[#allocation28_spill]] %s2585_s3 }
   0x5   :  { %2607 = sst [smem:[#allocation29_spill]] %s2587_s5 }
   0x6   :  { %2608 = sst [smem:[#allocation30_spill]] %s2593_s11 }
   0x7   :  { %2609 = sst [smem:[#allocation31_spill]] %s2594_s12 }
   0x8   :  { %18 = vsyncpa [#allocation3], 0 }
   0x9   :  { %20 = vsyncpa [#allocation3 + $0x1], 0 }
   0xa   :  { %21 = vsyncpa [#allocation5], 0 }
   0xb   :  { %23 = vsyncpa [#allocation5 + $0x1], 0 }
   0xc   :  { %24 = vsyncpa [#allocation8], 0 }
   0xd   :  { %26 = vsyncpa [#allocation8 + $0x1], 0 }
   0xe   :  { %27 = vsyncpa [#allocation11], 0 }
   0xf   :  { %29 = vsyncpa [#allocation11 + $0x1], 0 }
  0x10   :  { %30 = vsyncpa [#allocation14], 0 }
  0x11   :  { %32 = vsyncpa [#allocation14 + $0x1], 0  ;;  %s2088_s21 = smov 0   ;;  %s2090_s22 = smov 0  }
  0x12   :  { %s2092_s23 = smov 0   ;;  %s2094_s24 = smov 0  }
  0x13 LB: > { %2610 = sst [smem:[#allocation21_spill]] %s2004_s23  ;;  %s2107_s25 = sadd.s32 4294967295, %s2008_s24   ;;  %s2008_s24 = sphi %s2094_s24, %s2635_s24   ;;  %s2004_s23 = sphi %s2092_s23, %s2637_s23   ;;  %s2000_s22 = sphi %s2090_s22, %s2639_s22   ;;  %s1996_s21 = sphi %s2088_s21, %s2638_s21  }
  0x14   : > { %2611 = sst [smem:[#allocation22_spill]] %s2107_s25  ;;  %s2110_s26 = sadd.s32 1, %s2008_s24  }
  0x15   : > { %2612 = sst [smem:[#allocation23_spill]] %s2110_s26  ;;  %s68_s27 = ssub.s32 %s2008_s24, %s2110_s26 }
  0x16   : > { %s71_s28 = sadd.s32 1, %s2004_s23  ;;  %p69_p0 = scmp.eq.s32.totalorder %s68_s27, 0 }
  0x17   : > { %p78_p1 = scmp.ne.s32.totalorder %s2004_s23, %s2000_s22  ;;  %p79_p2 = scmp.eq.s32.totalorder %s2008_s24, 0 }
  0x18   : > { %p84_p3 = scmp.ne.s32.totalorder %s2000_s22, %s1996_s21  ;;  %p85_p5 = scmp.eq.s32.totalorder %s2107_s25, 0 }
  0x19   : > { %s2120_s29 = scalar_select %p69_p0, %s2004_s23, %s71_s28  }
  0x1a   : > { %p80_p4 = por %p79_p2, %p78_p1  ;;  %p1669_p6 = scmp.lt.s32.totalorder %s2008_s24, 3 }
  0x1b   : > { %2613 = sst [smem:[#allocation24_spill]] %s2120_s29  ;;  %p2124_p7 = por %p85_p5, %p84_p3 }
  0x1c   : > { %s2129_s13 = sand.u32 1, %s2004_s23   ;;  %p2131_p8 = pnand %p1669_p6, %p80_p4 }
  0x1d   : > { %s2614_s30 = scalar_select %p2124_p7, 1, 0 }
  0x1e   : > { %s2136_s15 = sand.u32 1, %s2008_s24   ;;  %s2139_s16 = sshll.u32 %s2008_s24, 4 }
  0x1f   : > { %s2616_s2 = sld [smem:[#allocation27_spill]]  ;;  %s425_s20 = scalar_lea.vmem [#allocation4], %s2129_s13 }
  0x20   : > { %s432_s21 = sshll.u32 %s425_s20, 4  ;;  %p2154_p11 = pneg %p2131_p8  ;;  %s433_s21 = int_to_ptr.vmem [resolvable:$true] %s432_s21 }
  0x25   : > { %s2145_s19 = scalar_lea.hbm %s2616_s2, %s2139_s16  ;;  %s1711_s23 = scalar_lea.hbm %s2616_s2, 48 }
  0x26   : > { %s1706_s28 = scalar_lea.hbm %s2145_s19, 16  ;;  %p1712_p0 = scmp.lt.s32.totalorder %s2145_s19, %s2616_s2 }
  0x27   : > { %p1707_p10 = scmp.ne.s32.totalorder %s2145_s19, %s1706_s28  ;;  %p1713_p1 = scmp.lt.s32.totalorder %s1711_s23, %s1706_s28 }
  0x29   : > { %p1709_p12 = pnand %p2154_p11, %p1707_p10  ;;  %p1714_p2 = por %p1713_p1, %p1712_p0 }
  0x2b   : > { %p1710_p13 = pneg %p1709_p12 }
  0x2d   : > { %p1715_p3 = pnand %p1714_p2, %p1710_p13 }
  0x2f   : > { %1718 = shalt.err (!%p1715_p3)
}
  0x30   : > { %s1719_s27 = scalar_lea.vmem %s433_s21, 16  ;;  %s2010_s12 = smov [#allocation4]  }
  0x31   : > { %p1720_p4 = scmp.ne.s32.totalorder %s433_s21, %s1719_s27  ;;  %s1724_s11 = sshll.u32 %s2010_s12, 4  ;;  %s1725_s11 = int_to_ptr.vmem [resolvable:$false] %s1724_s11 }
  0x32   : > { %s1726_s0 = scalar_lea.vmem %s1725_s11, 32  ;;  %p1727_p10 = scmp.lt.s32.totalorder %s433_s21, %s1725_s11 }
  0x33   : > { %p1722_p5 = pnand %p1720_p4, %p2154_p11  ;;  %p1728_p12 = scmp.lt.s32.totalorder %s1726_s0, %s1719_s27 }
  0x35   : > { %p1723_p6 = pneg %p1722_p5  ;;  %p1729_p9 = por %p1728_p12, %p1727_p10 }
  0x37   : > { %p1730_p7 = pnand %p1729_p9, %p1723_p6 }
  0x39   : > { %1733 = shalt.err (!%p1730_p7)
}
  0x3a   : > { %s2618_s23 = scalar_lea.sflag [#allocation5], %s2136_s15  ;;  %p576_p13 = scmp.lt.s32.totalorder %s2008_s24, 4 }
  0x3b   : > { %1647 = dma.hbm_to_vmem [thread:$0]  (!%p2131_p8), %s2145_s19, 16, %s433_s21, %s2618_s23  }
  0x3c   : > { %p2619_p0 = scmp.ge.s32.totalorder %s2008_s24, 1  ;;  %s2182_s0 = sshll.u32 %s2129_s13, 5 }
  0x3d   : > { %s2185_s12 = sshll.u32 %s2008_s24, 9  ;;  %s2621_s5 = sld [smem:[#allocation29_spill]] }
  0x3e   : > { %p2177_p1 = pnand %p2619_p0, %p576_p13  ;;  %s468_s19 = scalar_lea.vmem [#allocation7], %s2182_s0 }
  0x3f   : > { %s475_s21 = sshll.u32 %s468_s19, 4  ;;  %s2194_s21 = int_to_ptr.vmem [resolvable:$true] %s475_s21 }
  0x40   : > { %s2620_s11 = scalar_select %p2177_p1, 1, 0 }
  0x43   : > { %s2191_s28 = scalar_lea.hbm %s2621_s5, %s2185_s12  ;;  %s1739_s2 = scalar_lea.hbm %s2621_s5, 1536 }
  0x44   : > { %s1734_s18 = scalar_lea.hbm %s2191_s28, 512  ;;  %p1740_p3 = scmp.lt.s32.totalorder %s2191_s28, %s2621_s5 }
  0x45   : > { %p1735_p7 = scmp.ne.s32.totalorder %s2191_s28, %s1734_s18  ;;  %p1741_p4 = scmp.lt.s32.totalorder %s1739_s2, %s1734_s18 }
  0x47   : > { %p1737_p9 = pnand %p1735_p7, %p2154_p11  ;;  %p1742_p5 = por %p1741_p4, %p1740_p3 }
  0x49   : > { %p1738_p2 = pneg %p1737_p9 }
  0x4b   : > { %p1743_p6 = pnand %p1742_p5, %p1738_p2 }
  0x4d   : > { %1746 = shalt.err (!%p1743_p6)
}
  0x4e   : > { %s1747_s19 = scalar_lea.vmem %s2194_s21, 512  ;;  %s2011_s17 = smov [#allocation7]  }
  0x4f   : > { %p1748_p10 = scmp.ne.s32.totalorder %s2194_s21, %s1747_s19  ;;  %s1752_s20 = sshll.u32 %s2011_s17, 4  ;;  %s1753_s20 = int_to_ptr.vmem [resolvable:$false] %s1752_s20 }
  0x50   : > { %s1754_s23 = scalar_lea.vmem %s1753_s20, 1024  ;;  %p1755_p0 = scmp.lt.s32.totalorder %s2194_s21, %s1753_s20 }
  0x51   : > { %p1750_p12 = pnand %p1748_p10, %p2154_p11  ;;  %p1756_p7 = scmp.lt.s32.totalorder %s1754_s23, %s1747_s19 }
  0x53   : > { %p1751_p13 = pneg %p1750_p12  ;;  %p1757_p9 = por %p1756_p7, %p1755_p0 }
  0x55   : > { %p1758_p1 = pnand %p1757_p9, %p1751_p13 }
  0x57   : > { %1761 = shalt.err (!%p1758_p1)
}
  0x58   : > { %s2012_s2 = smov 128   ;;  %s2013_s18 = smov 8  }
  0x59   : > { %s2622_s17 = scalar_lea.sflag [#allocation8], %s2136_s15  ;;  %s2226_s19 = scalar_lea.hbm %s2589_s7, %s2185_s12 }
  0x5a   : > { %1653 = dma.hbm_to_vmem [thread:$0]  (!%p2131_p8), %s2191_s28, 512, %s2194_s21, %s2622_s17, %s2012_s2, %s2012_s2, %s2013_s18  }
  0x5b   : > { %s506_s20 = scalar_lea.vmem [#allocation10], %s2182_s0  ;;  %s2601_s5 = scalar_lea.sflag [#allocation11], %s2136_s15 }
  0x5c   : > { %s513_s23 = sshll.u32 %s506_s20, 4  ;;  %s1762_s3 = scalar_lea.hbm %s2226_s19, 512  ;;  %s2229_s23 = int_to_ptr.vmem [resolvable:$true] %s513_s23 }
  0x5d   : > { %p1763_p1 = scmp.ne.s32.totalorder %s2226_s19, %s1762_s3  ;;  %s1767_s21 = scalar_lea.hbm %s2589_s7, 1536 }
  0x5e   : > { %p1768_p4 = scmp.lt.s32.totalorder %s2226_s19, %s2589_s7  ;;  %p1769_p5 = scmp.lt.s32.totalorder %s1767_s21, %s1762_s3 }
  0x5f   : > { %p1765_p2 = pnand %p1763_p1, %p2154_p11 }
  0x60   : > { %p1770_p6 = por %p1769_p5, %p1768_p4 }
  0x61   : > { %p1766_p3 = pneg %p1765_p2 }
  0x63   : > { %p1771_p10 = pnand %p1770_p6, %p1766_p3 }
  0x65   : > { %1774 = shalt.err (!%p1771_p10)
}
  0x66   : > { %s1775_s27 = scalar_lea.vmem %s2229_s23, 512  ;;  %s2014_s20 = smov [#allocation10]  }
  0x67   : > { %p1776_p12 = scmp.ne.s32.totalorder %s2229_s23, %s1775_s27  ;;  %s1780_s25 = sshll.u32 %s2014_s20, 4  ;;  %s1781_s25 = int_to_ptr.vmem [resolvable:$false] %s1780_s25 }
  0x68   : > { %s1782_s28 = scalar_lea.vmem %s1781_s25, 1024  ;;  %p1783_p7 = scmp.lt.s32.totalorder %s2229_s23, %s1781_s25 }
  0x69   : > { %p1778_p13 = pnand %p1776_p12, %p2154_p11  ;;  %p1784_p9 = scmp.lt.s32.totalorder %s1782_s28, %s1775_s27 }
  0x6b   : > { %p1779_p0 = pneg %p1778_p13  ;;  %p1785_p1 = por %p1784_p9, %p1783_p7 }
  0x6d   : > { %p1786_p2 = pnand %p1785_p1, %p1779_p0 }
  0x6f   : > { %1789 = shalt.err (!%p1786_p2)
}
  0x70   : > { %1659 = dma.hbm_to_vmem [thread:$0]  (!%p2131_p8), %s2226_s19, 512, %s2229_s23, %s2601_s5, %s2012_s2, %s2012_s2, %s2013_s18  }
  0x71   : > { %s2261_s17 = scalar_lea.hbm %s2591_s9, %s2185_s12  ;;  %s544_s26 = scalar_lea.vmem [#allocation13], %s2182_s0 }
  0x72   : > { %s551_s27 = sshll.u32 %s544_s26, 4  ;;  %s2602_s20 = scalar_lea.sflag [#allocation14], %s2136_s15  ;;  %s2264_s27 = int_to_ptr.vmem [resolvable:$true] %s551_s27 }
  0x73   : > { %s1790_s25 = scalar_lea.hbm %s2261_s17, 512  ;;  %s1795_s23 = scalar_lea.hbm %s2591_s9, 1536 }
  0x74   : > { %p1791_p3 = scmp.ne.s32.totalorder %s2261_s17, %s1790_s25  ;;  %p1796_p6 = scmp.lt.s32.totalorder %s2261_s17, %s2591_s9 }
  0x75   : > { %p1797_p10 = scmp.lt.s32.totalorder %s1795_s23, %s1790_s25 }
  0x76   : > { %p1793_p4 = pnand %p1791_p3, %p2154_p11 }
  0x77   : > { %p1798_p12 = por %p1797_p10, %p1796_p6 }
  0x78   : > { %p1794_p5 = pneg %p1793_p4 }
  0x7a   : > { %p1799_p13 = pnand %p1798_p12, %p1794_p5 }
  0x7c   : > { %1802 = shalt.err (!%p1799_p13)
}
  0x7d   : > { %s1803_s0 = scalar_lea.vmem %s2264_s27, 512  ;;  %s2015_s21 = smov [#allocation13]  }
  0x7e   : > { %p1804_p0 = scmp.ne.s32.totalorder %s2264_s27, %s1803_s0  ;;  %s1808_s26 = sshll.u32 %s2015_s21, 4  ;;  %s1809_s26 = int_to_ptr.vmem [resolvable:$false] %s1808_s26 }
  0x7f   : > { %s1810_s28 = scalar_lea.vmem %s1809_s26, 1024  ;;  %p1811_p1 = scmp.lt.s32.totalorder %s2264_s27, %s1809_s26 }
  0x80   : > { %p1806_p7 = pnand %p1804_p0, %p2154_p11  ;;  %p1812_p2 = scmp.lt.s32.totalorder %s1810_s28, %s1803_s0 }
  0x82   : > { %p1807_p9 = pneg %p1806_p7  ;;  %p1813_p3 = por %p1812_p2, %p1811_p1 }
  0x84   : > { %p1814_p4 = pnand %p1813_p3, %p1807_p9 }
  0x86   : > { %1817 = shalt.err (!%p1814_p4)
}
  0x87   : > { %1665 = dma.hbm_to_vmem [thread:$0]  (!%p2131_p8), %s2261_s17, 512, %s2264_s27, %s2602_s20, %s2012_s2, %s2012_s2, %s2013_s18  }
  0x88   : > { %s1475_s25 = sshll.u32 %s2129_s13, 6  ;;  %s1514_s19 = sshll.u32 %s2008_s24, 10 }
  0x89   : > { %s2623_s1 = sld [smem:[#allocation26_spill]]  ;;  %s405_s0 = scalar_lea.vmem [#allocation2], %s1475_s25 }
  0x8a   : > { %s412_s21 = sshll.u32 %s405_s0, 4  ;;  %s2305_s5 = scalar_lea.hbm %s2586_s4, %s2139_s16  ;;  %s2299_s21 = int_to_ptr.vmem [resolvable:$true] %s412_s21 }
  0x8b   : > { %s402_s17 = scalar_lea.sflag [#allocation3], %s2129_s13 }
  0x8f   : > { %s2297_s12 = scalar_lea.hbm %s2623_s1, %s1514_s19  ;;  %s1823_s23 = scalar_lea.hbm %s2623_s1, 3072 }
  0x90   : > { %s1818_s27 = scalar_lea.hbm %s2297_s12, 1024  ;;  %p1824_p12 = scmp.lt.s32.totalorder %s2297_s12, %s2623_s1 }
  0x91   : > { %p1819_p5 = scmp.ne.s32.totalorder %s2297_s12, %s1818_s27  ;;  %p1825_p13 = scmp.lt.s32.totalorder %s1823_s23, %s1818_s27 }
  0x93   : > { %p1821_p6 = pnand %p1819_p5, %p2154_p11  ;;  %p1826_p0 = por %p1825_p13, %p1824_p12 }
  0x95   : > { %p1822_p10 = pneg %p1821_p6 }
  0x97   : > { %p1827_p7 = pnand %p1826_p0, %p1822_p10 }
  0x99   : > { %1830 = shalt.err (!%p1827_p7)
}
  0x9a   : > { %s1831_s0 = scalar_lea.vmem %s2299_s21, 1024  ;;  %s2016_s26 = smov [#allocation2]  }
  0x9b   : > { %p1832_p9 = scmp.ne.s32.totalorder %s2299_s21, %s1831_s0  ;;  %s1836_s28 = sshll.u32 %s2016_s26, 4  ;;  %s1837_s28 = int_to_ptr.vmem [resolvable:$false] %s1836_s28 }
  0x9c   : > { %s1838_s24 = scalar_lea.vmem %s1837_s28, 2048  ;;  %p1839_p3 = scmp.lt.s32.totalorder %s2299_s21, %s1837_s28 }
  0x9d   : > { %p1834_p1 = pnand %p1832_p9, %p2154_p11  ;;  %p1840_p4 = scmp.lt.s32.totalorder %s1838_s24, %s1831_s0 }
  0x9f   : > { %p1835_p2 = pneg %p1834_p1  ;;  %p1841_p5 = por %p1840_p4, %p1839_p3 }
  0xa1   : > { %p1842_p6 = pnand %p1841_p5, %p1835_p2 }
  0xa3   : > { %1845 = shalt.err (!%p1842_p6)
}
  0xa4   : > { %1644 = dma.hbm_to_vmem [thread:$0]  (!%p2131_p8), %s2297_s12, 1024, %s2299_s21, %s402_s17, %s2012_s2, %s2012_s2, %s2013_s18  }
  0xa5   : > { %s450_s27 = scalar_lea.vmem [#allocation6], %s2129_s13  ;;  %s2336_s25 = scalar_lea.hbm %s2588_s6, %s2139_s16 }
  0xa6   : > { %s457_s19 = sshll.u32 %s450_s27, 4  ;;  %s1846_s0 = scalar_lea.hbm %s2305_s5, 16  ;;  %s458_s19 = int_to_ptr.vmem [resolvable:$true] %s457_s19 }
  0xa7   : > { %p1847_p10 = scmp.ne.s32.totalorder %s2305_s5, %s1846_s0  ;;  %s1851_s24 = scalar_lea.hbm %s2586_s4, 48 }
  0xa8   : > { %p1852_p0 = scmp.lt.s32.totalorder %s2305_s5, %s2586_s4  ;;  %p1853_p7 = scmp.lt.s32.totalorder %s1851_s24, %s1846_s0 }
  0xa9   : > { %p1849_p12 = pnand %p1847_p10, %p2154_p11 }
  0xaa   : > { %p1854_p9 = por %p1853_p7, %p1852_p0 }
  0xab   : > { %p1850_p13 = pneg %p1849_p12 }
  0xad   : > { %p1855_p1 = pnand %p1854_p9, %p1850_p13 }
  0xaf   : > { %1858 = shalt.err (!%p1855_p1)
}
  0xb0   : > { %s1859_s2 = scalar_lea.vmem %s458_s19, 16  ;;  %s2017_s18 = smov [#allocation6]  }
  0xb1   : > { %p1860_p2 = scmp.ne.s32.totalorder %s458_s19, %s1859_s2  ;;  %s1864_s12 = sshll.u32 %s2017_s18, 4  ;;  %s1865_s12 = int_to_ptr.vmem [resolvable:$false] %s1864_s12 }
  0xb2   : > { %s1866_s21 = scalar_lea.vmem %s1865_s12, 32  ;;  %p1867_p5 = scmp.lt.s32.totalorder %s458_s19, %s1865_s12 }
  0xb3   : > { %p1862_p3 = pnand %p1860_p2, %p2154_p11  ;;  %p1868_p6 = scmp.lt.s32.totalorder %s1866_s21, %s1859_s2 }
  0xb5   : > { %p1863_p4 = pneg %p1862_p3  ;;  %p1869_p10 = por %p1868_p6, %p1867_p5 }
  0xb7   : > { %p1870_p12 = pnand %p1869_p10, %p1863_p4 }
  0xb9   : > { %1873 = shalt.err (!%p1870_p12)
}
  0xba   : > { %s2624_s1 = scalar_lea.sflag [#allocation5], %s2136_s15  ;;  %s488_s20 = scalar_lea.vmem [#allocation9], %s2129_s13 }
  0xbb   : > { %1650 = dma.hbm_to_vmem [thread:$0]  (!%p2131_p8), %s2305_s5, 16, %s458_s19, %s2624_s1  }
  0xbc   : > { %s495_s17 = sshll.u32 %s488_s20, 4  ;;  %s2361_s3 = scalar_lea.hbm %s2590_s8, %s2139_s16  ;;  %s496_s17 = int_to_ptr.vmem [resolvable:$true] %s495_s17 }
  0xbd   : > { %s1874_s0 = scalar_lea.hbm %s2336_s25, 16  ;;  %s1879_s24 = scalar_lea.hbm %s2588_s6, 48 }
  0xbe   : > { %p1875_p13 = scmp.ne.s32.totalorder %s2336_s25, %s1874_s0  ;;  %p1880_p9 = scmp.lt.s32.totalorder %s2336_s25, %s2588_s6 }
  0xbf   : > { %p1881_p1 = scmp.lt.s32.totalorder %s1879_s24, %s1874_s0 }
  0xc0   : > { %p1877_p0 = pnand %p1875_p13, %p2154_p11 }
  0xc1   : > { %p1882_p2 = por %p1881_p1, %p1880_p9 }
  0xc2   : > { %p1878_p7 = pneg %p1877_p0 }
  0xc4   : > { %p1883_p3 = pnand %p1882_p2, %p1878_p7 }
  0xc6   : > { %1886 = shalt.err (!%p1883_p3)
}
  0xc7   : > { %s1887_s5 = scalar_lea.vmem %s496_s17, 16  ;;  %s2018_s19 = smov [#allocation9]  }
  0xc8   : > { %p1888_p4 = scmp.ne.s32.totalorder %s496_s17, %s1887_s5  ;;  %s1892_s12 = sshll.u32 %s2018_s19, 4  ;;  %s1893_s12 = int_to_ptr.vmem [resolvable:$false] %s1892_s12 }
  0xc9   : > { %s1894_s21 = scalar_lea.vmem %s1893_s12, 32  ;;  %p1895_p10 = scmp.lt.s32.totalorder %s496_s17, %s1893_s12 }
  0xca   : > { %p1890_p5 = pnand %p1888_p4, %p2154_p11  ;;  %p1896_p12 = scmp.lt.s32.totalorder %s1894_s21, %s1887_s5 }
  0xcc   : > { %p1891_p6 = pneg %p1890_p5  ;;  %p1897_p13 = por %p1896_p12, %p1895_p10 }
  0xce   : > { %p1898_p0 = pnand %p1897_p13, %p1891_p6 }
  0xd0   : > { %1901 = shalt.err (!%p1898_p0)
}
  0xd1   : > { %s2625_s1 = scalar_lea.sflag [#allocation8], %s2136_s15  ;;  %s526_s20 = scalar_lea.vmem [#allocation12], %s2129_s13 }
  0xd2   : > { %1656 = dma.hbm_to_vmem [thread:$0]  (!%p2131_p8), %s2336_s25, 16, %s496_s17, %s2625_s1  }
  0xd3   : > { %s533_s27 = sshll.u32 %s526_s20, 4  ;;  %s2386_s26 = scalar_lea.hbm %s2592_s10, %s2139_s16  ;;  %s534_s27 = int_to_ptr.vmem [resolvable:$true] %s533_s27 }
  0xd4   : > { %s1902_s28 = scalar_lea.hbm %s2361_s3, 16  ;;  %s1907_s18 = scalar_lea.hbm %s2590_s8, 48 }
  0xd5   : > { %p1903_p7 = scmp.ne.s32.totalorder %s2361_s3, %s1902_s28  ;;  %p1908_p2 = scmp.lt.s32.totalorder %s2361_s3, %s2590_s8 }
  0xd6   : > { %p1909_p3 = scmp.lt.s32.totalorder %s1907_s18, %s1902_s28 }
  0xd7   : > { %p1905_p9 = pnand %p1903_p7, %p2154_p11 }
  0xd8   : > { %p1910_p4 = por %p1909_p3, %p1908_p2 }
  0xd9   : > { %p1906_p1 = pneg %p1905_p9 }
  0xdb   : > { %p1911_p5 = pnand %p1910_p4, %p1906_p1 }
  0xdd   : > { %1914 = shalt.err (!%p1911_p5)
}
  0xde   : > { %s1915_s25 = scalar_lea.vmem %s534_s27, 16  ;;  %s2019_s16 = smov [#allocation12]  }
  0xdf   : > { %p1916_p6 = scmp.ne.s32.totalorder %s534_s27, %s1915_s25  ;;  %s1920_s17 = sshll.u32 %s2019_s16, 4  ;;  %s1921_s17 = int_to_ptr.vmem [resolvable:$false] %s1920_s17 }
  0xe0   : > { %s1922_s12 = scalar_lea.vmem %s1921_s17, 32  ;;  %p1923_p13 = scmp.lt.s32.totalorder %s534_s27, %s1921_s17 }
  0xe1   : > { %p1918_p10 = pnand %p1916_p6, %p2154_p11  ;;  %p1924_p0 = scmp.lt.s32.totalorder %s1922_s12, %s1915_s25 }
  0xe3   : > { %p1919_p12 = pneg %p1918_p10  ;;  %p1925_p7 = por %p1924_p0, %p1923_p13 }
  0xe5   : > { %p1926_p9 = pnand %p1925_p7, %p1919_p12 }
  0xe7   : > { %1929 = shalt.err (!%p1926_p9)
}
  0xe8   : > { %s2626_s21 = scalar_lea.sflag [#allocation11], %s2136_s15  ;;  %s564_s1 = scalar_lea.vmem [#allocation15], %s2129_s13 }
  0xe9   : > { %1662 = dma.hbm_to_vmem [thread:$0]  (!%p2131_p8), %s2361_s3, 16, %s534_s27, %s2626_s21  }
  0xea   : > { %s571_s20 = sshll.u32 %s564_s1, 4  ;;  %s1930_s23 = scalar_lea.hbm %s2386_s26, 16  ;;  %s572_s20 = int_to_ptr.vmem [resolvable:$true] %s571_s20 }
  0xeb   : > { %p1931_p1 = scmp.ne.s32.totalorder %s2386_s26, %s1930_s23  ;;  %s1935_s24 = scalar_lea.hbm %s2592_s10, 48 }
  0xec   : > { %p1936_p4 = scmp.lt.s32.totalorder %s2386_s26, %s2592_s10  ;;  %p1937_p5 = scmp.lt.s32.totalorder %s1935_s24, %s1930_s23 }
  0xed   : > { %p1933_p2 = pnand %p1931_p1, %p2154_p11 }
  0xee   : > { %p1938_p6 = por %p1937_p5, %p1936_p4 }
  0xef   : > { %p1934_p3 = pneg %p1933_p2 }
  0xf1   : > { %p1939_p10 = pnand %p1938_p6, %p1934_p3 }
  0xf3   : > { %1942 = shalt.err (!%p1939_p10)
}
  0xf4   : > { %s1943_s13 = scalar_lea.vmem %s572_s20, 16  ;;  %s2020_s3 = smov [#allocation15]  }
  0xf5   : > { %p1944_p12 = scmp.ne.s32.totalorder %s572_s20, %s1943_s13  ;;  %s1948_s27 = sshll.u32 %s2020_s3, 4  ;;  %s1949_s27 = int_to_ptr.vmem [resolvable:$false] %s1948_s27 }
  0xf6   : > { %s1950_s5 = scalar_lea.vmem %s1949_s27, 32  ;;  %p1951_p7 = scmp.lt.s32.totalorder %s572_s20, %s1949_s27 }
  0xf7   : > { %p1946_p13 = pnand %p1944_p12, %p2154_p11  ;;  %p1952_p9 = scmp.lt.s32.totalorder %s1950_s5, %s1943_s13 }
  0xf9   : > { %p1947_p0 = pneg %p1946_p13  ;;  %p1953_p1 = por %p1952_p9, %p1951_p7 }
  0xfb   : > { %p1954_p2 = pnand %p1953_p1, %p1947_p0 }
  0xfd   : > { %1957 = shalt.err (!%p1954_p2)
}
  0xfe   : > { %s2627_s19 = scalar_lea.sflag [#allocation14], %s2136_s15  ;;  %p2628_p3 = scmp.ne.s32.totalorder %s2620_s11, 0 }
  0xff   : > { %1668 = dma.hbm_to_vmem [thread:$0]  (!%p2131_p8), %s2386_s26, 16, %s572_s20, %s2627_s19  }
 0x100   : > { %580 = sbr.rel (%p2628_p3) target bundleno = 1280 (0x500), region = 64  ;;  %s2428_s29 = sand.u32 (!%p2628_p3), 1, %s2000_s22  }
 0x101   : > { %s1493_s25 = sshll.u32 (!%p2628_p3), %s2428_s29, 6  ;;  %s583_s16 = scalar_lea.sflag (!%p2628_p3), [#allocation3], %s2428_s29 }
 0x102   : > { %s2432_s17 = scalar_lea.vmem (!%p2628_p3), [#allocation2], %s1493_s25  ;;  %p2629_p11 = scmp.ne.s32.totalorder (!%p2628_p3), %s2614_s30, 0 }
 0x105   : > { %1975 = dma.done.wait (%p2629_p11), %s583_s16, 1024  }
 0x106   : > { %1977 = vsyncadd (%p2629_p11), %s583_s16, 4294966272  ;;  %s2630_s14 = sld [smem:[#allocation22_spill]]  ;;  %s594_s26 = scalar_lea.vmem [#allocation4], %s2428_s29 }
 0x10c   : > { %s591_s15 = sand.u32 1, %s2630_s14  }
 0x10d   : > { %s592_s11 = scalar_lea.sflag [#allocation5], %s591_s15 }
 0x10e   : > { %1979 = dma.done.wait (%p2629_p11), %s592_s11, 32  }
 0x10f   : > { %1981 = vsyncadd (%p2629_p11), %s592_s11, 4294967264  ;;  %s1494_s12 = sshll.u32 %s2428_s29, 5  ;;  %s602_s21 = scalar_lea.vmem [#allocation6], %s2428_s29 }
 0x110   : > { %s608_s1 = scalar_lea.sflag [#allocation8], %s591_s15  ;;  %s2446_s20 = scalar_lea.vmem [#allocation7], %s1494_s12 }
 0x111   : > { %1983 = dma.done.wait (%p2629_p11), %s608_s1, 528  }
 0x112   : > { %1985 = vsyncadd (%p2629_p11), %s608_s1, 4294966768  ;;  %s619_s23 = scalar_lea.vmem [#allocation9], %s2428_s29  ;;  %s625_s0 = scalar_lea.sflag [#allocation11], %s591_s15 }
 0x113   : > { %s2453_s28 = scalar_lea.vmem [#allocation10], %s1494_s12 }
 0x114   : > { %1987 = dma.done.wait (%p2629_p11), %s625_s0, 528  }
 0x115   : > { %1989 = vsyncadd (%p2629_p11), %s625_s0, 4294966768  ;;  %s636_s24 = scalar_lea.vmem [#allocation12], %s2428_s29  ;;  %s642_s2 = scalar_lea.sflag [#allocation14], %s591_s15 }
 0x116   : > { %s2460_s18 = scalar_lea.vmem [#allocation13], %s1494_s12 }
 0x117   : > { %1991 = dma.done.wait (%p2629_p11), %s642_s2, 528  }
 0x118   : > { %1993 = vsyncadd (%p2629_p11), %s642_s2, 4294966768  ;;  %p741_p8 = scmp.lt.s32.totalorder %s2630_s14, 2  ;;  %v2021_v0 = vmov 0.0   ;;  %vm2022_vm0 = vmmov 0   ;;  %v766_v1 = vld [vmem:[%s2432_s17 + $0x38] sm:$0xff]  ;;  %v765_v2 = vld [vmem:[%s2432_s17 + $0x30] sm:$0xff] }
 0x119   : > { %1552 = vmatprep.subr.mxu0 %v2021_v0  ;;  %1568 = vmatprep.mubr.msk.f32.mxu0 %vm2022_vm0, %v2021_v0  ;;  %s2631_s27 = sld [smem:[#allocation28_spill]]  ;;  %v764_v3 = vld [vmem:[%s2432_s17 + $0x28] sm:$0xff]  ;;  %v763_v6 = vld [vmem:[%s2432_s17 + $0x20] sm:$0xff]  ;;  %v762_v8 = vld [vmem:[%s2432_s17 + $0x18] sm:$0xff]  ;;  %vm774_vm1 = vcmask 523264   ;;  %vm949_vm2 = vcmask 261120  }
 0x11a   : > { %s2641_s14 = smov (!%p741_p8, %s2630_s14), 2  ;;  %1571 = vmatprep.subr.mxu1 %v2021_v0  ;;  %1587 = vmatprep.mubr.msk.f32.mxu1 %vm2022_vm0, %v2021_v0  ;;  %v761_v10 = vld [vmem:[%s2432_s17 + $0x10] sm:$0xff]  ;;  %v760_v12 = vld [vmem:[%s2432_s17 + $0x8] sm:$0xff]  ;;  %v759_v13 = vld [vmem:[%s2432_s17] sm:$0xff]  ;;  %vm1023_vm3 = vcmask 254976  }
 0x11b   : > { %s1518_s30 = sshll.u32 %s2641_s14, 6  ;;  %1553 = vmatpush3.msra.mxu0 %v766_v1  ;;  %s2491_s19 = sshll.u32 %s2641_s14, 1  ;;  %v941_v18 = vld [vmem:[%s2446_s20 + $0x18] sm:$0xff]  ;;  %v940_v24 = vld [vmem:[%s2446_s20 + $0x10] sm:$0xff]  ;;  %v939_v25 = vld [vmem:[%s2446_s20 + $0x8] sm:$0xff] }
 0x11c   : > { %1554 = vmatprep.subr.mxu0 %v2021_v0  ;;  %s2632_s14 = sld [smem:[#allocation25_spill]]  ;;  %v1502_v19 = vld [vmem:[%s594_s26] ss:$0 sm:$0xff]  ;;  %v938_v26 = vld [vmem:[%s2446_s20] sm:$0xff]  ;;  %v1027_v28 = vld [vmem:[%s2453_s28 + $0x10] sm:$0xff] }
 0x11d   : > { %1555 = vmatpush3.msra.mxu0 %v765_v2  ;;  %v1028_v27 = vld [vmem:[%s2453_s28 + $0x18] sm:$0xff]  ;;  %v1026_v34 = vld [vmem:[%s2453_s28 + $0x8] sm:$0xff]  ;;  %v1025_v35 = vld [vmem:[%s2453_s28] sm:$0xff]  ;;  %s2633_s26 = sld [smem:[#allocation30_spill]] }
 0x11e   : > { %1556 = vmatprep.subr.mxu0 %v2021_v0  ;;  %v1504_v29 = vld [vmem:[%s602_s21] ss:$0 sm:$0xff]  ;;  %v1112_v41 = vld [vmem:[%s2460_s18 + $0x10] sm:$0xff]  ;;  %v1111_v42 = vld [vmem:[%s2460_s18 + $0x8] sm:$0xff]  ;;  %s653_s21 = scalar_lea.vmem [#allocation15], %s2428_s29 }
 0x11f   : > { %s2479_s5 = scalar_lea.vmem %s2631_s27, %s1518_s30  ;;  %1557 = vmatpush3.msra.mxu0 %v764_v3  ;;  %v1113_v36 = vld [vmem:[%s2460_s18 + $0x18] sm:$0xff]  ;;  %v1110_v43 = vld [vmem:[%s2460_s18] sm:$0xff] }
 0x120   : > { %v856_v4 = vld [vmem:[%s2479_s5 + $0x38] sm:$0xff]  ;;  %v855_v5 = vld [vmem:[%s2479_s5 + $0x30] sm:$0xff]  ;;  %v854_v7 = vld [vmem:[%s2479_s5 + $0x28] sm:$0xff]  ;;  %1558 = vmatprep.subr.mxu0 %v2021_v0 }
 0x121   : > { %1572 = vmatpush3.msra.mxu1 %v856_v4  ;;  %1559 = vmatpush3.msra.mxu0 %v763_v6  ;;  %v853_v9 = vld [vmem:[%s2479_s5 + $0x20] sm:$0xff]  ;;  %v852_v11 = vld [vmem:[%s2479_s5 + $0x18] sm:$0xff]  ;;  %v851_v15 = vld [vmem:[%s2479_s5 + $0x10] sm:$0xff] }
 0x122   : > { %1573 = vmatprep.subr.mxu1 %v2021_v0  ;;  %1560 = vmatprep.subr.mxu0 %v2021_v0  ;;  %s744_s15 = scalar_lea.vmem %s2632_s14, %s2491_s19  ;;  %v850_v16 = vld [vmem:[%s2479_s5 + $0x8] sm:$0xff]  ;;  %v849_v17 = vld [vmem:[%s2479_s5] sm:$0xff] }
 0x123   : > { %1574 = vmatpush3.msra.mxu1 %v855_v5  ;;  %1561 = vmatpush3.msra.mxu0 %v762_v8  ;;  %v758_v14 = vld [vmem:[%s744_s15] sm:$0x3]  ;;  %s753_s12 = scalar_lea.vmem %s2633_s26, %s2491_s19 }
 0x124   : > { %1575 = vmatprep.subr.mxu1 %v2021_v0  ;;  %1562 = vmatprep.subr.mxu0 %v2021_v0  ;;  %v1506_v37 = vld [vmem:[%s619_s23] ss:$0 sm:$0xff]  ;;  %s2634_s23 = sld [smem:[#allocation31_spill]] }
 0x125   : > { %1576 = vmatpush3.msra.mxu1 %v854_v7  ;;  %1563 = vmatpush3.msra.mxu0 %v761_v10  ;;  %v1508_v44 = vld [vmem:[%s636_s24] ss:$0 sm:$0xff] }
 0x126   : > { %1577 = vmatprep.subr.mxu1 %v2021_v0  ;;  %1564 = vmatprep.subr.mxu0 %v2021_v0  ;;  %v1510_v49 = vld [vmem:[%s653_s21] ss:$0 sm:$0xff] }
 0x127   : > { %1578 = vmatpush3.msra.mxu1 %v853_v9  ;;  %1565 = vmatpush3.msra.mxu0 %v760_v12 }
 0x128   : > { %1579 = vmatprep.subr.mxu1 %v2021_v0  ;;  %1566 = vmatprep.subr.mxu0 %v2021_v0 }
 0x129   : > { %1580 = vmatpush3.msra.mxu1 %v852_v11  ;;  %1567 = vmatpush3.msra.mxu0 %v759_v13 }
 0x12a   : > { %1581 = vmatprep.subr.mxu1 %v2021_v0  ;;  %1569 = vmatmul.mubr.msk.f32.vlgmr.msra.gmra.mxu0 %vm774_vm1, %v758_v14  ;;  %s757_s0 = scalar_lea.vmem %s2634_s23, %s2491_s19 }
 0x12b   : > { %1590 = vmatprep.subr.mxu0 %v2021_v0  ;;  %1598 = vmatprep.mubr.msk.f32.mxu0 %vm2022_vm0, %v2021_v0 }
 0x12c   : > { %1582 = vmatpush3.msra.mxu1 %v851_v15  ;;  %1591 = vmatpush3.msra.mxu0 %v941_v18 }
 0x12d   : > { %1583 = vmatprep.subr.mxu1 %v2021_v0  ;;  %1592 = vmatprep.subr.mxu0 %v2021_v0 }
 0x12e   : > { %1584 = vmatpush3.msra.mxu1 %v850_v16  ;;  %1593 = vmatpush3.msra.mxu0 %v940_v24 }
 0x12f   : > { %1585 = vmatprep.subr.mxu1 %v2021_v0  ;;  %1594 = vmatprep.subr.mxu0 %v2021_v0 }
 0x130   : > { %1586 = vmatpush3.msra.mxu1 %v849_v17  ;;  %1595 = vmatpush3.msra.mxu0 %v939_v25 }
 0x131   : > { %1601 = vmatprep.subr.mxu1 %v2021_v0  ;;  %1596 = vmatprep.subr.mxu0 %v2021_v0 }
 0x132   : > { %1597 = vmatpush3.msra.mxu0 %v938_v26 }
 0x133   : > { %1612 = vmatprep.subr.mxu0 %v2021_v0 }
 0x1ea   : > { %v844_v20 = vpop.f32.mrf.mxu0 }
 0x1eb   : > { %v845_v21 = vadd.f32 %v1502_v19, %v844_v20 }
 0x1ec   : > { %v1570_v22 = vpop.f32.mrf.mxu0 }
 0x1ed   : > { %v848_v23 = vmax.f32 %v845_v21, 0.0 }
 0x1ef   : > { %1588 = vmatmul.mubr.msk.f32.vlgmr.msra.gmra.mxu1 %vm774_vm1, %v848_v23 }
 0x1f0   : > { %1609 = vmatprep.mubr.msk.f32.mxu1 %vm2022_vm0, %v2021_v0  ;;  %1602 = vmatpush3.msra.mxu1 %v1028_v27 }
 0x1f1   : > { %1603 = vmatprep.subr.mxu1 %v2021_v0 }
 0x1f2   : > { %1604 = vmatpush3.msra.mxu1 %v1027_v28 }
 0x1f3   : > { %1605 = vmatprep.subr.mxu1 %v2021_v0 }
 0x1f4   : > { %1606 = vmatpush3.msra.mxu1 %v1026_v34 }
 0x1f5   : > { %1607 = vmatprep.subr.mxu1 %v2021_v0 }
 0x1f6   : > { %1608 = vmatpush3.msra.mxu1 %v1025_v35 }
 0x2af   : > { %v933_v30 = vpop.f32.mrf.mxu1 }
 0x2b0   : > { %v934_v31 = vadd.f32 %v1504_v29, %v933_v30 }
 0x2b1   : > { %v1589_v32 = vpop.f32.mrf.mxu1 }
 0x2b2   : > { %v937_v33 = vmax.f32 %v934_v31, 0.0 }
 0x2b4   : > { %1599 = vmatmul.mubr.msk.f32.vlgmr.msra.gmra.mxu0 %vm949_vm2, %v937_v33 }
 0x2b5   : > { %1620 = vmatprep.mubr.msk.f32.mxu0 %vm2022_vm0, %v2021_v0  ;;  %1613 = vmatpush3.msra.mxu0 %v1113_v36 }
 0x2b6   : > { %1614 = vmatprep.subr.mxu0 %v2021_v0 }
 0x2b7   : > { %1615 = vmatpush3.msra.mxu0 %v1112_v41 }
 0x2b8   : > { %1616 = vmatprep.subr.mxu0 %v2021_v0 }
 0x2b9   : > { %1617 = vmatpush3.msra.mxu0 %v1111_v42 }
 0x2ba   : > { %1618 = vmatprep.subr.mxu0 %v2021_v0 }
 0x2bb   : > { %1619 = vmatpush3.msra.mxu0 %v1110_v43 }
 0x374   : > { %v1019_v38 = vpop.f32.mrf.mxu0 }
 0x375   : > { %v1020_v39 = vadd.f32 %v1506_v37, %v1019_v38 }
 0x376   : > { %v1600_v40 = vpop.f32.mrf.mxu0 }
 0x377   : > { %1024 = vst.msk [vmem:[%s753_s12] sm:$0x3] %vm1023_vm3, %v1020_v39  ;;  %1610 = vmatmul.mubr.msk.f32.vlgmr.msra.gmra.mxu1 %vm949_vm2, %v1020_v39 }
 0x437   : > { %v1105_v45 = vpop.f32.mrf.mxu1 }
 0x438   : > { %v1106_v46 = vadd.f32 %v1508_v44, %v1105_v45 }
 0x439   : > { %v1611_v47 = vpop.f32.mrf.mxu1 }
 0x43a   : > { %v1109_v48 = vmax.f32 %v1106_v46, 0.0 }
 0x43c   : > { %1621 = vmatmul.mubr.msk.f32.vlgmr.msra.gmra.mxu0 %vm949_vm2, %v1109_v48 }
 0x4fc   : > { %v1190_v50 = vpop.f32.mrf.mxu0 }
 0x4fd   : > { %v1191_v51 = vadd.f32 %v1510_v49, %v1190_v50 }
 0x4fe   : > { %v1622_v52 = vpop.f32.mrf.mxu0 }
 0x4ff   : > { %1194 = vst.msk [vmem:[%s757_s0] sm:$0x3] %vm1023_vm3, %v1191_v51 }
 0x500 PF: > { %s2635_s24 = sld [smem:[#allocation23_spill]]  ;;  %s2638_s21 = smov %s2000_s22 }
 0x501   : > { %s2636_s28 = sld [smem:[#allocation21_spill]] }
 0x502   : > { %s2637_s23 = sld [smem:[#allocation24_spill]] }
 0x506   : > { %p35_p4 = scmp.ge.s32.totalorder %s2635_s24, 5  }
 0x507   : > { %s2639_s22 = smov %s2636_s28 }
 0x508   :  { %37 = sbr.rel (!%p35_p4) target bundleno = 19 (0x13), region = 218 }
 0x50d   :  { %1228 = vsyncpa [#allocation3], 1 }
 0x50e   :  { %1230 = vsyncpa [#allocation3 + $0x1], 1 }
 0x50f   :  { %1231 = vsyncpa [#allocation5], 1 }
 0x510   :  { %1233 = vsyncpa [#allocation5 + $0x1], 1 }
 0x511   :  { %1234 = vsyncpa [#allocation8], 1 }
 0x512   :  { %1236 = vsyncpa [#allocation8 + $0x1], 1 }
 0x513   :  { %1237 = vsyncpa [#allocation11], 1 }
 0x514   :  { %1239 = vsyncpa [#allocation11 + $0x1], 1 }
 0x515   :  { %1240 = vsyncpa [#allocation14], 1 }
 0x516   :  { %1242 = vsyncpa [#allocation14 + $0x1], 1 }

// kernel: forward.3
= control target key start
LH: loop header
LB: loop body
LE: loop exit
PB: predicated region body
PF: predicated region fallthrough
CT: control target
= control target key end

     0   :  { %s7573_s0 = inlined_call_operand.vmem [shape: f32[3,2,32], index: 0, kind: input, shape index: {}]   ;;  %s7574_s1 = inlined_call_operand.hbm [shape: f32[2,16], index: 1, kind: input, shape index: {}]   ;;  %s7575_s2 = inlined_call_operand.vmem [shape: f32[96,32], index: 2, kind: input, shape index: {}]   ;;  %s7576_s3 = inlined_call_operand.hbm [shape: f32[1,32], index: 3, kind: input, shape index: {}]   ;;  %s7577_s4 = inlined_call_operand.hbm [shape: f32[32,32], index: 4, kind: input, shape index: {}]   ;;  %s7578_s5 = inlined_call_operand.hbm [shape: f32[1,32], index: 5, kind: input, shape index: {}]   ;;  %s7579_s6 = inlined_call_operand.hbm [shape: bf16[32,1024], index: 6, kind: input, shape index: {}]   ;;  %s7580_s7 = inlined_call_operand.hbm [shape: f32[1,1024], index: 7, kind: input, shape index: {}]   ;;  %s7581_s8 = inlined_call_operand.hbm [shape: bf16[1024,1024], index: 8, kind: input, shape index: {}]   ;;  %s7582_s9 = inlined_call_operand.hbm [shape: f32[1,1024], index: 9, kind: input, shape index: {}]   ;;  %s7583_s10 = inlined_call_operand.vmem [shape: bf16[1024,32], index: 10, kind: input, shape index: {}]   ;;  %s7584_s11 = inlined_call_operand.hbm [shape: f32[1,32], index: 11, kind: input, shape index: {}]   ;;  %s7585_s12 = inlined_call_operand.hbm [shape: f32[16,512], index: 12, kind: input, shape index: {}]   ;;  %s7586_s13 = inlined_call_operand.hbm [shape: f32[1,512], index: 13, kind: input, shape index: {}]   ;;  %s7587_s14 = inlined_call_operand.vmem [shape: f32[512,4], index: 14, kind: input, shape index: {}]   ;;  %s7588_s15 = inlined_call_operand.hbm [shape: f32[1,4], index: 15, kind: input, shape index: {}]   ;;  %s7589_s16 = inlined_call_operand.vmem [shape: f32[2,128], index: 16, kind: output, shape index: {}]  }
   0x1   :  { %7591 = sst [smem:[#allocation28_spill]] %s7573_s0 }
   0x2   :  { %21 = vsyncpa [#allocation3], 0 }
   0x3   :  { %22 = vsyncpa [#allocation5], 0 }
   0x4   :  { %23 = vsyncpa [#allocation8], 0 }
   0x5   :  { %24 = vsyncpa [#allocation11], 0 }
   0x6   :  { %25 = vsyncpa [#allocation14], 0 }
   0x7   :  { %26 = vsyncpa [#allocation17], 0 }
   0x8   :  { %27 = vsyncpa [#allocation20], 0  ;;  %s6783_s21 = smov [#allocation4]   ;;  %s6784_s23 = smov [#allocation7]  }
   0x9   :  { %s48_s22 = sshll.u32 %s6783_s21, 4  ;;  %s70_s24 = sshll.u32 %s6784_s23, 4  ;;  %s49_s22 = int_to_ptr.vmem [resolvable:$true] %s48_s22  ;;  %s71_s24 = int_to_ptr.vmem [resolvable:$true] %s70_s24 }
   0xa   :  { %s6537_s25 = scalar_lea.vmem %s49_s22, 16  ;;  %s6541_s26 = scalar_lea.vmem %s49_s22, 32 }
   0xb   :  { %p6538_p0 = scmp.ne.s32.totalorder %s49_s22, %s6537_s25  ;;  %p6542_p1 = scmp.lt.s32.totalorder %s49_s22, %s49_s22 }
   0xc   :  { %p6543_p2 = scmp.lt.s32.totalorder %s6541_s26, %s6537_s25 }
   0xe   :  { %p6544_p3 = por %p6543_p2, %p6542_p1 }
  0x10   :  { %p6545_p4 = pnand %p6544_p3, %p6538_p0 }
  0x12   :  { %6548 = shalt.err (!%p6545_p4)
}
  0x13   :  { %51 = dma.hbm_to_vmem [thread:$0]  %s7576_s3, 16, %s49_s22, [#allocation5]  }
  0x14   :  { %s6557_s29 = scalar_lea.vmem %s71_s24, 16  ;;  %s6561_s30 = scalar_lea.vmem %s71_s24, 32 }
  0x15   :  { %p6558_p5 = scmp.ne.s32.totalorder %s71_s24, %s6557_s29  ;;  %p6562_p6 = scmp.lt.s32.totalorder %s71_s24, %s71_s24 }
  0x16   :  { %p6563_p7 = scmp.lt.s32.totalorder %s6561_s30, %s6557_s29 }
  0x18   :  { %p6564_p8 = por %p6563_p7, %p6562_p6 }
  0x1a   :  { %p6565_p9 = pnand %p6564_p8, %p6558_p5 }
  0x1c   :  { %6568 = shalt.err (!%p6565_p9)
}
  0x1d   :  { %73 = dma.hbm_to_vmem [thread:$0]  %s7578_s5, 16, %s71_s24, [#allocation8]  }
  0x1e   :  { %s6785_s18 = smov [#allocation10]   ;;  %s6786_s20 = smov [#allocation13]  }
  0x1f   :  { %s92_s19 = sshll.u32 %s6785_s18, 4  ;;  %s114_s21 = sshll.u32 %s6786_s20, 4  ;;  %s93_s19 = int_to_ptr.vmem [resolvable:$true] %s92_s19  ;;  %s115_s21 = int_to_ptr.vmem [resolvable:$true] %s114_s21 }
  0x20   :  { %s6577_s23 = scalar_lea.vmem %s93_s19, 128  ;;  %p6582_p11 = scmp.lt.s32.totalorder %s93_s19, %s93_s19 }
  0x21   :  { %p6578_p10 = scmp.ne.s32.totalorder %s93_s19, %s6577_s23  ;;  %p6583_p12 = scmp.lt.s32.totalorder %s6577_s23, %s6577_s23 }
  0x23   :  { %p6584_p13 = por %p6583_p12, %p6582_p11 }
  0x25   :  { %p6585_p0 = pnand %p6584_p13, %p6578_p10 }
  0x27   :  { %6588 = shalt.err (!%p6585_p0)
}
  0x28   :  { %95 = dma.hbm_to_vmem [thread:$0]  %s7580_s7, 128, %s93_s19, [#allocation11]  }
  0x29   :  { %s6597_s25 = scalar_lea.vmem %s115_s21, 128  ;;  %p6602_p2 = scmp.lt.s32.totalorder %s115_s21, %s115_s21 }
  0x2a   :  { %p6598_p1 = scmp.ne.s32.totalorder %s115_s21, %s6597_s25  ;;  %p6603_p3 = scmp.lt.s32.totalorder %s6597_s25, %s6597_s25 }
  0x2c   :  { %p6604_p4 = por %p6603_p3, %p6602_p2 }
  0x2e   :  { %p6605_p5 = pnand %p6604_p4, %p6598_p1 }
  0x30   :  { %6608 = shalt.err (!%p6605_p5)
}
  0x31   :  { %117 = dma.hbm_to_vmem [thread:$0]  %s7582_s9, 128, %s115_s21, [#allocation14]  }
  0x32   :  { %s6787_s26 = smov [#allocation16]   ;;  %s6788_s28 = smov [#allocation2]  }
  0x33   :  { %s135_s27 = sshll.u32 %s6787_s26, 4  ;;  %s36_s29 = sshll.u32 %s6788_s28, 4  ;;  %s136_s27 = int_to_ptr.vmem [resolvable:$true] %s135_s27  ;;  %s37_s29 = int_to_ptr.vmem [resolvable:$true] %s36_s29 }
  0x34   :  { %s6617_s30 = scalar_lea.vmem %s136_s27, 1024  ;;  %p6622_p7 = scmp.lt.s32.totalorder %s136_s27, %s136_s27 }
  0x35   :  { %p6618_p6 = scmp.ne.s32.totalorder %s136_s27, %s6617_s30  ;;  %p6623_p8 = scmp.lt.s32.totalorder %s6617_s30, %s6617_s30 }
  0x37   :  { %p6624_p9 = por %p6623_p8, %p6622_p7 }
  0x39   :  { %p6625_p10 = pnand %p6624_p9, %p6618_p6 }
  0x3b   :  { %6628 = shalt.err (!%p6625_p10)
}
  0x3c   :  { %s6789_s7 = smov 512   ;;  %s6790_s0 = smov 32  }
  0x3d   :  { %141 = dma.hbm_to_vmem [thread:$0]  %s7585_s12, 1024, %s136_s27, [#allocation17], %s6789_s7, %s6789_s7, %s6790_s0  }
  0x3e   :  { %s6637_s18 = scalar_lea.vmem %s37_s29, 32  ;;  %p6642_p12 = scmp.lt.s32.totalorder %s37_s29, %s37_s29 }
  0x3f   :  { %p6638_p11 = scmp.ne.s32.totalorder %s37_s29, %s6637_s18  ;;  %p6643_p13 = scmp.lt.s32.totalorder %s6637_s18, %s6637_s18 }
  0x41   :  { %p6644_p0 = por %p6643_p13, %p6642_p12 }
  0x43   :  { %p6645_p1 = pnand %p6644_p0, %p6638_p11 }
  0x45   :  { %6648 = shalt.err (!%p6645_p1)
}
  0x46   :  { %39 = dma.hbm_to_vmem [thread:$0]  %s7574_s1, 32, %s37_s29, [#allocation3]  }
  0x47   :  { %s6791_s21 = smov [#allocation6]  }
  0x48   :  { %s57_s23 = sshll.u32 %s6791_s21, 4  ;;  %s58_s23 = int_to_ptr.vmem [resolvable:$true] %s57_s23 }
  0x49   :  { %s6657_s3 = scalar_lea.vmem %s58_s23, 512  ;;  %p6662_p3 = scmp.lt.s32.totalorder %s58_s23, %s58_s23 }
  0x4a   :  { %p6658_p2 = scmp.ne.s32.totalorder %s58_s23, %s6657_s3  ;;  %p6663_p4 = scmp.lt.s32.totalorder %s6657_s3, %s6657_s3 }
  0x4c   :  { %p6664_p5 = por %p6663_p4, %p6662_p3 }
  0x4e   :  { %p6665_p6 = pnand %p6664_p5, %p6658_p2 }
  0x50   :  { %6668 = shalt.err (!%p6665_p6)
}
  0x51   :  { %s6792_s12 = smov 128   ;;  %s6793_s22 = smov 8  }
  0x52   :  { %63 = dma.hbm_to_vmem [thread:$0]  %s7577_s4, 512, %s58_s23, [#allocation5], %s6792_s12, %s6792_s12, %s6793_s22  }
  0x53   :  { %s6794_s24 = smov [#allocation9]   ;;  %s6795_s1 = smov [#allocation12]  }
  0x54   :  { %s79_s26 = sshll.u32 %s6794_s24, 4  ;;  %s101_s27 = sshll.u32 %s6795_s1, 4  ;;  %s80_s26 = int_to_ptr.vmem [resolvable:$true] %s79_s26  ;;  %s102_s27 = int_to_ptr.vmem [resolvable:$true] %s101_s27 }
  0x55   :  { %s6677_s28 = scalar_lea.vmem %s80_s26, 2048  ;;  %p6682_p8 = scmp.lt.s32.totalorder %s80_s26, %s80_s26 }
  0x56   :  { %p6678_p7 = scmp.ne.s32.totalorder %s80_s26, %s6677_s28  ;;  %p6683_p9 = scmp.lt.s32.totalorder %s6677_s28, %s6677_s28 }
  0x58   :  { %p6684_p10 = por %p6683_p9, %p6682_p8 }
  0x5a   :  { %p6685_p11 = pnand %p6684_p10, %p6678_p7 }
  0x5c   :  { %6688 = shalt.err (!%p6685_p11)
}
  0x5d   :  { %85 = dma.hbm_to_vmem [thread:$0]  %s7579_s6, 2048, %s80_s26, [#allocation8], %s6789_s7, %s6789_s7, %s6790_s0  }
  0x5e   :  { %s6697_s4 = scalar_lea.vmem %s102_s27, 65536  ;;  %p6702_p13 = scmp.lt.s32.totalorder %s102_s27, %s102_s27 }
  0x5f   :  { %p6698_p12 = scmp.ne.s32.totalorder %s102_s27, %s6697_s4  ;;  %p6703_p0 = scmp.lt.s32.totalorder %s6697_s4, %s6697_s4 }
  0x61   :  { %p6704_p1 = por %p6703_p0, %p6702_p13 }
  0x63   :  { %p6705_p2 = pnand %p6704_p1, %p6698_p12 }
  0x65   :  { %6708 = shalt.err (!%p6705_p2)
}
  0x66   :  { %107 = dma.hbm_to_vmem [thread:$0]  %s7581_s8, 65536, %s102_s27, [#allocation11], %s6789_s7, %s6789_s7, %s6790_s0  }
  0x67   :  { %s6796_s18 = smov [#allocation15]   ;;  %s6797_s20 = smov [#allocation18]  }
  0x68   :  { %s126_s19 = sshll.u32 %s6796_s18, 4  ;;  %s148_s6 = sshll.u32 %s6797_s20, 4  ;;  %s127_s19 = int_to_ptr.vmem [resolvable:$true] %s126_s19  ;;  %s149_s6 = int_to_ptr.vmem [resolvable:$true] %s148_s6 }
  0x69   :  { %s6717_s21 = scalar_lea.vmem %s127_s19, 16  ;;  %s6721_s23 = scalar_lea.vmem %s127_s19, 32 }
  0x6a   :  { %p6718_p3 = scmp.ne.s32.totalorder %s127_s19, %s6717_s21  ;;  %p6722_p4 = scmp.lt.s32.totalorder %s127_s19, %s127_s19 }
  0x6b   :  { %p6723_p5 = scmp.lt.s32.totalorder %s6721_s23, %s6717_s21 }
  0x6d   :  { %p6724_p6 = por %p6723_p5, %p6722_p4 }
  0x6f   :  { %p6725_p7 = pnand %p6724_p6, %p6718_p3 }
  0x71   :  { %6728 = shalt.err (!%p6725_p7)
}
  0x72   :  { %129 = dma.hbm_to_vmem [thread:$0]  %s7584_s11, 16, %s127_s19, [#allocation14]  }
  0x73   :  { %s6737_s22 = scalar_lea.vmem %s149_s6, 64  ;;  %p6742_p9 = scmp.lt.s32.totalorder %s149_s6, %s149_s6 }
  0x74   :  { %p6738_p8 = scmp.ne.s32.totalorder %s149_s6, %s6737_s22  ;;  %p6743_p10 = scmp.lt.s32.totalorder %s6737_s22, %s6737_s22 }
  0x76   :  { %p6744_p11 = por %p6743_p10, %p6742_p9 }
  0x78   :  { %p6745_p12 = pnand %p6744_p11, %p6738_p8 }
  0x7a   :  { %6748 = shalt.err (!%p6745_p12)
}
  0x7b   :  { %151 = dma.hbm_to_vmem [thread:$0]  %s7586_s13, 64, %s149_s6, [#allocation17]  }
  0x7c   :  { %s6798_s25 = smov [#allocation19]  }
  0x7d   :  { %s160_s5 = sshll.u32 %s6798_s25, 4  ;;  %s161_s5 = int_to_ptr.vmem [resolvable:$true] %s160_s5 }
  0x7e   :  { %s6757_s24 = scalar_lea.vmem %s161_s5, 16  ;;  %s6761_s26 = scalar_lea.vmem %s161_s5, 32 }
  0x7f   :  { %p6758_p13 = scmp.ne.s32.totalorder %s161_s5, %s6757_s24  ;;  %p6762_p0 = scmp.lt.s32.totalorder %s161_s5, %s161_s5 }
  0x80   :  { %p6763_p1 = scmp.lt.s32.totalorder %s6761_s26, %s6757_s24 }
  0x82   :  { %p6764_p2 = por %p6763_p1, %p6762_p0 }
  0x84   :  { %p6765_p3 = pnand %p6764_p2, %p6758_p13 }
  0x86   :  { %6768 = shalt.err (!%p6765_p3)
}
  0x87   :  { %163 = dma.hbm_to_vmem [thread:$0]  %s7588_s15, 16, %s161_s5, [#allocation20]  }
  0x88   :  { %6769 = dma.done.wait [#allocation3], 32  }
  0x89   :  { %6770 = vsyncadd [#allocation3], 4294967264 }
  0x8a   :  { %6771 = dma.done.wait [#allocation5], 528  }
  0x8b   :  { %6772 = vsyncadd [#allocation5], 4294966768 }
  0x8c   :  { %6773 = dma.done.wait [#allocation8], 2064  }
  0x8d   :  { %6774 = vsyncadd [#allocation8], 4294965232 }
  0x8e   :  { %6775 = dma.done.wait [#allocation11], 65664  }
  0x8f   :  { %6776 = vsyncadd [#allocation11], 4294901632 }
  0x90   :  { %6777 = dma.done.wait [#allocation14], 144  }
  0x91   :  { %6778 = vsyncadd [#allocation14], 4294967152 }
  0x92   :  { %6779 = dma.done.wait [#allocation17], 1088  }
  0x93   :  { %6780 = vsyncadd [#allocation17], 4294966208 }
  0x94   :  { %6781 = dma.done.wait [#allocation20], 16  }
  0x95   :  { %6782 = vsyncadd [#allocation20], 4294967280  ;;  %v6799_v0 = vmov 0.0   ;;  %vm6800_vm0 = vmmov 0   ;;  %s7592_s27 = sld [smem:[#allocation28_spill]]  ;;  %v229_v2 = vld [vmem:[%s7575_s2 + $0x58] sm:$0xff] }
  0x96   :  { %6401 = vmatprep.subr.mxu0 %v6799_v0  ;;  %6428 = vmatprep.subr.mxu1 %v6799_v0  ;;  %v228_v3 = vld [vmem:[%s7575_s2 + $0x50] sm:$0xff]  ;;  %v227_v5 = vld [vmem:[%s7575_s2 + $0x48] sm:$0xff]  ;;  %v226_v6 = vld [vmem:[%s7575_s2 + $0x40] sm:$0xff]  ;;  %s6801_s21 = smov 64   ;;  %vm214_vm1 = vcmask 261120   ;;  %vm216_vm2 = vcmask 523264  }
  0x97   :  { %6425 = vmatprep.mubr.msk.f32.mxu0 %vm6800_vm0, %v6799_v0  ;;  %6436 = vmatprep.mubr.msk.f32.mxu1 %vm6800_vm0, %v6799_v0  ;;  %v225_v7 = vld [vmem:[%s7575_s2 + $0x38] sm:$0xff]  ;;  %v224_v9 = vld [vmem:[%s7575_s2 + $0x30] sm:$0xff]  ;;  %v223_v10 = vld [vmem:[%s7575_s2 + $0x28] sm:$0xff]  ;;  %vm237_vm3 = vcmask 785408   ;;  %v6802_v49 = vmov 0   ;;  %s6803_s28 = smov 112  }
  0x98   :  { %6402 = vmatpush3.msra.mxu0 %v229_v2  ;;  %v315_v8 = vld [vmem:[#allocation6 + $0x18] sm:$0xff]  ;;  %v220_v13 = vld [vmem:[%s7575_s2 + $0x10] sm:$0xff]  ;;  %v219_v14 = vld [vmem:[%s7575_s2 + $0x8] sm:$0xff]  ;;  %vm5237_vm5 = vcmask 130048   ;;  %vm5604_vm6 = vcmask 293888  }
  0x99   :  { %6403 = vmatprep.subr.mxu0 %v6799_v0  ;;  %6429 = vmatpush3.msra.mxu1 %v315_v8  ;;  %v222_v11 = vld [vmem:[%s7575_s2 + $0x20] sm:$0xff]  ;;  %v221_v12 = vld [vmem:[%s7575_s2 + $0x18] sm:$0xff]  ;;  %v313_v22 = vld [vmem:[#allocation6 + $0x8] sm:$0xff] }
  0x9a   :  { %6404 = vmatpush3.msra.mxu0 %v228_v3  ;;  %6430 = vmatprep.subr.mxu1 %v6799_v0  ;;  %v218_v15 = vld [vmem:[%s7575_s2] sm:$0xff]  ;;  %v314_v21 = vld [vmem:[#allocation6 + $0x10] sm:$0xff] }
  0x9b   :  { %v5618_v1 = vld [vmem:[%s7592_s27 + $0x2] sm:$0x3]  ;;  %v5619_v4 = vld [vmem:[%s7592_s27 + $0x4] sm:$0x3]  ;;  %6405 = vmatprep.subr.mxu0 %v6799_v0  ;;  %v201_v17 = vld [vmem:[%s7592_s27] sm:$0x3]  ;;  %6431 = vmatpush3.msra.mxu1 %v314_v21 }
  0x9c   :  { %207 = vrot.lane.b32.xlu0 %v5618_v1, %s6790_s0  ;;  %6406 = vmatpush3.msra.mxu0 %v227_v5  ;;  %v312_v23 = vld [vmem:[#allocation6] sm:$0xff]  ;;  %v408_v28 = vld [vmem:[#allocation9 + $0x50] sm:$0xff]  ;;  %v5620_v32 = vld [vmem:[#allocation4] ss:$0 sm:$0xff] }
  0x9d   :  { %6407 = vmatprep.subr.mxu0 %v6799_v0  ;;  %6432 = vmatprep.subr.mxu1 %v6799_v0  ;;  %v406_v24 = vld [vmem:[#allocation9 + $0x40] sm:$0xff]  ;;  %v412_v29 = vld [vmem:[#allocation9 + $0x70] sm:$0xff]  ;;  %v407_v45 = vld [vmem:[#allocation9 + $0x48] sm:$0xff] }
  0x9e   :  { %6408 = vmatpush3.msra.mxu0 %v226_v6  ;;  %6433 = vmatpush3.msra.mxu1 %v313_v22  ;;  %v410_v25 = vld [vmem:[#allocation9 + $0x60] sm:$0xff]  ;;  %v5636_v30 = vcombine.low %v408_v28, %v412_v29  ;;  %v5637_v31 = vcombine.high %v408_v28, %v412_v29  ;;  %v400_v39 = vld [vmem:[#allocation9 + $0x10] sm:$0xff]  ;;  %v411_v46 = vld [vmem:[#allocation9 + $0x68] sm:$0xff] }
  0x9f   :  { %6409 = vmatprep.subr.mxu0 %v6799_v0  ;;  %6434 = vmatprep.subr.mxu1 %v6799_v0  ;;  %v5632_v26 = vcombine.low %v406_v24, %v410_v25  ;;  %v5633_v27 = vcombine.high %v406_v24, %v410_v25  ;;  %v398_v37 = vld [vmem:[#allocation9] sm:$0xff]  ;;  %v404_v41 = vld [vmem:[#allocation9 + $0x30] sm:$0xff]  ;;  %v5634_v47 = vcombine.low %v407_v45, %v411_v46  ;;  %v775_v50 = vld [vmem:[#allocation12 + $0x1c0] sm:$0xff] }
  0xa0   :  { %211 = vrot.lane.b32.xlu0 %v5619_v4, %s6801_s21  ;;  %6410 = vmatpush3.msra.mxu0 %v225_v7  ;;  %v402_v38 = vld [vmem:[#allocation9 + $0x20] sm:$0xff]  ;;  %v5628_v43 = vcombine.low %v400_v39, %v404_v41  ;;  %v5629_v44 = vcombine.high %v400_v39, %v404_v41  ;;  %v5635_v48 = vcombine.high %v407_v45, %v411_v46  ;;  %v779_v51 = vld [vmem:[#allocation12 + $0x1e0] sm:$0xff]  ;;  %v5622_v54 = vld [vmem:[#allocation7] ss:$0 sm:$0xff] }
  0xa1   :  { %6411 = vmatprep.subr.mxu0 %v6799_v0  ;;  %6435 = vmatpush3.msra.mxu1 %v312_v23  ;;  %v5625_v40 = vcombine.high %v398_v37, %v402_v38  ;;  %v5624_v42 = vcombine.low %v398_v37, %v402_v38  ;;  %v5700_v52 = vcombine.low %v775_v50, %v779_v51  ;;  %v399_v58 = vld [vmem:[#allocation9 + $0x8] sm:$0xff]  ;;  %v409_v2 = vld [vmem:[#allocation9 + $0x58] sm:$0xff] }
  0xa2   :  { %6412 = vmatpush3.msra.mxu0 %v224_v9  ;;  %551 = vmatprep.subr.bf16.mxu1 %v5633_v27  ;;  %v5701_v53 = vcombine.high %v775_v50, %v779_v51  ;;  %v403_v59 = vld [vmem:[#allocation9 + $0x28] sm:$0xff]  ;;  %v413_v3 = vld [vmem:[#allocation9 + $0x78] sm:$0xff] }
  0xa3   :  { %6413 = vmatprep.subr.mxu0 %v6799_v0  ;;  %v767_v61 = vld [vmem:[#allocation12 + $0x180] sm:$0xff]  ;;  %v5627_v1 = vcombine.high %v399_v58, %v403_v59  ;;  %v5626_v7 = vcombine.low %v399_v58, %v403_v59  ;;  %v5639_v8 = vcombine.high %v409_v2, %v413_v3 }
  0xa4   :  { %6414 = vmatpush3.msra.mxu0 %v223_v10  ;;  %v771_v62 = vld [vmem:[#allocation12 + $0x1a0] sm:$0xff]  ;;  %v401_v10 = vld [vmem:[#allocation9 + $0x18] sm:$0xff] }
  0xa5   :  { %6415 = vmatprep.subr.mxu0 %v6799_v0  ;;  %v5693_v4 = vcombine.high %v767_v61, %v771_v62  ;;  %v759_v5 = vld [vmem:[#allocation12 + $0x140] sm:$0xff]  ;;  %v5692_v9 = vcombine.low %v767_v61, %v771_v62 }
  0xa6   :  { %6416 = vmatpush3.msra.mxu0 %v222_v11  ;;  %v763_v6 = vld [vmem:[#allocation12 + $0x160] sm:$0xff]  ;;  %v405_v11 = vld [vmem:[#allocation9 + $0x38] sm:$0xff] }
  0xa7   :  { %6417 = vmatprep.subr.mxu0 %v6799_v0  ;;  %v743_v21 = vld [vmem:[#allocation12 + $0xc0] sm:$0xff]  ;;  %v5630_v23 = vcombine.low %v401_v10, %v405_v11 }
  0xa8   :  { %6418 = vmatpush3.msra.mxu0 %v221_v12  ;;  %v5685_v12 = vcombine.high %v759_v5, %v763_v6  ;;  %v747_v22 = vld [vmem:[#allocation12 + $0xe0] sm:$0xff] }
  0xa9   :  { %6419 = vmatprep.subr.mxu0 %v6799_v0  ;;  %v899_v27 = vld [vmem:[#allocation12 + $0x5a0] sm:$0xff]  ;;  %v5669_v28 = vcombine.high %v743_v21, %v747_v22 }
  0xaa   :  { %6420 = vmatpush3.msra.mxu0 %v220_v13  ;;  %v751_v13 = vld [vmem:[#allocation12 + $0x100] sm:$0xff] }
  0xab   :  { %6421 = vmatprep.subr.mxu0 %v6799_v0  ;;  %v735_v29 = vld [vmem:[#allocation12 + $0x80] sm:$0xff] }
  0xac   :  { %6422 = vmatpush3.msra.mxu0 %v219_v14  ;;  %v755_v14 = vld [vmem:[#allocation12 + $0x120] sm:$0xff] }
  0xad   :  { %6423 = vmatprep.subr.mxu0 %v6799_v0  ;;  %v5676_v25 = vcombine.low %v751_v13, %v755_v14  ;;  %v727_v37 = vld [vmem:[#allocation12 + $0x40] sm:$0xff] }
  0xae   :  { %6424 = vmatpush3.msra.mxu0 %v218_v15  ;;  %v5638_v15 = vcombine.low %v409_v2, %v413_v3  ;;  %v731_v38 = vld [vmem:[#allocation12 + $0x60] sm:$0xff] }
  0xaf   :  { %633 = vmatprep.subr.bf16.mxu0 %v5637_v31  ;;  %v719_v45 = vld [vmem:[#allocation12] sm:$0xff] }
  0xb0   :  { %v723_v46 = vld [vmem:[#allocation12 + $0x20] sm:$0xff] }
  0xb1   :  { %v871_v50 = vld [vmem:[#allocation12 + $0x4c0] sm:$0xff] }
  0xb2   :  { %v875_v51 = vld [vmem:[#allocation12 + $0x4e0] sm:$0xff] }
  0xb3   :  { %v863_v58 = vld [vmem:[#allocation12 + $0x480] sm:$0xff] }
  0xb4   :  { %v867_v59 = vld [vmem:[#allocation12 + $0x4a0] sm:$0xff] }
  0xb5   :  { %v831_v61 = vld [vmem:[#allocation12 + $0x380] sm:$0xff] }
  0xb6   :  { %v835_v62 = vld [vmem:[#allocation12 + $0x3a0] sm:$0xff] }
  0xb7   :  { %v855_v3 = vld [vmem:[#allocation12 + $0x440] sm:$0xff] }
 0x10e   :  { %v208_v16 = vpop.permute.xlu0 %207 }
 0x10f   :  { %v215_v18 = vsel %vm214_vm1, %v201_v17, %v208_v16  ;;  %v5631_v16 = vcombine.high %v401_v10, %v405_v11  ;;  %v5684_v17 = vcombine.low %v759_v5, %v763_v6  ;;  %v5757_v5 = vcombine.high %v831_v61, %v835_v62  ;;  %v823_v6 = vld [vmem:[#allocation12 + $0x340] sm:$0xff] }
 0x110   :  { %v5756_v10 = vcombine.low %v831_v61, %v835_v62  ;;  %v847_v11 = vld [vmem:[#allocation12 + $0x400] sm:$0xff] }
 0x111   :  { %v919_v62 = vld [vmem:[#allocation12 + $0x640] sm:$0xff] }
 0x112   :  { %v212_v19 = vpop.permute.xlu0 %211 }
 0x113   :  { %v217_v20 = vsel %vm216_vm2, %v215_v18, %v212_v19  ;;  %v903_v18 = vld [vmem:[#allocation12 + $0x5c0] sm:$0xff] }
 0x114   :  { %6426 = vmatmul.mubr.msk.f32.vlgmr.msra.gmra.mxu0 %vm237_vm3, %v217_v20  ;;  %v907_v19 = vld [vmem:[#allocation12 + $0x5e0] sm:$0xff]  ;;  %v5677_v20 = vcombine.high %v751_v13, %v755_v14 }
 0x115   :  { %634 = vmatpush1.bf16.msra.mxu0 %v5636_v30  ;;  %653 = vmatprep.mubr.bf16.mxu0 %v6802_v49  ;;  %v5829_v24 = vcombine.high %v903_v18, %v907_v19  ;;  %v739_v30 = vld [vmem:[#allocation12 + $0xa0] sm:$0xff]  ;;  %v5828_v31 = vcombine.low %v903_v18, %v907_v19 }
 0x116   :  { %635 = vmatprep.subr.bf16.mxu0 %v5629_v44  ;;  %v5660_v41 = vcombine.low %v735_v29, %v739_v30  ;;  %v5653_v44 = vcombine.high %v727_v37, %v731_v38  ;;  %v815_v14 = vld [vmem:[#allocation12 + $0x300] sm:$0xff] }
 0x117   :  { %v967_v19 = vld [vmem:[#allocation12 + $0x7c0] sm:$0xff] }
 0x119   :  { %636 = vmatpush1.bf16.msra.mxu0 %v5628_v43  ;;  %v883_v43 = vld [vmem:[#allocation12 + $0x520] sm:$0xff] }
 0x11a   :  { %3833 = vmatprep.subr.bf16.mxu0 %v5701_v53  ;;  %v839_v53 = vld [vmem:[#allocation12 + $0x3c0] sm:$0xff] }
 0x1d4   :  { %v307_v33 = vpop.f32.mrf.mxu0 }
 0x1d5   :  { %v308_v34 = vadd.f32 %v5620_v32, %v307_v33  ;;  %v5668_v33 = vcombine.low %v743_v21, %v747_v22  ;;  %v807_v22 = vld [vmem:[#allocation12 + $0x2c0] sm:$0xff] }
 0x1d6   :  { %v6427_v35 = vpop.f32.mrf.mxu0 }
 0x1d7   :  { %v311_v36 = vmax.f32 %v308_v34, 0.0  ;;  %v887_v34 = vld [vmem:[#allocation12 + $0x540] sm:$0xff] }
 0x1d8   :  { %v891_v35 = vld [vmem:[#allocation12 + $0x560] sm:$0xff] }
 0x1d9   :  { %6437 = vmatmul.mubr.msk.f32.vlgmr.msra.gmra.mxu1 %vm214_vm1, %v311_v36  ;;  %v5661_v36 = vcombine.high %v735_v29, %v739_v30  ;;  %v799_v30 = vld [vmem:[#allocation12 + $0x280] sm:$0xff] }
 0x1da   :  { %552 = vmatpush1.bf16.msra.mxu1 %v5632_v26  ;;  %571 = vmatprep.mubr.bf16.mxu1 %v6802_v49  ;;  %v895_v26 = vld [vmem:[#allocation12 + $0x580] sm:$0xff] }
 0x1db   :  { %553 = vmatprep.subr.bf16.mxu1 %v5625_v40  ;;  %v5821_v32 = vcombine.high %v895_v26, %v899_v27  ;;  %v5820_v39 = vcombine.low %v895_v26, %v899_v27  ;;  %v5813_v40 = vcombine.high %v887_v34, %v891_v35  ;;  %v959_v27 = vld [vmem:[#allocation12 + $0x780] sm:$0xff] }
 0x1de   :  { %554 = vmatpush1.bf16.msra.mxu1 %v5624_v42  ;;  %v879_v42 = vld [vmem:[#allocation12 + $0x500] sm:$0xff] }
 0x1df   :  { %592 = vmatprep.subr.bf16.mxu1 %v5635_v48  ;;  %v5805_v48 = vcombine.high %v879_v42, %v883_v43 }
 0x299   :  { %v392_v55 = vpop.f32.mrf.mxu1 }
 0x29a   :  { %v393_v56 = vadd.f32 %v5622_v54, %v392_v55  ;;  %v843_v54 = vld [vmem:[#allocation12 + $0x3e0] sm:$0xff]  ;;  %v5804_v55 = vcombine.low %v879_v42, %v883_v43 }
 0x29b   :  { %v6438_v57 = vpop.f32.mrf.mxu1  ;;  %v5764_v2 = vcombine.low %v839_v53, %v843_v54  ;;  %v947_v42 = vld [vmem:[#allocation12 + $0x720] sm:$0xff] }
 0x29c   :  { %v396_v60 = vmax.f32 %v393_v56, 0.0  ;;  %v5797_v56 = vcombine.high %v871_v50, %v875_v51  ;;  %v5644_v57 = vcombine.low %v719_v45, %v723_v46 }
 0x29e   :  { %v397_v63 = vpack.c.bf16 %v396_v60, %v396_v60  ;;  %v5765_v60 = vcombine.high %v839_v53, %v843_v54  ;;  %v783_v54 = vld [vmem:[#allocation12 + $0x200] sm:$0xff] }
 0x2a0   :  { %5640 = vmatmul.mubr.msk.bf16.vlgmr.msra.gmra.mxu1 %vm214_vm1, %v397_v63  ;;  %5642 = vmatmul.mubr.msk.bf16.vlgmr.msra.gmra.mxu0 %vm214_vm1, %v397_v63 }
 0x2a1   :  { %593 = vmatpush1.bf16.msra.mxu1 %v5634_v47  ;;  %612 = vmatprep.mubr.bf16.mxu1 %v6802_v49  ;;  %v5812_v47 = vcombine.low %v887_v34, %v891_v35  ;;  %v951_v35 = vld [vmem:[#allocation12 + $0x740] sm:$0xff] }
 0x2a2   :  { %594 = vmatprep.subr.bf16.mxu1 %v5627_v1  ;;  %3834 = vmatpush1.bf16.msra.mxu0 %v5700_v52  ;;  %v5645_v52 = vcombine.high %v719_v45, %v723_v46  ;;  %v5789_v1 = vcombine.high %v863_v58, %v867_v59  ;;  %v791_v46 = vld [vmem:[#allocation12 + $0x240] sm:$0xff] }
 0x2a3   :  { %3835 = vmatprep.subr.bf16.mxu0 %v5693_v4  ;;  %v859_v4 = vld [vmem:[#allocation12 + $0x460] sm:$0xff] }
 0x2a5   :  { %595 = vmatpush1.bf16.msra.mxu1 %v5626_v7  ;;  %v827_v7 = vld [vmem:[#allocation12 + $0x360] sm:$0xff] }
 0x2a6   :  { %674 = vmatprep.subr.bf16.mxu1 %v5639_v8  ;;  %3836 = vmatpush1.bf16.msra.mxu0 %v5692_v9  ;;  %v5788_v8 = vcombine.low %v863_v58, %v867_v59  ;;  %v5781_v9 = vcombine.high %v855_v3, %v859_v4  ;;  %v5749_v13 = vcombine.high %v823_v6, %v827_v7  ;;  %v931_v58 = vld [vmem:[#allocation12 + $0x6a0] sm:$0xff] }
 0x2a7   :  { %3837 = vmatprep.subr.bf16.mxu0 %v5685_v12  ;;  %v851_v12 = vld [vmem:[#allocation12 + $0x420] sm:$0xff]  ;;  %v5748_v18 = vcombine.low %v823_v6, %v827_v7 }
 0x2a8   :  { %5641 = vmatmul.mubr.msk.bf16.vlgmr.msra.gmra.mxu1 %vm214_vm1, %v397_v63  ;;  %v911_v7 = vld [vmem:[#allocation12 + $0x600] sm:$0xff] }
 0x2a9   :  { %675 = vmatpush1.bf16.msra.mxu1 %v5638_v15  ;;  %694 = vmatprep.mubr.bf16.mxu1 %v6802_v49  ;;  %v5652_v49 = vcombine.low %v727_v37, %v731_v38  ;;  %v819_v15 = vld [vmem:[#allocation12 + $0x320] sm:$0xff] }
 0x2aa   :  { %676 = vmatprep.subr.bf16.mxu1 %v5631_v16  ;;  %3838 = vmatpush1.bf16.msra.mxu0 %v5684_v17  ;;  %v5780_v16 = vcombine.low %v855_v3, %v859_v4  ;;  %v5773_v17 = vcombine.high %v847_v11, %v851_v12  ;;  %v5741_v21 = vcombine.high %v815_v14, %v819_v15  ;;  %v1035_v3 = vld [vmem:[#allocation12 + $0x9e0] sm:$0xff] }
 0x2ab   :  { %3839 = vmatprep.subr.bf16.mxu0 %v5677_v20  ;;  %v971_v20 = vld [vmem:[#allocation12 + $0x7e0] sm:$0xff]  ;;  %v5740_v26 = vcombine.low %v815_v14, %v819_v15  ;;  %v416_v15 = vlaneseq }
 0x2ad   :  { %677 = vmatpush1.bf16.msra.mxu1 %v5630_v23  ;;  %v811_v23 = vld [vmem:[#allocation12 + $0x2e0] sm:$0xff] }
 0x2ae   :  { %3874 = vmatprep.subr.bf16.mxu1 %v5829_v24  ;;  %3840 = vmatpush1.bf16.msra.mxu0 %v5676_v25  ;;  %v5772_v24 = vcombine.low %v847_v11, %v851_v12  ;;  %v5893_v25 = vcombine.high %v967_v19, %v971_v20  ;;  %v5733_v29 = vcombine.high %v807_v22, %v811_v23  ;;  %v7004_v11 = vld [vmem:[#allocation12 + $0xdc0] sm:$0xff] }
 0x2af   :  { %3841 = vmatprep.subr.bf16.mxu0 %v5669_v28  ;;  %v963_v28 = vld [vmem:[#allocation12 + $0x7a0] sm:$0xff]  ;;  %v5732_v34 = vcombine.low %v807_v22, %v811_v23 }
 0x2b0   :  { %5643 = vmatmul.mubr.msk.bf16.vlgmr.msra.gmra.mxu1 %vm214_vm1, %v397_v63  ;;  %v5796_v63 = vcombine.low %v871_v50, %v875_v51  ;;  %v5884_v38 = vcombine.low %v959_v27, %v963_v28  ;;  %v939_v50 = vld [vmem:[#allocation12 + $0x6e0] sm:$0xff] }
 0x2b1   :  { %3875 = vmatpush1.bf16.msra.mxu1 %v5828_v31  ;;  %v803_v31 = vld [vmem:[#allocation12 + $0x2a0] sm:$0xff] }
 0x2b2   :  { %3876 = vmatprep.subr.bf16.mxu1 %v5821_v32  ;;  %3842 = vmatpush1.bf16.msra.mxu0 %v5668_v33  ;;  %v5892_v32 = vcombine.low %v967_v19, %v971_v20  ;;  %v5885_v33 = vcombine.high %v959_v27, %v963_v28  ;;  %v5725_v37 = vcombine.high %v799_v30, %v803_v31  ;;  %v7006_v12 = vld [vmem:[#allocation12 + $0xde0] sm:$0xff] }
 0x2b3   :  { %3843 = vmatprep.subr.bf16.mxu0 %v5661_v36  ;;  %v955_v36 = vld [vmem:[#allocation12 + $0x760] sm:$0xff]  ;;  %v6085_v14 = vcombine.high %v7004_v11, %v7006_v12 }
 0x2b4   :  { %v5876_v43 = vcombine.low %v951_v35, %v955_v36 }
 0x2b5   :  { %3877 = vmatpush1.bf16.msra.mxu1 %v5820_v39  ;;  %v5877_v39 = vcombine.high %v951_v35, %v955_v36 }
 0x2b6   :  { %3878 = vmatprep.subr.bf16.mxu1 %v5813_v40  ;;  %3844 = vmatpush1.bf16.msra.mxu0 %v5660_v41  ;;  %v5724_v40 = vcombine.low %v799_v30, %v803_v31  ;;  %v943_v41 = vld [vmem:[#allocation12 + $0x700] sm:$0xff] }
 0x2b7   :  { %3845 = vmatprep.subr.bf16.mxu0 %v5653_v44  ;;  %v5869_v44 = vcombine.high %v943_v41, %v947_v42  ;;  %v5868_v45 = vcombine.low %v943_v41, %v947_v42 }
 0x2b9   :  { %3879 = vmatpush1.bf16.msra.mxu1 %v5812_v47  ;;  %v795_v47 = vld [vmem:[#allocation12 + $0x260] sm:$0xff] }
 0x2ba   :  { %3880 = vmatprep.subr.bf16.mxu1 %v5805_v48  ;;  %3846 = vmatpush1.bf16.msra.mxu0 %v5652_v49  ;;  %v935_v48 = vld [vmem:[#allocation12 + $0x6c0] sm:$0xff]  ;;  %v5717_v49 = vcombine.high %v791_v46, %v795_v47  ;;  %v5716_v51 = vcombine.low %v791_v46, %v795_v47 }
 0x2bb   :  { %3847 = vmatprep.subr.bf16.mxu0 %v5645_v52  ;;  %v5860_v52 = vcombine.low %v935_v48, %v939_v50  ;;  %v5861_v53 = vcombine.high %v935_v48, %v939_v50  ;;  %v1015_v50 = vld [vmem:[#allocation12 + $0x940] sm:$0xff] }
 0x2bd   :  { %3881 = vmatpush1.bf16.msra.mxu1 %v5804_v55  ;;  %v787_v55 = vld [vmem:[#allocation12 + $0x220] sm:$0xff] }
 0x2be   :  { %3882 = vmatprep.subr.bf16.mxu1 %v5797_v56  ;;  %3848 = vmatpush1.bf16.msra.mxu0 %v5644_v57  ;;  %v927_v56 = vld [vmem:[#allocation12 + $0x680] sm:$0xff]  ;;  %v5709_v57 = vcombine.high %v783_v54, %v787_v55  ;;  %v5708_v59 = vcombine.low %v783_v54, %v787_v55 }
 0x2bf   :  { %3849 = vmatprep.subr.bf16.mxu0 %v5765_v60  ;;  %v5852_v60 = vcombine.low %v927_v56, %v931_v58  ;;  %v5853_v61 = vcombine.high %v927_v56, %v931_v58 }
 0x2c1   :  { %3883 = vmatpush1.bf16.msra.mxu1 %v5796_v63  ;;  %v923_v63 = vld [vmem:[#allocation12 + $0x660] sm:$0xff] }
 0x2c2   :  { %3884 = vmatprep.subr.bf16.mxu1 %v5789_v1  ;;  %3850 = vmatpush2.bf16.msra.mxu0 %v5764_v2  ;;  %v1031_v1 = vld [vmem:[#allocation12 + $0x9c0] sm:$0xff]  ;;  %v5845_v2 = vcombine.high %v919_v62, %v923_v63  ;;  %v5844_v4 = vcombine.low %v919_v62, %v923_v63 }
 0x2c3   :  { %3851 = vmatprep.subr.bf16.mxu0 %v5757_v5  ;;  %v5956_v5 = vcombine.low %v1031_v1, %v1035_v3  ;;  %v5957_v6 = vcombine.high %v1031_v1, %v1035_v3  ;;  %v1151_v62 = vld [vmem:[#allocation12 + $0xd80] sm:$0xff] }
 0x2c4   :  { %v1155_v63 = vld [vmem:[#allocation12 + $0xda0] sm:$0xff] }
 0x2c5   :  { %3885 = vmatpush1.bf16.msra.mxu1 %v5788_v8  ;;  %v915_v8 = vld [vmem:[#allocation12 + $0x620] sm:$0xff] }
 0x2c6   :  { %3886 = vmatprep.subr.bf16.mxu1 %v5781_v9  ;;  %3852 = vmatpush2.bf16.msra.mxu0 %v5756_v10  ;;  %v5837_v9 = vcombine.high %v911_v7, %v915_v8  ;;  %v5836_v10 = vcombine.low %v911_v7, %v915_v8  ;;  %v6077_v8 = vcombine.high %v1151_v62, %v1155_v63 }
 0x2c7   :  { %3853 = vmatprep.subr.bf16.mxu0 %v5749_v13  ;;  %v6084_v13 = vcombine.low %v7004_v11, %v7006_v12 }
 0x2c9   :  { %3887 = vmatpush1.bf16.msra.mxu1 %v5780_v16  ;;  %v7012_v16 = vshrl.u32 %v416_v15, 7  ;;  %v1147_v15 = vld [vmem:[#allocation12 + $0xd60] sm:$0xff] }
 0x2ca   :  { %3888 = vmatprep.subr.bf16.mxu1 %v5773_v17  ;;  %3854 = vmatpush2.bf16.msra.mxu0 %v5748_v18  ;;  %v7017_v18 = vld [vmem:[#allocation10] sm:$0xff] }
 0x2cb   :  { %3855 = vmatprep.subr.bf16.mxu0 %v5741_v21  ;;  %v7015_v17 = vsub.s32 0, %v7012_v16  ;;  %v7020_v19 = vsub.s32 1, %v7012_v16  ;;  %v438_v20 = vsub.s32 5, %v7012_v16  ;;  %v7033_v27 = vsub.s32 2, %v7012_v16 }
 0x2cc   :  { %v446_v55 = vsub.s32 7, %v7012_v16 }
 0x2cd   :  { %3889 = vmatpush1.bf16.msra.mxu1 %v5772_v24  ;;  %v419_v21 = vrot.slane %v7017_v18, %v7015_v17  ;;  %v423_v22 = vrot.slane %v7017_v18, %v7020_v19  ;;  %v439_v23 = vrot.slane %v7017_v18, %v438_v20 }
 0x2ce   :  { %3890 = vmatprep.subr.bf16.mxu1 %v5893_v25  ;;  %3856 = vmatpush2.bf16.msra.mxu0 %v5740_v26 }
 0x2cf   :  { %3857 = vmatprep.subr.bf16.mxu0 %v5733_v29 }
 0x2d1   :  { %3891 = vmatpush2.bf16.msra.mxu1 %v5892_v32  ;;  %v7036_v32 = vsub.s32 3, %v7012_v16 }
 0x2d2   :  { %3892 = vmatprep.subr.bf16.mxu1 %v5885_v33  ;;  %3858 = vmatpush2.bf16.msra.mxu0 %v5732_v34 }
 0x2d3   :  { %3859 = vmatprep.subr.bf16.mxu0 %v5725_v37 }
 0x2d5   :  { %3893 = vmatpush2.bf16.msra.mxu1 %v5884_v38  ;;  %v427_v38 = vrot.slane %v7017_v18, %v7033_v27 }
 0x2d6   :  { %3894 = vmatprep.subr.bf16.mxu1 %v5877_v39  ;;  %3860 = vmatpush2.bf16.msra.mxu0 %v5724_v40  ;;  %v1023_v39 = vld [vmem:[#allocation12 + $0x980] sm:$0xff] }
 0x2d7   :  { %3861 = vmatprep.subr.bf16.mxu0 %v5717_v49  ;;  %v1027_v40 = vld [vmem:[#allocation12 + $0x9a0] sm:$0xff] }
 0x2d8   :  { %v5949_v47 = vcombine.high %v1023_v39, %v1027_v40  ;;  %v5948_v54 = vcombine.low %v1023_v39, %v1027_v40  ;;  %v983_v39 = vld [vmem:[#allocation12 + $0x840] sm:$0xff] }
 0x2d9   :  { %3895 = vmatpush2.bf16.msra.mxu1 %v5876_v43  ;;  %v987_v40 = vld [vmem:[#allocation12 + $0x860] sm:$0xff] }
 0x2da   :  { %3896 = vmatprep.subr.bf16.mxu1 %v5869_v44  ;;  %3862 = vmatpush2.bf16.msra.mxu0 %v5716_v51  ;;  %v431_v44 = vrot.slane %v7017_v18, %v7036_v32  ;;  %v1019_v51 = vld [vmem:[#allocation12 + $0x960] sm:$0xff] }
 0x2db   :  { %3863 = vmatprep.subr.bf16.mxu0 %v5709_v57  ;;  %v5941_v58 = vcombine.high %v1015_v50, %v1019_v51  ;;  %v5940_v3 = vcombine.low %v1015_v50, %v1019_v51  ;;  %v975_v50 = vld [vmem:[#allocation12 + $0x800] sm:$0xff] }
 0x2dc   :  { %v979_v51 = vld [vmem:[#allocation12 + $0x820] sm:$0xff] }
 0x2dd   :  { %3897 = vmatpush2.bf16.msra.mxu1 %v5868_v45 }
 0x2de   :  { %3898 = vmatprep.subr.bf16.mxu1 %v5861_v53  ;;  %3864 = vmatpush2.bf16.msra.mxu0 %v5708_v59  ;;  %v1007_v59 = vld [vmem:[#allocation12 + $0x900] sm:$0xff] }
 0x2df   :  { %3915 = vmatprep.subr.bf16.mxu0 %v5957_v6 }
 0x2e1   :  { %3899 = vmatpush2.bf16.msra.mxu1 %v5860_v52 }
 0x2e2   :  { %3900 = vmatprep.subr.bf16.mxu1 %v5853_v61  ;;  %v1011_v61 = vld [vmem:[#allocation12 + $0x920] sm:$0xff] }
 0x2e3   :  { %v5933_v7 = vcombine.high %v1007_v59, %v1011_v61 }
 0x2e5   :  { %3901 = vmatpush2.bf16.msra.mxu1 %v5852_v60 }
 0x2e6   :  { %3902 = vmatprep.subr.bf16.mxu1 %v5845_v2 }
 0x2e9   :  { %3903 = vmatpush2.bf16.msra.mxu1 %v5844_v4  ;;  %v447_v4 = vrot.slane %v7017_v18, %v446_v55 }
 0x2ea   :  { %3904 = vmatprep.subr.bf16.mxu1 %v5837_v9  ;;  %v999_v9 = vld [vmem:[#allocation12 + $0x8c0] sm:$0xff] }
 0x2ed   :  { %3905 = vmatpush2.bf16.msra.mxu1 %v5836_v10  ;;  %v1003_v10 = vld [vmem:[#allocation12 + $0x8e0] sm:$0xff] }
 0x2ee   :  { %3956 = vmatprep.subr.bf16.mxu1 %v6085_v14  ;;  %v1143_v14 = vld [vmem:[#allocation12 + $0xd40] sm:$0xff] }
 0x2ef   :  { %v6068_v11 = vcombine.low %v1143_v14, %v1147_v15 }
 0x360   :  { %v573_v24 = vpop.f32.mrf.mxu1  ;;  %v7030_v25 = vpop.f32.mrf.mxu0 }
 0x361   :  { %v574_v26 = vadd.f32 %v573_v24, %v419_v21  ;;  %v6076_v24 = vcombine.low %v1151_v62, %v1155_v63  ;;  %v1115_v62 = vld [vmem:[#allocation12 + $0xc60] sm:$0xff]  ;;  %v5900_v63 = vcombine.low %v975_v50, %v979_v51 }
 0x362   :  { %v575_v28 = vpop.f32.mrf.mxu1  ;;  %v657_v29 = vpop.f32.mrf.mxu0 }
 0x363   :  { %v576_v30 = vadd.f32 %v575_v28, %v423_v22  ;;  %v658_v31 = vadd.f32 %v657_v29, %v439_v23  ;;  %v703_v33 = vmax.f32 %v574_v26, 0.0  ;;  %v5932_v23 = vcombine.low %v1007_v59, %v1011_v61  ;;  %v1095_v59 = vld [vmem:[#allocation12 + $0xbc0] sm:$0xff] }
 0x364   :  { %v577_v34 = vpop.f32.mrf.mxu1  ;;  %v659_v35 = vpop.f32.mrf.mxu0  ;;  %v5925_v28 = vcombine.high %v999_v9, %v1003_v10  ;;  %v6069_v29 = vcombine.high %v1143_v14, %v1147_v15  ;;  %v1111_v61 = vld [vmem:[#allocation12 + $0xc40] sm:$0xff] }
 0x365   :  { %v704_v36 = vmax.f32 %v576_v30, 0.0  ;;  %v708_v37 = vmax.f32 %v658_v31, 0.0  ;;  %v7044_v45 = vpack.c.bf16 %v703_v33, %v703_v33  ;;  %v991_v30 = vld [vmem:[#allocation12 + $0x880] sm:$0xff]  ;;  %v6036_v15 = vcombine.low %v1111_v61, %v1115_v62 }
 0x366   :  { %v578_v41 = vpop.f32.mrf.mxu1  ;;  %v660_v42 = vpop.f32.mrf.mxu0  ;;  %v995_v33 = vld [vmem:[#allocation12 + $0x8a0] sm:$0xff] }
 0x367   :  { %v7040_v43 = vpack.c.bf16 %v704_v36, %v704_v36  ;;  %v7046_v48 = vpack.c.bf16 %v708_v37, %v708_v37  ;;  %v1135_v34 = vld [vmem:[#allocation12 + $0xd00] sm:$0xff]  ;;  %v5917_v12 = vcombine.high %v991_v30, %v995_v33 }
 0x368   :  { %v614_v46 = vpop.f32.mrf.mxu1  ;;  %v1139_v35 = vld [vmem:[#allocation12 + $0xd20] sm:$0xff] }
 0x369   :  { %v615_v49 = vadd.f32 %v614_v46, %v427_v38  ;;  %3865 = vmatprep.mubr.bf16.mxu0 %v7040_v43  ;;  %v5924_v38 = vcombine.low %v999_v9, %v1003_v10  ;;  %v1127_v41 = vld [vmem:[#allocation12 + $0xcc0] sm:$0xff]  ;;  %v6060_v46 = vcombine.low %v1135_v34, %v1139_v35 }
 0x36a   :  { %v616_v52 = vpop.f32.mrf.mxu1  ;;  %3866 = vmatmul.mubr.bf16.vlgmr.msra.gmra.mxu0 %v7044_v45  ;;  %v1131_v42 = vld [vmem:[#allocation12 + $0xce0] sm:$0xff] }
 0x36b   :  { %v617_v53 = vadd.f32 %v616_v52, %v431_v44  ;;  %3916 = vmatpush1.bf16.msra.mxu0 %v5956_v5  ;;  %3947 = vmatprep.mubr.bf16.mxu0 %v7046_v48  ;;  %v705_v56 = vmax.f32 %v615_v49, 0.0  ;;  %v5916_v44 = vcombine.low %v991_v30, %v995_v33  ;;  %v6053_v49 = vcombine.high %v1127_v41, %v1131_v42  ;;  %v1119_v52 = vld [vmem:[#allocation12 + $0xc80] sm:$0xff] }
 0x36c   :  { %v618_v57 = vpop.f32.mrf.mxu1  ;;  %3917 = vmatprep.subr.bf16.mxu0 %v5949_v47  ;;  %v5909_v47 = vcombine.high %v983_v39, %v987_v40  ;;  %v1103_v9 = vld [vmem:[#allocation12 + $0xc00] sm:$0xff] }
 0x36d   :  { %v706_v60 = vmax.f32 %v617_v53, 0.0  ;;  %v7057_v5 = vpack.c.bf16 %v705_v56, %v705_v56  ;;  %v1123_v53 = vld [vmem:[#allocation12 + $0xca0] sm:$0xff]  ;;  %v6052_v56 = vcombine.low %v1127_v41, %v1131_v42  ;;  %v5901_v57 = vcombine.high %v975_v50, %v979_v51 }
 0x36e   :  { %v619_v1 = vpop.f32.mrf.mxu1  ;;  %v1107_v10 = vld [vmem:[#allocation12 + $0xc20] sm:$0xff] }
 0x36f   :  { %v7052_v2 = vpack.c.bf16 %v706_v60, %v706_v60  ;;  %3918 = vmatpush1.bf16.msra.mxu0 %v5948_v54  ;;  %v5908_v54 = vcombine.low %v983_v39, %v987_v40  ;;  %v1099_v60 = vld [vmem:[#allocation12 + $0xbe0] sm:$0xff]  ;;  %v6044_v1 = vcombine.low %v1119_v52, %v1123_v53  ;;  %v6028_v30 = vcombine.low %v1103_v9, %v1107_v10 }
 0x370   :  { %v7059_v6 = vpop.f32.mrf.mxu1  ;;  %3919 = vmatprep.subr.bf16.mxu0 %v5941_v58  ;;  %v6045_v58 = vcombine.high %v1119_v52, %v1123_v53  ;;  %v6020_v14 = vcombine.low %v1095_v59, %v1099_v60  ;;  %v1063_v40 = vld [vmem:[#allocation12 + $0xac0] sm:$0xff] }
 0x371   :  { %3906 = vmatprep.mubr.bf16.mxu1 %v7052_v2  ;;  %v1067_v41 = vld [vmem:[#allocation12 + $0xae0] sm:$0xff] }
 0x372   :  { %v698_v21 = vpop.f32.mrf.mxu1  ;;  %3907 = vmatmul.mubr.bf16.vlgmr.msra.gmra.mxu1 %v7057_v5  ;;  %v1207_v42 = vld [vmem:[#allocation12 + $0xf40] sm:$0xff] }
 0x373   :  { %v699_v22 = vadd.f32 %v698_v21, %v447_v4  ;;  %3920 = vmatpush1.bf16.msra.mxu0 %v5940_v3  ;;  %3957 = vmatpush1.bf16.msra.mxu1 %v6084_v13  ;;  %v6061_v13 = vcombine.high %v1135_v34, %v1139_v35  ;;  %v6021_v3 = vcombine.high %v1095_v59, %v1099_v60  ;;  %v1071_v34 = vld [vmem:[#allocation12 + $0xb00] sm:$0xff] }
 0x374   :  { %v700_v26 = vpop.f32.mrf.mxu1  ;;  %3921 = vmatprep.subr.bf16.mxu0 %v5933_v7  ;;  %3958 = vmatprep.subr.bf16.mxu1 %v6077_v8  ;;  %v6037_v4 = vcombine.high %v1111_v61, %v1115_v62  ;;  %v1087_v7 = vld [vmem:[#allocation12 + $0xb80] sm:$0xff] }
 0x375   :  { %v710_v31 = vmax.f32 %v699_v22, 0.0  ;;  %v1091_v8 = vld [vmem:[#allocation12 + $0xba0] sm:$0xff]  ;;  %v6029_v22 = vcombine.high %v1103_v9, %v1107_v10 }
 0x376   :  { %v701_v36 = vpop.f32.mrf.mxu1  ;;  %v6013_v21 = vcombine.high %v1087_v7, %v1091_v8  ;;  %v1223_v26 = vld [vmem:[#allocation12 + $0xfc0] sm:$0xff] }
 0x377   :  { %v7066_v37 = vpack.c.bf16 %v710_v31, %v710_v31  ;;  %3922 = vmatpush1.bf16.msra.mxu0 %v5932_v23  ;;  %3959 = vmatpush1.bf16.msra.mxu1 %v6076_v24  ;;  %v1079_v23 = vld [vmem:[#allocation12 + $0xb40] sm:$0xff] }
 0x378   :  { %3923 = vmatprep.subr.bf16.mxu0 %v5925_v28  ;;  %3960 = vmatprep.subr.bf16.mxu1 %v6069_v29  ;;  %v1083_v24 = vld [vmem:[#allocation12 + $0xb60] sm:$0xff]  ;;  %v6012_v29 = vcombine.low %v1087_v7, %v1091_v8 }
 0x379   :  { %3988 = vmatprep.mubr.bf16.mxu1 %v7066_v37  ;;  %v1227_v28 = vld [vmem:[#allocation12 + $0xfe0] sm:$0xff]  ;;  %v6005_v31 = vcombine.high %v1079_v23, %v1083_v24 }
 0x37a   :  { %v6149_v33 = vcombine.high %v1223_v26, %v1227_v28  ;;  %v1075_v35 = vld [vmem:[#allocation12 + $0xb20] sm:$0xff] }
 0x37b   :  { %3924 = vmatpush1.bf16.msra.mxu0 %v5924_v38  ;;  %3961 = vmatpush1.bf16.msra.mxu1 %v6068_v11  ;;  %v1215_v36 = vld [vmem:[#allocation12 + $0xf80] sm:$0xff]  ;;  %v6004_v11 = vcombine.low %v1079_v23, %v1083_v24 }
 0x37c   :  { %3925 = vmatprep.subr.bf16.mxu0 %v5917_v12  ;;  %3962 = vmatprep.subr.bf16.mxu1 %v6061_v13  ;;  %v1219_v38 = vld [vmem:[#allocation12 + $0xfa0] sm:$0xff]  ;;  %v6148_v12 = vcombine.low %v1223_v26, %v1227_v28  ;;  %v5997_v13 = vcombine.high %v1071_v34, %v1075_v35  ;;  %v442_v26 = vsub.s32 6, %v7012_v16 }
 0x37d   :  { %v6141_v39 = vcombine.high %v1215_v36, %v1219_v38  ;;  %v1055_v51 = vld [vmem:[#allocation12 + $0xa80] sm:$0xff] }
 0x37e   :  { %v1059_v52 = vld [vmem:[#allocation12 + $0xaa0] sm:$0xff] }
 0x37f   :  { %3926 = vmatpush1.bf16.msra.mxu0 %v5916_v44  ;;  %3963 = vmatpush1.bf16.msra.mxu1 %v6060_v46  ;;  %v1211_v44 = vld [vmem:[#allocation12 + $0xf60] sm:$0xff]  ;;  %v5996_v46 = vcombine.low %v1071_v34, %v1075_v35  ;;  %v5981_v59 = vcombine.high %v1055_v51, %v1059_v52  ;;  %v780_v34 = vld [vmem:[#allocation12 + $0x1e8] sm:$0xff] }
 0x380   :  { %3927 = vmatprep.subr.bf16.mxu0 %v5909_v47  ;;  %3964 = vmatprep.subr.bf16.mxu1 %v6053_v49  ;;  %v6140_v47 = vcombine.low %v1215_v36, %v1219_v38  ;;  %v5989_v49 = vcombine.high %v1063_v40, %v1067_v41  ;;  %v6133_v50 = vcombine.high %v1207_v42, %v1211_v44  ;;  %v1199_v53 = vld [vmem:[#allocation12 + $0xf00] sm:$0xff] }
 0x381   :  { %v1047_v61 = vld [vmem:[#allocation12 + $0xa40] sm:$0xff] }
 0x382   :  { %v1051_v62 = vld [vmem:[#allocation12 + $0xa60] sm:$0xff] }
 0x383   :  { %3928 = vmatpush1.bf16.msra.mxu0 %v5908_v54  ;;  %3965 = vmatpush1.bf16.msra.mxu1 %v6052_v56  ;;  %v1203_v54 = vld [vmem:[#allocation12 + $0xf20] sm:$0xff]  ;;  %v5988_v56 = vcombine.low %v1063_v40, %v1067_v41  ;;  %v5973_v8 = vcombine.high %v1047_v61, %v1051_v62  ;;  %v768_v40 = vld [vmem:[#allocation12 + $0x188] sm:$0xff] }
 0x384   :  { %3929 = vmatprep.subr.bf16.mxu0 %v5901_v57  ;;  %3966 = vmatprep.subr.bf16.mxu1 %v6045_v58  ;;  %v6132_v57 = vcombine.low %v1207_v42, %v1211_v44  ;;  %v434_v58 = vsub.s32 4, %v7012_v16  ;;  %v6125_v60 = vcombine.high %v1199_v53, %v1203_v54  ;;  %v1039_v10 = vld [vmem:[#allocation12 + $0xa00] sm:$0xff]  ;;  %v772_v41 = vld [vmem:[#allocation12 + $0x1a8] sm:$0xff] }
 0x386   :  { %v435_v7 = vrot.slane %v7017_v18, %v434_v58 }
 0x387   :  { %3930 = vmatpush1.bf16.msra.mxu0 %v5900_v63  ;;  %3967 = vmatpush1.bf16.msra.mxu1 %v6044_v1  ;;  %v1191_v63 = vld [vmem:[#allocation12 + $0xec0] sm:$0xff] }
 0x388   :  { %3931 = vmatprep.subr.bf16.mxu0 %v6021_v3  ;;  %3968 = vmatprep.subr.bf16.mxu1 %v6037_v4  ;;  %v1195_v1 = vld [vmem:[#allocation12 + $0xee0] sm:$0xff]  ;;  %v5980_v3 = vcombine.low %v1055_v51, %v1059_v52  ;;  %v6124_v4 = vcombine.low %v1199_v53, %v1203_v54  ;;  %v656_v24 = vadd.f32 %v7030_v25, %v435_v7  ;;  %v764_v51 = vld [vmem:[#allocation12 + $0x168] sm:$0xff] }
 0x389   :  { %v6117_v9 = vcombine.high %v1191_v63, %v1195_v1  ;;  %v6116_v23 = vcombine.low %v1191_v63, %v1195_v1  ;;  %v904_v52 = vld [vmem:[#allocation12 + $0x5c8] sm:$0xff] }
 0x38a   :  { %v707_v38 = vmax.f32 %v656_v24, 0.0  ;;  %v908_v53 = vld [vmem:[#allocation12 + $0x5e8] sm:$0xff] }
 0x38b   :  { %3932 = vmatpush2.bf16.msra.mxu0 %v6020_v14  ;;  %3969 = vmatpush1.bf16.msra.mxu1 %v6036_v15  ;;  %v1043_v14 = vld [vmem:[#allocation12 + $0xa20] sm:$0xff]  ;;  %v900_v63 = vld [vmem:[#allocation12 + $0x5a8] sm:$0xff] }
 0x38c   :  { %3933 = vmatprep.subr.bf16.mxu0 %v6013_v21  ;;  %3970 = vmatprep.subr.bf16.mxu1 %v6029_v22  ;;  %v1183_v15 = vld [vmem:[#allocation12 + $0xe80] sm:$0xff]  ;;  %v5972_v22 = vcombine.low %v1047_v61, %v1051_v62  ;;  %v5965_v28 = vcombine.high %v1039_v10, %v1043_v14  ;;  %v5964_v35 = vcombine.low %v1039_v10, %v1043_v14  ;;  %v756_v61 = vld [vmem:[#allocation12 + $0x128] sm:$0xff] }
 0x38d   :  { %v1187_v21 = vld [vmem:[#allocation12 + $0xea0] sm:$0xff]  ;;  %v896_v62 = vld [vmem:[#allocation12 + $0x588] sm:$0xff] }
 0x38e   :  { %v6108_v36 = vcombine.low %v1183_v15, %v1187_v21  ;;  %v748_v10 = vld [vmem:[#allocation12 + $0xe8] sm:$0xff] }
 0x38f   :  { %3934 = vmatpush2.bf16.msra.mxu0 %v6012_v29  ;;  %3971 = vmatpush1.bf16.msra.mxu1 %v6028_v30  ;;  %v6109_v29 = vcombine.high %v1183_v15, %v1187_v21  ;;  %v1175_v30 = vld [vmem:[#allocation12 + $0xe40] sm:$0xff]  ;;  %v888_v14 = vld [vmem:[#allocation12 + $0x548] sm:$0xff] }
 0x390   :  { %3935 = vmatprep.subr.bf16.mxu0 %v6005_v31  ;;  %3972 = vmatprep.subr.bf16.mxu1 %v6149_v33  ;;  %v1179_v31 = vld [vmem:[#allocation12 + $0xe60] sm:$0xff]  ;;  %v776_v33 = vld [vmem:[#allocation12 + $0x1c8] sm:$0xff] }
 0x391   :  { %v6101_v25 = vcombine.high %v1175_v30, %v1179_v31  ;;  %v6100_v42 = vcombine.low %v1175_v30, %v1179_v31  ;;  %v5702_v44 = vcombine.low %v776_v33, %v780_v34  ;;  %v892_v15 = vld [vmem:[#allocation12 + $0x568] sm:$0xff] }
 0x392   :  { %v5815_v24 = vcombine.high %v888_v14, %v892_v15  ;;  %v880_v30 = vld [vmem:[#allocation12 + $0x508] sm:$0xff] }
 0x393   :  { %3936 = vmatpush2.bf16.msra.mxu0 %v6004_v11  ;;  %3973 = vmatpush2.bf16.msra.mxu1 %v6148_v12  ;;  %v443_v11 = vrot.slane %v7017_v18, %v442_v26  ;;  %v5703_v12 = vcombine.high %v776_v33, %v780_v34  ;;  %v760_v18 = vld [vmem:[#allocation12 + $0x148] sm:$0xff]  ;;  %v5814_v34 = vcombine.low %v888_v14, %v892_v15 }
 0x394   :  { %3937 = vmatprep.subr.bf16.mxu0 %v5997_v13  ;;  %3974 = vmatprep.subr.bf16.mxu1 %v6141_v39  ;;  %v1167_v13 = vld [vmem:[#allocation12 + $0xe00] sm:$0xff]  ;;  %v5686_v1 = vcombine.low %v760_v18, %v764_v51  ;;  %v884_v31 = vld [vmem:[#allocation12 + $0x528] sm:$0xff] }
 0x395   :  { %v1171_v39 = vld [vmem:[#allocation12 + $0xe20] sm:$0xff]  ;;  %v824_v14 = vld [vmem:[#allocation12 + $0x348] sm:$0xff] }
 0x396   :  { %v6092_v54 = vcombine.low %v1167_v13, %v1171_v39  ;;  %v828_v15 = vld [vmem:[#allocation12 + $0x368] sm:$0xff] }
 0x397   :  { %3938 = vmatpush2.bf16.msra.mxu0 %v5996_v46  ;;  %3975 = vmatpush2.bf16.msra.mxu1 %v6140_v47  ;;  %v7078_v46 = vpack.c.bf16 %v707_v38, %v707_v38  ;;  %v697_v47 = vadd.f32 %v7059_v6, %v443_v11  ;;  %v5831_v6 = vcombine.high %v904_v52, %v908_v53  ;;  %v728_v38 = vld [vmem:[#allocation12 + $0x48] sm:$0xff] }
 0x398   :  { %3939 = vmatprep.subr.bf16.mxu0 %v5989_v49  ;;  %3976 = vmatprep.subr.bf16.mxu1 %v6133_v50  ;;  %v6093_v49 = vcombine.high %v1167_v13, %v1171_v39  ;;  %v5695_v50 = vcombine.high %v768_v40, %v772_v41  ;;  %v732_v11 = vld [vmem:[#allocation12 + $0x68] sm:$0xff]  ;;  %v5806_v39 = vcombine.low %v880_v30, %v884_v31 }
 0x39b   :  { %3940 = vmatpush2.bf16.msra.mxu0 %v5988_v56  ;;  %3977 = vmatpush2.bf16.msra.mxu1 %v6132_v57  ;;  %v5694_v56 = vcombine.low %v768_v40, %v772_v41  ;;  %v709_v57 = vmax.f32 %v697_v47, 0.0  ;;  %v5655_v40 = vcombine.high %v728_v38, %v732_v11  ;;  %v864_v47 = vld [vmem:[#allocation12 + $0x488] sm:$0xff] }
 0x39c   :  { %3941 = vmatprep.subr.bf16.mxu0 %v5981_v59  ;;  %3978 = vmatprep.subr.bf16.mxu1 %v6125_v60  ;;  %v5687_v59 = vcombine.high %v760_v18, %v764_v51  ;;  %v752_v60 = vld [vmem:[#allocation12 + $0x108] sm:$0xff]  ;;  %v5654_v18 = vcombine.low %v728_v38, %v732_v11 }
 0x39d   :  { %v5679_v7 = vcombine.high %v752_v60, %v756_v61  ;;  %v5678_v21 = vcombine.low %v752_v60, %v756_v61 }
 0x39f   :  { %3942 = vmatpush2.bf16.msra.mxu0 %v5980_v3  ;;  %3979 = vmatpush2.bf16.msra.mxu1 %v6124_v4  ;;  %v5830_v3 = vcombine.low %v904_v52, %v908_v53  ;;  %v7083_v4 = vpack.c.bf16 %v709_v57, %v709_v57  ;;  %v840_v53 = vld [vmem:[#allocation12 + $0x3c8] sm:$0xff] }
 0x3a0   :  { %3943 = vmatprep.subr.bf16.mxu0 %v5973_v8  ;;  %3980 = vmatprep.subr.bf16.mxu1 %v6117_v9  ;;  %v744_v8 = vld [vmem:[#allocation12 + $0xc8] sm:$0xff]  ;;  %v5823_v9 = vcombine.high %v896_v62, %v900_v63 }
 0x3a1   :  { %v5670_v33 = vcombine.low %v744_v8, %v748_v10  ;;  %v860_v57 = vld [vmem:[#allocation12 + $0x468] sm:$0xff] }
 0x3a3   :  { %3944 = vmatpush2.bf16.msra.mxu0 %v5972_v22  ;;  %3981 = vmatpush2.bf16.msra.mxu1 %v6116_v23  ;;  %v5822_v22 = vcombine.low %v896_v62, %v900_v63  ;;  %v5671_v23 = vcombine.high %v744_v8, %v748_v10  ;;  %v832_v62 = vld [vmem:[#allocation12 + $0x388] sm:$0xff] }
 0x3a4   :  { %3945 = vmatprep.subr.bf16.mxu0 %v5965_v28  ;;  %3982 = vmatprep.subr.bf16.mxu1 %v6109_v29  ;;  %v736_v28 = vld [vmem:[#allocation12 + $0x88] sm:$0xff] }
 0x3a5   :  { %v740_v29 = vld [vmem:[#allocation12 + $0xa8] sm:$0xff] }
 0x3a6   :  { %v5662_v13 = vcombine.low %v736_v28, %v740_v29  ;;  %v836_v63 = vld [vmem:[#allocation12 + $0x3a8] sm:$0xff] }
 0x3a7   :  { %3946 = vmatpush2.bf16.msra.mxu0 %v5964_v35  ;;  %3983 = vmatpush2.bf16.msra.mxu1 %v6108_v36  ;;  %v5663_v35 = vcombine.high %v736_v28, %v740_v29  ;;  %v5807_v36 = vcombine.high %v880_v30, %v884_v31  ;;  %v5751_v28 = vcombine.high %v824_v14, %v828_v15  ;;  %v816_v30 = vld [vmem:[#allocation12 + $0x308] sm:$0xff] }
 0x3a8   :  { %3984 = vmatprep.subr.bf16.mxu1 %v6101_v25  ;;  %3997 = vmatprep.subr.bf16.mxu0 %v5703_v12  ;;  %v872_v25 = vld [vmem:[#allocation12 + $0x4c8] sm:$0xff] }
 0x3a9   :  { %v876_v12 = vld [vmem:[#allocation12 + $0x4e8] sm:$0xff] }
 0x3aa   :  { %3948 = vmatmul.mubr.bf16.vlgmr.msra.gmra.mxu0 %v7078_v46  ;;  %v5799_v41 = vcombine.high %v872_v25, %v876_v12  ;;  %v820_v31 = vld [vmem:[#allocation12 + $0x328] sm:$0xff] }
 0x3ab   :  { %3985 = vmatpush2.bf16.msra.mxu1 %v6100_v42  ;;  %3998 = vmatpush1.bf16.msra.mxu0 %v5702_v44  ;;  %v720_v42 = vld [vmem:[#allocation12 + $0x8] sm:$0xff]  ;;  %v5743_v38 = vcombine.high %v816_v30, %v820_v31 }
 0x3ac   :  { %4029 = vmatprep.mubr.bf16.mxu0 %v7040_v43  ;;  %3986 = vmatprep.subr.bf16.mxu1 %v6093_v49  ;;  %v724_v44 = vld [vmem:[#allocation12 + $0x28] sm:$0xff] }
 0x3ad   :  { %3999 = vmatprep.subr.bf16.mxu0 %v5695_v50  ;;  %v868_v49 = vld [vmem:[#allocation12 + $0x4a8] sm:$0xff]  ;;  %v5798_v50 = vcombine.low %v872_v25, %v876_v12  ;;  %v5647_v51 = vcombine.high %v720_v42, %v724_v44 }
 0x3ae   :  { %v5791_v52 = vcombine.high %v864_v47, %v868_v49  ;;  %v808_v25 = vld [vmem:[#allocation12 + $0x2c8] sm:$0xff] }
 0x3af   :  { %3987 = vmatpush2.bf16.msra.mxu1 %v6092_v54  ;;  %4000 = vmatpush1.bf16.msra.mxu0 %v5694_v56  ;;  %v844_v54 = vld [vmem:[#allocation12 + $0x3e8] sm:$0xff] }
 0x3b0   :  { %4001 = vmatprep.subr.bf16.mxu0 %v5687_v59  ;;  %4038 = vmatprep.subr.bf16.mxu1 %v5831_v6  ;;  %v856_v56 = vld [vmem:[#allocation12 + $0x448] sm:$0xff]  ;;  %v5646_v59 = vcombine.low %v720_v42, %v724_v44  ;;  %v5790_v6 = vcombine.low %v864_v47, %v868_v49  ;;  %v5767_v60 = vcombine.high %v840_v53, %v844_v54 }
 0x3b1   :  { %v5783_v61 = vcombine.high %v856_v56, %v860_v57  ;;  %v5782_v8 = vcombine.low %v856_v56, %v860_v57  ;;  %v812_v12 = vld [vmem:[#allocation12 + $0x2e8] sm:$0xff] }
 0x3b2   :  { %3989 = vmatmul.mubr.bf16.vlgmr.msra.gmra.mxu1 %v7083_v4  ;;  %v5735_v42 = vcombine.high %v808_v25, %v812_v12  ;;  %v800_v47 = vld [vmem:[#allocation12 + $0x288] sm:$0xff] }
 0x3b3   :  { %4002 = vmatpush1.bf16.msra.mxu0 %v5686_v1  ;;  %4039 = vmatpush1.bf16.msra.mxu1 %v5830_v3  ;;  %v848_v1 = vld [vmem:[#allocation12 + $0x408] sm:$0xff] }
 0x3b4   :  { %4070 = vmatprep.mubr.bf16.mxu1 %v7052_v2  ;;  %4003 = vmatprep.subr.bf16.mxu0 %v5679_v7  ;;  %v852_v3 = vld [vmem:[#allocation12 + $0x428] sm:$0xff]  ;;  %v5766_v7 = vcombine.low %v840_v53, %v844_v54 }
 0x3b5   :  { %4040 = vmatprep.subr.bf16.mxu1 %v5823_v9  ;;  %v5759_v9 = vcombine.high %v832_v62, %v836_v63  ;;  %v5775_v10 = vcombine.high %v848_v1, %v852_v3  ;;  %v804_v49 = vld [vmem:[#allocation12 + $0x2a8] sm:$0xff] }
 0x3b6   :  { %v5727_v53 = vcombine.high %v800_v47, %v804_v49  ;;  %v792_v56 = vld [vmem:[#allocation12 + $0x248] sm:$0xff] }
 0x3b7   :  { %4004 = vmatpush1.bf16.msra.mxu0 %v5678_v21  ;;  %4041 = vmatpush1.bf16.msra.mxu1 %v5822_v22  ;;  %v968_v21 = vld [vmem:[#allocation12 + $0x7c8] sm:$0xff] }
 0x3b8   :  { %4005 = vmatprep.subr.bf16.mxu0 %v5671_v23  ;;  %4042 = vmatprep.subr.bf16.mxu1 %v5815_v24  ;;  %v972_v22 = vld [vmem:[#allocation12 + $0x7e8] sm:$0xff]  ;;  %v5758_v23 = vcombine.low %v832_v62, %v836_v63  ;;  %v5774_v24 = vcombine.low %v848_v1, %v852_v3 }
 0x3b9   :  { %v5895_v29 = vcombine.high %v968_v21, %v972_v22  ;;  %v796_v57 = vld [vmem:[#allocation12 + $0x268] sm:$0xff] }
 0x3ba   :  { %v5719_v62 = vcombine.high %v792_v56, %v796_v57  ;;  %v784_v1 = vld [vmem:[#allocation12 + $0x208] sm:$0xff] }
 0x3bb   :  { %4006 = vmatpush1.bf16.msra.mxu0 %v5670_v33  ;;  %4043 = vmatpush1.bf16.msra.mxu1 %v5814_v34  ;;  %v960_v33 = vld [vmem:[#allocation12 + $0x788] sm:$0xff] }
 0x3bc   :  { %4007 = vmatprep.subr.bf16.mxu0 %v5663_v35  ;;  %4044 = vmatprep.subr.bf16.mxu1 %v5807_v36  ;;  %v964_v34 = vld [vmem:[#allocation12 + $0x7a8] sm:$0xff]  ;;  %v5750_v35 = vcombine.low %v824_v14, %v828_v15  ;;  %v5894_v36 = vcombine.low %v968_v21, %v972_v22 }
 0x3bd   :  { %v5887_v11 = vcombine.high %v960_v33, %v964_v34  ;;  %v788_v3 = vld [vmem:[#allocation12 + $0x228] sm:$0xff] }
 0x3be   :  { %v5711_v14 = vcombine.high %v784_v1, %v788_v3  ;;  %v920_v21 = vld [vmem:[#allocation12 + $0x648] sm:$0xff] }
 0x3bf   :  { %4008 = vmatpush1.bf16.msra.mxu0 %v5662_v13  ;;  %4045 = vmatpush1.bf16.msra.mxu1 %v5806_v39  ;;  %v952_v13 = vld [vmem:[#allocation12 + $0x748] sm:$0xff] }
 0x3c0   :  { %4009 = vmatprep.subr.bf16.mxu0 %v5655_v40  ;;  %4046 = vmatprep.subr.bf16.mxu1 %v5799_v41  ;;  %v956_v39 = vld [vmem:[#allocation12 + $0x768] sm:$0xff]  ;;  %v5742_v40 = vcombine.low %v816_v30, %v820_v31  ;;  %v5886_v41 = vcombine.low %v960_v33, %v964_v34 }
 0x3c1   :  { %v5879_v44 = vcombine.high %v952_v13, %v956_v39  ;;  %v924_v22 = vld [vmem:[#allocation12 + $0x668] sm:$0xff] }
 0x3c2   :  { %v5847_v30 = vcombine.high %v920_v21, %v924_v22  ;;  %v912_v33 = vld [vmem:[#allocation12 + $0x608] sm:$0xff] }
 0x3c3   :  { %4010 = vmatpush1.bf16.msra.mxu0 %v5654_v18  ;;  %4047 = vmatpush1.bf16.msra.mxu1 %v5798_v50  ;;  %v944_v18 = vld [vmem:[#allocation12 + $0x708] sm:$0xff] }
 0x3c4   :  { %4011 = vmatprep.subr.bf16.mxu0 %v5647_v51  ;;  %4048 = vmatprep.subr.bf16.mxu1 %v5791_v52  ;;  %v948_v50 = vld [vmem:[#allocation12 + $0x728] sm:$0xff]  ;;  %v5734_v51 = vcombine.low %v808_v25, %v812_v12  ;;  %v5878_v52 = vcombine.low %v952_v13, %v956_v39 }
 0x3c5   :  { %v5871_v54 = vcombine.high %v944_v18, %v948_v50  ;;  %v916_v34 = vld [vmem:[#allocation12 + $0x628] sm:$0xff] }
 0x3c6   :  { %v5839_v25 = vcombine.high %v912_v33, %v916_v34  ;;  %v1016_v12 = vld [vmem:[#allocation12 + $0x948] sm:$0xff] }
 0x3c7   :  { %4012 = vmatpush1.bf16.msra.mxu0 %v5646_v59  ;;  %4049 = vmatpush1.bf16.msra.mxu1 %v5790_v6  ;;  %v936_v59 = vld [vmem:[#allocation12 + $0x6c8] sm:$0xff] }
 0x3c8   :  { %4013 = vmatprep.subr.bf16.mxu0 %v5767_v60  ;;  %4050 = vmatprep.subr.bf16.mxu1 %v5783_v61  ;;  %v940_v6 = vld [vmem:[#allocation12 + $0x6e8] sm:$0xff]  ;;  %v5726_v60 = vcombine.low %v800_v47, %v804_v49  ;;  %v5870_v61 = vcombine.low %v944_v18, %v948_v50 }
 0x3c9   :  { %v5863_v63 = vcombine.high %v936_v59, %v940_v6  ;;  %v1020_v39 = vld [vmem:[#allocation12 + $0x968] sm:$0xff] }
 0x3ca   :  { %v5943_v47 = vcombine.high %v1016_v12, %v1020_v39  ;;  %v1008_v18 = vld [vmem:[#allocation12 + $0x908] sm:$0xff] }
 0x3cb   :  { %4014 = vmatpush2.bf16.msra.mxu0 %v5766_v7  ;;  %4051 = vmatpush1.bf16.msra.mxu1 %v5782_v8  ;;  %v928_v7 = vld [vmem:[#allocation12 + $0x688] sm:$0xff] }
 0x3cc   :  { %4015 = vmatprep.subr.bf16.mxu0 %v5759_v9  ;;  %4052 = vmatprep.subr.bf16.mxu1 %v5775_v10  ;;  %v932_v8 = vld [vmem:[#allocation12 + $0x6a8] sm:$0xff]  ;;  %v5718_v9 = vcombine.low %v792_v56, %v796_v57  ;;  %v5862_v10 = vcombine.low %v936_v59, %v940_v6 }
 0x3cd   :  { %v5855_v15 = vcombine.high %v928_v7, %v932_v8  ;;  %v1012_v50 = vld [vmem:[#allocation12 + $0x928] sm:$0xff] }
 0x3ce   :  { %v5935_v56 = vcombine.high %v1008_v18, %v1012_v50  ;;  %v1000_v57 = vld [vmem:[#allocation12 + $0x8c8] sm:$0xff] }
 0x3cf   :  { %4016 = vmatpush2.bf16.msra.mxu0 %v5758_v23  ;;  %4053 = vmatpush1.bf16.msra.mxu1 %v5774_v24  ;;  %v1032_v23 = vld [vmem:[#allocation12 + $0x9c8] sm:$0xff] }
 0x3d0   :  { %4017 = vmatprep.subr.bf16.mxu0 %v5751_v28  ;;  %4054 = vmatprep.subr.bf16.mxu1 %v5895_v29  ;;  %v1036_v24 = vld [vmem:[#allocation12 + $0x9e8] sm:$0xff]  ;;  %v5710_v28 = vcombine.low %v784_v1, %v788_v3  ;;  %v5854_v29 = vcombine.low %v928_v7, %v932_v8 }
 0x3d1   :  { %v5959_v31 = vcombine.high %v1032_v23, %v1036_v24  ;;  %v1004_v6 = vld [vmem:[#allocation12 + $0x8e8] sm:$0xff] }
 0x3d2   :  { %v5927_v1 = vcombine.high %v1000_v57, %v1004_v6  ;;  %v992_v7 = vld [vmem:[#allocation12 + $0x888] sm:$0xff] }
 0x3d3   :  { %4018 = vmatpush2.bf16.msra.mxu0 %v5750_v35  ;;  %4055 = vmatpush2.bf16.msra.mxu1 %v5894_v36  ;;  %v1024_v35 = vld [vmem:[#allocation12 + $0x988] sm:$0xff] }
 0x3d4   :  { %4019 = vmatprep.subr.bf16.mxu0 %v5743_v38  ;;  %4056 = vmatprep.subr.bf16.mxu1 %v5887_v11  ;;  %v1028_v36 = vld [vmem:[#allocation12 + $0x9a8] sm:$0xff]  ;;  %v5846_v38 = vcombine.low %v920_v21, %v924_v22  ;;  %v5958_v11 = vcombine.low %v1032_v23, %v1036_v24 }
 0x3d5   :  { %v5951_v13 = vcombine.high %v1024_v35, %v1028_v36  ;;  %v996_v8 = vld [vmem:[#allocation12 + $0x8a8] sm:$0xff] }
 0x3d6   :  { %v5919_v21 = vcombine.high %v992_v7, %v996_v8  ;;  %v984_v23 = vld [vmem:[#allocation12 + $0x848] sm:$0xff] }
 0x3d7   :  { %4020 = vmatpush2.bf16.msra.mxu0 %v5742_v40  ;;  %4057 = vmatpush2.bf16.msra.mxu1 %v5886_v41  ;;  %v1160_v40 = vld [vmem:[#allocation12 + $0xdc8] sm:$0xff] }
 0x3d8   :  { %4021 = vmatprep.subr.bf16.mxu0 %v5735_v42  ;;  %4058 = vmatprep.subr.bf16.mxu1 %v5879_v44  ;;  %v1164_v41 = vld [vmem:[#allocation12 + $0xde8] sm:$0xff]  ;;  %v5838_v42 = vcombine.low %v912_v33, %v916_v34  ;;  %v5950_v44 = vcombine.low %v1024_v35, %v1028_v36 }
 0x3d9   :  { %v6087_v49 = vcombine.high %v1160_v40, %v1164_v41  ;;  %v988_v24 = vld [vmem:[#allocation12 + $0x868] sm:$0xff] }
 0x3da   :  { %v5911_v33 = vcombine.high %v984_v23, %v988_v24  ;;  %v976_v35 = vld [vmem:[#allocation12 + $0x808] sm:$0xff] }
 0x3db   :  { %4022 = vmatpush2.bf16.msra.mxu0 %v5734_v51  ;;  %4059 = vmatpush2.bf16.msra.mxu1 %v5878_v52  ;;  %v1152_v51 = vld [vmem:[#allocation12 + $0xd88] sm:$0xff] }
 0x3dc   :  { %4023 = vmatprep.subr.bf16.mxu0 %v5727_v53  ;;  %4060 = vmatprep.subr.bf16.mxu1 %v5871_v54  ;;  %v1156_v52 = vld [vmem:[#allocation12 + $0xda8] sm:$0xff]  ;;  %v5942_v53 = vcombine.low %v1016_v12, %v1020_v39  ;;  %v6086_v54 = vcombine.low %v1160_v40, %v1164_v41 }
 0x3dd   :  { %v6079_v59 = vcombine.high %v1152_v51, %v1156_v52  ;;  %v980_v36 = vld [vmem:[#allocation12 + $0x828] sm:$0xff] }
 0x3de   :  { %v1096_v40 = vld [vmem:[#allocation12 + $0xbc8] sm:$0xff] }
 0x3df   :  { %4024 = vmatpush2.bf16.msra.mxu0 %v5726_v60  ;;  %4061 = vmatpush2.bf16.msra.mxu1 %v5870_v61  ;;  %v1144_v60 = vld [vmem:[#allocation12 + $0xd48] sm:$0xff] }
 0x3e0   :  { %4025 = vmatprep.subr.bf16.mxu0 %v5719_v62  ;;  %4062 = vmatprep.subr.bf16.mxu1 %v5863_v63  ;;  %v1148_v61 = vld [vmem:[#allocation12 + $0xd68] sm:$0xff]  ;;  %v5934_v62 = vcombine.low %v1008_v18, %v1012_v50  ;;  %v6078_v63 = vcombine.low %v1152_v51, %v1156_v52 }
 0x3e1   :  { %v6071_v3 = vcombine.high %v1144_v60, %v1148_v61  ;;  %v1100_v41 = vld [vmem:[#allocation12 + $0xbe8] sm:$0xff] }
 0x3e2   :  { %v6023_v18 = vcombine.high %v1096_v40, %v1100_v41  ;;  %v1088_v51 = vld [vmem:[#allocation12 + $0xb88] sm:$0xff] }
 0x3e3   :  { %4026 = vmatpush2.bf16.msra.mxu0 %v5718_v9  ;;  %4063 = vmatpush2.bf16.msra.mxu1 %v5862_v10  ;;  %v1136_v9 = vld [vmem:[#allocation12 + $0xd08] sm:$0xff] }
 0x3e4   :  { %4027 = vmatprep.subr.bf16.mxu0 %v5711_v14  ;;  %4064 = vmatprep.subr.bf16.mxu1 %v5855_v15  ;;  %v1140_v10 = vld [vmem:[#allocation12 + $0xd28] sm:$0xff]  ;;  %v5926_v14 = vcombine.low %v1000_v57, %v1004_v6  ;;  %v6070_v15 = vcombine.low %v1144_v60, %v1148_v61 }
 0x3e5   :  { %v6063_v22 = vcombine.high %v1136_v9, %v1140_v10  ;;  %v1092_v52 = vld [vmem:[#allocation12 + $0xba8] sm:$0xff] }
 0x3e6   :  { %v1080_v60 = vld [vmem:[#allocation12 + $0xb48] sm:$0xff] }
 0x3e7   :  { %4028 = vmatpush2.bf16.msra.mxu0 %v5710_v28  ;;  %4065 = vmatpush2.bf16.msra.mxu1 %v5854_v29  ;;  %v1128_v28 = vld [vmem:[#allocation12 + $0xcc8] sm:$0xff] }
 0x3e8   :  { %4066 = vmatprep.subr.bf16.mxu1 %v5847_v30  ;;  %4079 = vmatprep.subr.bf16.mxu0 %v5959_v31  ;;  %v1132_v29 = vld [vmem:[#allocation12 + $0xce8] sm:$0xff]  ;;  %v5918_v30 = vcombine.low %v992_v7, %v996_v8  ;;  %v6062_v31 = vcombine.low %v1136_v9, %v1140_v10 }
 0x3e9   :  { %v6055_v34 = vcombine.high %v1128_v28, %v1132_v29  ;;  %v6054_v12 = vcombine.low %v1128_v28, %v1132_v29  ;;  %v1084_v61 = vld [vmem:[#allocation12 + $0xb68] sm:$0xff] }
 0x3ea   :  { %4030 = vmatmul.mubr.bf16.vlgmr.msra.gmra.mxu0 %v7044_v45  ;;  %v6007_v7 = vcombine.high %v1080_v60, %v1084_v61  ;;  %v1072_v9 = vld [vmem:[#allocation12 + $0xb08] sm:$0xff] }
 0x3eb   :  { %4067 = vmatpush2.bf16.msra.mxu1 %v5846_v38  ;;  %4080 = vmatpush1.bf16.msra.mxu0 %v5958_v11  ;;  %v1120_v38 = vld [vmem:[#allocation12 + $0xc88] sm:$0xff] }
 0x3ec   :  { %4111 = vmatprep.mubr.bf16.mxu0 %v7046_v48  ;;  %4068 = vmatprep.subr.bf16.mxu1 %v5839_v25  ;;  %v1124_v11 = vld [vmem:[#allocation12 + $0xca8] sm:$0xff]  ;;  %v5910_v25 = vcombine.low %v984_v23, %v988_v24 }
 0x3ed   :  { %4081 = vmatprep.subr.bf16.mxu0 %v5951_v13  ;;  %v5903_v13 = vcombine.high %v976_v35, %v980_v36  ;;  %v6047_v39 = vcombine.high %v1120_v38, %v1124_v11  ;;  %v1076_v10 = vld [vmem:[#allocation12 + $0xb28] sm:$0xff] }
 0x3ee   :  { %v5999_v23 = vcombine.high %v1072_v9, %v1076_v10  ;;  %v1064_v28 = vld [vmem:[#allocation12 + $0xac8] sm:$0xff] }
 0x3ef   :  { %4069 = vmatpush2.bf16.msra.mxu1 %v5838_v42  ;;  %4082 = vmatpush1.bf16.msra.mxu0 %v5950_v44  ;;  %v1112_v42 = vld [vmem:[#allocation12 + $0xc48] sm:$0xff] }
 0x3f0   :  { %4083 = vmatprep.subr.bf16.mxu0 %v5943_v47  ;;  %4120 = vmatprep.subr.bf16.mxu1 %v6087_v49  ;;  %v1116_v44 = vld [vmem:[#allocation12 + $0xc68] sm:$0xff]  ;;  %v5902_v47 = vcombine.low %v976_v35, %v980_v36  ;;  %v6046_v49 = vcombine.low %v1120_v38, %v1124_v11 }
 0x3f1   :  { %v6039_v50 = vcombine.high %v1112_v42, %v1116_v44  ;;  %v6038_v57 = vcombine.low %v1112_v42, %v1116_v44  ;;  %v1068_v29 = vld [vmem:[#allocation12 + $0xae8] sm:$0xff] }
 0x3f2   :  { %4071 = vmatmul.mubr.bf16.vlgmr.msra.gmra.mxu1 %v7057_v5  ;;  %v5991_v35 = vcombine.high %v1064_v28, %v1068_v29  ;;  %v1056_v38 = vld [vmem:[#allocation12 + $0xa88] sm:$0xff] }
 0x3f3   :  { %4084 = vmatpush1.bf16.msra.mxu0 %v5942_v53  ;;  %4121 = vmatpush1.bf16.msra.mxu1 %v6086_v54  ;;  %v1104_v53 = vld [vmem:[#allocation12 + $0xc08] sm:$0xff] }
 0x3f4   :  { %4152 = vmatprep.mubr.bf16.mxu1 %v7066_v37  ;;  %4085 = vmatprep.subr.bf16.mxu0 %v5935_v56  ;;  %v1108_v54 = vld [vmem:[#allocation12 + $0xc28] sm:$0xff]  ;;  %v6022_v56 = vcombine.low %v1096_v40, %v1100_v41 }
 0x3f5   :  { %4122 = vmatprep.subr.bf16.mxu1 %v6079_v59  ;;  %v6015_v59 = vcombine.high %v1088_v51, %v1092_v52  ;;  %v6031_v6 = vcombine.high %v1104_v53, %v1108_v54  ;;  %v1060_v11 = vld [vmem:[#allocation12 + $0xaa8] sm:$0xff] }
 0x3f6   :  { %v5983_v40 = vcombine.high %v1056_v38, %v1060_v11  ;;  %v1048_v42 = vld [vmem:[#allocation12 + $0xa48] sm:$0xff] }
 0x3f7   :  { %4086 = vmatpush1.bf16.msra.mxu0 %v5934_v62  ;;  %4123 = vmatpush1.bf16.msra.mxu1 %v6078_v63  ;;  %v1224_v62 = vld [vmem:[#allocation12 + $0xfc8] sm:$0xff] }
 0x3f8   :  { %4087 = vmatprep.subr.bf16.mxu0 %v5927_v1  ;;  %4124 = vmatprep.subr.bf16.mxu1 %v6071_v3  ;;  %v1228_v63 = vld [vmem:[#allocation12 + $0xfe8] sm:$0xff]  ;;  %v6014_v1 = vcombine.low %v1088_v51, %v1092_v52  ;;  %v6030_v3 = vcombine.low %v1104_v53, %v1108_v54 }
 0x3f9   :  { %v6151_v8 = vcombine.high %v1224_v62, %v1228_v63  ;;  %v1052_v44 = vld [vmem:[#allocation12 + $0xa68] sm:$0xff] }
 0x3fa   :  { %v5975_v51 = vcombine.high %v1048_v42, %v1052_v44  ;;  %v1040_v53 = vld [vmem:[#allocation12 + $0xa08] sm:$0xff] }
 0x3fb   :  { %4088 = vmatpush1.bf16.msra.mxu0 %v5926_v14  ;;  %4125 = vmatpush1.bf16.msra.mxu1 %v6070_v15  ;;  %v1216_v14 = vld [vmem:[#allocation12 + $0xf88] sm:$0xff] }
 0x3fc   :  { %4089 = vmatprep.subr.bf16.mxu0 %v5919_v21  ;;  %4126 = vmatprep.subr.bf16.mxu1 %v6063_v22  ;;  %v1220_v15 = vld [vmem:[#allocation12 + $0xfa8] sm:$0xff]  ;;  %v6006_v21 = vcombine.low %v1080_v60, %v1084_v61  ;;  %v6150_v22 = vcombine.low %v1224_v62, %v1228_v63 }
 0x3fd   :  { %v6143_v24 = vcombine.high %v1216_v14, %v1220_v15  ;;  %v1044_v54 = vld [vmem:[#allocation12 + $0xa28] sm:$0xff] }
 0x3fe   :  { %v5967_v60 = vcombine.high %v1040_v53, %v1044_v54  ;;  %v1176_v62 = vld [vmem:[#allocation12 + $0xe48] sm:$0xff] }
 0x3ff   :  { %4090 = vmatpush1.bf16.msra.mxu0 %v5918_v30  ;;  %4127 = vmatpush1.bf16.msra.mxu1 %v6062_v31  ;;  %v1208_v30 = vld [vmem:[#allocation12 + $0xf48] sm:$0xff] }
 0x400   :  { %4091 = vmatprep.subr.bf16.mxu0 %v5911_v33  ;;  %4128 = vmatprep.subr.bf16.mxu1 %v6055_v34  ;;  %v1212_v31 = vld [vmem:[#allocation12 + $0xf68] sm:$0xff]  ;;  %v5998_v33 = vcombine.low %v1072_v9, %v1076_v10  ;;  %v6142_v34 = vcombine.low %v1216_v14, %v1220_v15 }
 0x401   :  { %v6135_v36 = vcombine.high %v1208_v30, %v1212_v31  ;;  %v1180_v63 = vld [vmem:[#allocation12 + $0xe68] sm:$0xff] }
 0x402   :  { %v6103_v9 = vcombine.high %v1176_v62, %v1180_v63  ;;  %v1168_v14 = vld [vmem:[#allocation12 + $0xe08] sm:$0xff] }
 0x403   :  { %4092 = vmatpush1.bf16.msra.mxu0 %v5910_v25  ;;  %4129 = vmatpush1.bf16.msra.mxu1 %v6054_v12  ;;  %v1200_v25 = vld [vmem:[#allocation12 + $0xf08] sm:$0xff] }
 0x404   :  { %4093 = vmatprep.subr.bf16.mxu0 %v5903_v13  ;;  %4130 = vmatprep.subr.bf16.mxu1 %v6047_v39  ;;  %v1204_v12 = vld [vmem:[#allocation12 + $0xf28] sm:$0xff]  ;;  %v5990_v13 = vcombine.low %v1064_v28, %v1068_v29  ;;  %v6134_v39 = vcombine.low %v1208_v30, %v1212_v31  ;;  %v761_v29 = vld [vmem:[#allocation12 + $0x150] sm:$0xff] }
 0x405   :  { %v6127_v41 = vcombine.high %v1200_v25, %v1204_v12  ;;  %v1172_v15 = vld [vmem:[#allocation12 + $0xe28] sm:$0xff]  ;;  %v765_v31 = vld [vmem:[#allocation12 + $0x170] sm:$0xff] }
 0x406   :  { %v6095_v28 = vcombine.high %v1168_v14, %v1172_v15 }
 0x407   :  { %4094 = vmatpush1.bf16.msra.mxu0 %v5902_v47  ;;  %4131 = vmatpush1.bf16.msra.mxu1 %v6046_v49  ;;  %v1192_v47 = vld [vmem:[#allocation12 + $0xec8] sm:$0xff] }
 0x408   :  { %4095 = vmatprep.subr.bf16.mxu0 %v6023_v18  ;;  %4132 = vmatprep.subr.bf16.mxu1 %v6039_v50  ;;  %v1196_v49 = vld [vmem:[#allocation12 + $0xee8] sm:$0xff]  ;;  %v5982_v18 = vcombine.low %v1056_v38, %v1060_v11  ;;  %v6126_v50 = vcombine.low %v1200_v25, %v1204_v12  ;;  %v6094_v38 = vcombine.low %v1168_v14, %v1172_v15  ;;  %v741_v14 = vld [vmem:[#allocation12 + $0xb0] sm:$0xff] }
 0x409   :  { %v6119_v52 = vcombine.high %v1192_v47, %v1196_v49  ;;  %v5689_v12 = vcombine.high %v761_v29, %v765_v31  ;;  %v881_v15 = vld [vmem:[#allocation12 + $0x510] sm:$0xff] }
 0x40b   :  { %4096 = vmatpush2.bf16.msra.mxu0 %v6022_v56  ;;  %4133 = vmatpush1.bf16.msra.mxu1 %v6038_v57  ;;  %v1184_v56 = vld [vmem:[#allocation12 + $0xe88] sm:$0xff] }
 0x40c   :  { %4097 = vmatprep.subr.bf16.mxu0 %v6015_v59  ;;  %4134 = vmatprep.subr.bf16.mxu1 %v6031_v6  ;;  %v1188_v57 = vld [vmem:[#allocation12 + $0xea8] sm:$0xff]  ;;  %v5974_v59 = vcombine.low %v1048_v42, %v1052_v44  ;;  %v6118_v6 = vcombine.low %v1192_v47, %v1196_v49  ;;  %v897_v44 = vld [vmem:[#allocation12 + $0x590] sm:$0xff] }
 0x40d   :  { %v6111_v61 = vcombine.high %v1184_v56, %v1188_v57  ;;  %v901_v47 = vld [vmem:[#allocation12 + $0x5b0] sm:$0xff] }
 0x40f   :  { %4098 = vmatpush2.bf16.msra.mxu0 %v6014_v1  ;;  %4135 = vmatpush1.bf16.msra.mxu1 %v6030_v3  ;;  %v777_v1 = vld [vmem:[#allocation12 + $0x1d0] sm:$0xff] }
 0x410   :  { %4099 = vmatprep.subr.bf16.mxu0 %v6007_v7  ;;  %4136 = vmatprep.subr.bf16.mxu1 %v6151_v8  ;;  %v781_v3 = vld [vmem:[#allocation12 + $0x1f0] sm:$0xff]  ;;  %v5966_v7 = vcombine.low %v1040_v53, %v1044_v54  ;;  %v6110_v8 = vcombine.low %v1184_v56, %v1188_v57  ;;  %v5825_v56 = vcombine.high %v897_v44, %v901_v47 }
 0x411   :  { %v5705_v10 = vcombine.high %v777_v1, %v781_v3  ;;  %v745_v53 = vld [vmem:[#allocation12 + $0xd0] sm:$0xff] }
 0x412   :  { %v749_v57 = vld [vmem:[#allocation12 + $0xf0] sm:$0xff] }
 0x413   :  { %4100 = vmatpush2.bf16.msra.mxu0 %v6006_v21  ;;  %4137 = vmatpush2.bf16.msra.mxu1 %v6150_v22  ;;  %v769_v21 = vld [vmem:[#allocation12 + $0x190] sm:$0xff] }
 0x414   :  { %4101 = vmatprep.subr.bf16.mxu0 %v5999_v23  ;;  %4138 = vmatprep.subr.bf16.mxu1 %v6143_v24  ;;  %v773_v22 = vld [vmem:[#allocation12 + $0x1b0] sm:$0xff]  ;;  %v6102_v23 = vcombine.low %v1176_v62, %v1180_v63  ;;  %v5704_v24 = vcombine.low %v777_v1, %v781_v3  ;;  %v5824_v1 = vcombine.low %v897_v44, %v901_v47 }
 0x415   :  { %v5697_v30 = vcombine.high %v769_v21, %v773_v22  ;;  %v5696_v11 = vcombine.low %v769_v21, %v773_v22  ;;  %v885_v21 = vld [vmem:[#allocation12 + $0x530] sm:$0xff] }
 0x417   :  { %4102 = vmatpush2.bf16.msra.mxu0 %v5998_v33  ;;  %4139 = vmatpush2.bf16.msra.mxu1 %v6142_v34  ;;  %v905_v33 = vld [vmem:[#allocation12 + $0x5d0] sm:$0xff] }
 0x418   :  { %4103 = vmatprep.subr.bf16.mxu0 %v5991_v35  ;;  %4140 = vmatprep.subr.bf16.mxu1 %v6135_v36  ;;  %v909_v34 = vld [vmem:[#allocation12 + $0x5f0] sm:$0xff]  ;;  %v7092_v35 = vld [vmem:[#allocation13] sm:$0xff] }
 0x419   :  { %v1240_v49 = vrot.slane %v7092_v35, %v7020_v19 }
 0x41b   :  { %4104 = vmatpush2.bf16.msra.mxu0 %v5990_v13  ;;  %4141 = vmatpush2.bf16.msra.mxu1 %v6134_v39  ;;  %v5833_v13 = vcombine.high %v905_v33, %v909_v34  ;;  %v1236_v39 = vrot.slane %v7092_v35, %v7015_v17 }
 0x41c   :  { %4105 = vmatprep.subr.bf16.mxu0 %v5983_v40  ;;  %4142 = vmatprep.subr.bf16.mxu1 %v6127_v41  ;;  %v753_v40 = vld [vmem:[#allocation12 + $0x110] sm:$0xff] }
 0x41d   :  { %v757_v41 = vld [vmem:[#allocation12 + $0x130] sm:$0xff] }
 0x41f   :  { %4106 = vmatpush2.bf16.msra.mxu0 %v5982_v18  ;;  %4143 = vmatpush2.bf16.msra.mxu1 %v6126_v50  ;;  %v5688_v18 = vcombine.low %v761_v29, %v765_v31  ;;  %v5832_v50 = vcombine.low %v905_v33, %v909_v34  ;;  %v729_v31 = vld [vmem:[#allocation12 + $0x50] sm:$0xff] }
 0x420   :  { %4107 = vmatprep.subr.bf16.mxu0 %v5975_v51  ;;  %4144 = vmatprep.subr.bf16.mxu1 %v6119_v52  ;;  %v5681_v52 = vcombine.high %v753_v40, %v757_v41  ;;  %v733_v33 = vld [vmem:[#allocation12 + $0x70] sm:$0xff] }
 0x421   :  { %v873_v34 = vld [vmem:[#allocation12 + $0x4d0] sm:$0xff] }
 0x423   :  { %4108 = vmatpush2.bf16.msra.mxu0 %v5974_v59  ;;  %4145 = vmatpush2.bf16.msra.mxu1 %v6118_v6  ;;  %v889_v59 = vld [vmem:[#allocation12 + $0x550] sm:$0xff] }
 0x424   :  { %4109 = vmatprep.subr.bf16.mxu0 %v5967_v60  ;;  %4146 = vmatprep.subr.bf16.mxu1 %v6111_v61  ;;  %v893_v6 = vld [vmem:[#allocation12 + $0x570] sm:$0xff]  ;;  %v5680_v61 = vcombine.low %v753_v40, %v757_v41 }
 0x425   :  { %v865_v40 = vld [vmem:[#allocation12 + $0x490] sm:$0xff] }
 0x426   :  { %v869_v41 = vld [vmem:[#allocation12 + $0x4b0] sm:$0xff] }
 0x427   :  { %4110 = vmatpush2.bf16.msra.mxu0 %v5966_v7  ;;  %4147 = vmatpush2.bf16.msra.mxu1 %v6110_v8  ;;  %v5673_v7 = vcombine.high %v745_v53, %v749_v57  ;;  %v5817_v8 = vcombine.high %v889_v59, %v893_v6 }
 0x428   :  { %4148 = vmatprep.subr.bf16.mxu1 %v6103_v9  ;;  %4161 = vmatprep.subr.bf16.mxu0 %v5705_v10  ;;  %v737_v9 = vld [vmem:[#allocation12 + $0x90] sm:$0xff] }
 0x429   :  { %v5665_v29 = vcombine.high %v737_v9, %v741_v14 }
 0x42a   :  { %4112 = vmatmul.mubr.bf16.vlgmr.msra.gmra.mxu0 %v7078_v46  ;;  %v3867_v36 = vpop.f32.mrf.mxu0 }
 0x42b   :  { %4149 = vmatpush2.bf16.msra.mxu1 %v6102_v23  ;;  %4162 = vmatpush1.bf16.msra.mxu0 %v5704_v24  ;;  %v3868_v54 = vadd.f32 %v3867_v36, %v1236_v39  ;;  %v5672_v23 = vcombine.low %v745_v53, %v749_v57  ;;  %v5816_v24 = vcombine.low %v889_v59, %v893_v6  ;;  %v877_v36 = vld [vmem:[#allocation12 + $0x4f0] sm:$0xff] }
 0x42c   :  { %4193 = vmatprep.mubr.bf16.mxu0 %v7040_v43  ;;  %v3869_v25 = vpop.f32.mrf.mxu0  ;;  %4150 = vmatprep.subr.bf16.mxu1 %v6095_v28  ;;  %v725_v39 = vld [vmem:[#allocation12 + $0x30] sm:$0xff]  ;;  %v5800_v44 = vcombine.low %v873_v34, %v877_v36 }
 0x42d   :  { %4163 = vmatprep.subr.bf16.mxu0 %v5697_v30  ;;  %v3870_v62 = vadd.f32 %v3869_v25, %v1240_v49  ;;  %v5809_v30 = vcombine.high %v881_v15, %v885_v21  ;;  %v5657_v25 = vcombine.high %v729_v31, %v733_v33  ;;  %v5793_v49 = vcombine.high %v865_v40, %v869_v41  ;;  %v833_v59 = vld [vmem:[#allocation12 + $0x390] sm:$0xff] }
 0x42e   :  { %v3871_v42 = vpop.f32.mrf.mxu0  ;;  %v837_v6 = vld [vmem:[#allocation12 + $0x3b0] sm:$0xff] }
 0x42f   :  { %4151 = vmatpush2.bf16.msra.mxu1 %v6094_v38  ;;  %4164 = vmatpush1.bf16.msra.mxu0 %v5696_v11  ;;  %v5664_v38 = vcombine.low %v737_v9, %v741_v14  ;;  %v5808_v11 = vcombine.low %v881_v15, %v885_v21  ;;  %v5656_v42 = vcombine.low %v729_v31, %v733_v33  ;;  %v829_v9 = vld [vmem:[#allocation12 + $0x370] sm:$0xff] }
 0x430   :  { %v3872_v51 = vpop.f32.mrf.mxu0  ;;  %4165 = vmatprep.subr.bf16.mxu0 %v5689_v12  ;;  %4202 = vmatprep.subr.bf16.mxu1 %v5833_v13  ;;  %v5801_v12 = vcombine.high %v873_v34, %v877_v36  ;;  %v721_v13 = vld [vmem:[#allocation12 + $0x10] sm:$0xff]  ;;  %v5760_v21 = vcombine.low %v833_v59, %v837_v6 }
 0x431   :  { %v5649_v47 = vcombine.high %v721_v13, %v725_v39  ;;  %v857_v51 = vld [vmem:[#allocation12 + $0x450] sm:$0xff]  ;;  %v5648_v53 = vcombine.low %v721_v13, %v725_v39 }
 0x432   :  { %4153 = vmatmul.mubr.bf16.vlgmr.msra.gmra.mxu1 %v7083_v4  ;;  %v3908_v60 = vpop.f32.mrf.mxu1  ;;  %v969_v14 = vld [vmem:[#allocation12 + $0x7d0] sm:$0xff] }
 0x433   :  { %v7100_v63 = vadd.f32 %v3908_v60, %v3868_v54  ;;  %4166 = vmatpush1.bf16.msra.mxu0 %v5688_v18  ;;  %4203 = vmatpush1.bf16.msra.mxu1 %v5832_v50  ;;  %v841_v18 = vld [vmem:[#allocation12 + $0x3d0] sm:$0xff]  ;;  %v5792_v54 = vcombine.low %v865_v40, %v869_v41 }
 0x434   :  { %4234 = vmatprep.mubr.bf16.mxu1 %v7052_v2  ;;  %v3910_v3 = vpop.f32.mrf.mxu1  ;;  %4167 = vmatprep.subr.bf16.mxu0 %v5681_v52  ;;  %v845_v50 = vld [vmem:[#allocation12 + $0x3f0] sm:$0xff] }
 0x435   :  { %v7103_v10 = vadd.f32 %v3910_v3, %v3870_v62  ;;  %4204 = vmatprep.subr.bf16.mxu1 %v5825_v56  ;;  %v861_v52 = vld [vmem:[#allocation12 + $0x470] sm:$0xff]  ;;  %v5769_v56 = vcombine.high %v841_v18, %v845_v50  ;;  %v5768_v62 = vcombine.low %v841_v18, %v845_v50  ;;  %v5761_v3 = vcombine.high %v833_v59, %v837_v6 }
 0x436   :  { %v3912_v22 = vpop.f32.mrf.mxu1  ;;  %v5785_v57 = vcombine.high %v857_v51, %v861_v52  ;;  %v849_v60 = vld [vmem:[#allocation12 + $0x410] sm:$0xff] }
 0x437   :  { %4168 = vmatpush1.bf16.msra.mxu0 %v5680_v61  ;;  %4205 = vmatpush1.bf16.msra.mxu1 %v5824_v1  ;;  %v853_v61 = vld [vmem:[#allocation12 + $0x430] sm:$0xff]  ;;  %v5784_v1 = vcombine.low %v857_v51, %v861_v52 }
 0x438   :  { %v3913_v28 = vpop.f32.mrf.mxu1  ;;  %4169 = vmatprep.subr.bf16.mxu0 %v5673_v7  ;;  %4206 = vmatprep.subr.bf16.mxu1 %v5817_v8  ;;  %v5777_v7 = vcombine.high %v849_v60, %v853_v61  ;;  %v825_v8 = vld [vmem:[#allocation12 + $0x350] sm:$0xff]  ;;  %v5776_v22 = vcombine.low %v849_v60, %v853_v61 }
 0x439   :  { %v973_v15 = vld [vmem:[#allocation12 + $0x7f0] sm:$0xff]  ;;  %v5752_v33 = vcombine.low %v825_v8, %v829_v9 }
 0x43a   :  { %v817_v28 = vld [vmem:[#allocation12 + $0x310] sm:$0xff]  ;;  %v5896_v34 = vcombine.low %v969_v14, %v973_v15 }
 0x43b   :  { %4170 = vmatpush1.bf16.msra.mxu0 %v5672_v23  ;;  %4207 = vmatpush1.bf16.msra.mxu1 %v5816_v24  ;;  %v5753_v23 = vcombine.high %v825_v8, %v829_v9  ;;  %v5897_v24 = vcombine.high %v969_v14, %v973_v15  ;;  %v965_v31 = vld [vmem:[#allocation12 + $0x7b0] sm:$0xff] }
 0x43c   :  { %4171 = vmatprep.subr.bf16.mxu0 %v5665_v29  ;;  %4208 = vmatprep.subr.bf16.mxu1 %v5809_v30  ;;  %v821_v29 = vld [vmem:[#allocation12 + $0x330] sm:$0xff] }
 0x43d   :  { %v961_v30 = vld [vmem:[#allocation12 + $0x790] sm:$0xff]  ;;  %v5745_v36 = vcombine.high %v817_v28, %v821_v29  ;;  %v5744_v39 = vcombine.low %v817_v28, %v821_v29 }
 0x43e   :  { %v957_v13 = vld [vmem:[#allocation12 + $0x770] sm:$0xff]  ;;  %v5888_v40 = vcombine.low %v961_v30, %v965_v31 }
 0x43f   :  { %4172 = vmatpush1.bf16.msra.mxu0 %v5664_v38  ;;  %4209 = vmatpush1.bf16.msra.mxu1 %v5808_v11  ;;  %v5889_v38 = vcombine.high %v961_v30, %v965_v31  ;;  %v809_v11 = vld [vmem:[#allocation12 + $0x2d0] sm:$0xff] }
 0x440   :  { %4173 = vmatprep.subr.bf16.mxu0 %v5657_v25  ;;  %4210 = vmatprep.subr.bf16.mxu1 %v5801_v12  ;;  %v813_v25 = vld [vmem:[#allocation12 + $0x2f0] sm:$0xff] }
 0x441   :  { %v953_v12 = vld [vmem:[#allocation12 + $0x750] sm:$0xff]  ;;  %v5737_v41 = vcombine.high %v809_v11, %v813_v25  ;;  %v5736_v50 = vcombine.low %v809_v11, %v813_v25 }
 0x442   :  { %v949_v18 = vld [vmem:[#allocation12 + $0x730] sm:$0xff]  ;;  %v5880_v51 = vcombine.low %v953_v12, %v957_v13 }
 0x443   :  { %4174 = vmatpush1.bf16.msra.mxu0 %v5656_v42  ;;  %4211 = vmatpush1.bf16.msra.mxu1 %v5800_v44  ;;  %v5881_v42 = vcombine.high %v953_v12, %v957_v13  ;;  %v801_v44 = vld [vmem:[#allocation12 + $0x290] sm:$0xff] }
 0x444   :  { %4175 = vmatprep.subr.bf16.mxu0 %v5649_v47  ;;  %4212 = vmatprep.subr.bf16.mxu1 %v5793_v49  ;;  %v805_v47 = vld [vmem:[#allocation12 + $0x2b0] sm:$0xff] }
 0x445   :  { %v945_v49 = vld [vmem:[#allocation12 + $0x710] sm:$0xff]  ;;  %v5729_v52 = vcombine.high %v801_v44, %v805_v47  ;;  %v5728_v6 = vcombine.low %v801_v44, %v805_v47 }
 0x446   :  { %v941_v59 = vld [vmem:[#allocation12 + $0x6f0] sm:$0xff]  ;;  %v5872_v60 = vcombine.low %v945_v49, %v949_v18 }
 0x447   :  { %4176 = vmatpush1.bf16.msra.mxu0 %v5648_v53  ;;  %4213 = vmatpush1.bf16.msra.mxu1 %v5792_v54  ;;  %v5873_v53 = vcombine.high %v945_v49, %v949_v18  ;;  %v793_v54 = vld [vmem:[#allocation12 + $0x250] sm:$0xff] }
 0x448   :  { %4177 = vmatprep.subr.bf16.mxu0 %v5769_v56  ;;  %4214 = vmatprep.subr.bf16.mxu1 %v5785_v57  ;;  %v797_v56 = vld [vmem:[#allocation12 + $0x270] sm:$0xff] }
 0x449   :  { %v937_v57 = vld [vmem:[#allocation12 + $0x6d0] sm:$0xff]  ;;  %v5721_v61 = vcombine.high %v793_v54, %v797_v56  ;;  %v5720_v9 = vcombine.low %v793_v54, %v797_v56 }
 0x44a   :  { %v933_v8 = vld [vmem:[#allocation12 + $0x6b0] sm:$0xff]  ;;  %v5864_v14 = vcombine.low %v937_v57, %v941_v59 }
 0x44b   :  { %4178 = vmatpush2.bf16.msra.mxu0 %v5768_v62  ;;  %4215 = vmatpush1.bf16.msra.mxu1 %v5784_v1  ;;  %v5865_v62 = vcombine.high %v937_v57, %v941_v59  ;;  %v785_v1 = vld [vmem:[#allocation12 + $0x210] sm:$0xff] }
 0x44c   :  { %4179 = vmatprep.subr.bf16.mxu0 %v5761_v3  ;;  %4216 = vmatprep.subr.bf16.mxu1 %v5777_v7  ;;  %v789_v3 = vld [vmem:[#allocation12 + $0x230] sm:$0xff] }
 0x44d   :  { %v929_v7 = vld [vmem:[#allocation12 + $0x690] sm:$0xff]  ;;  %v5713_v15 = vcombine.high %v785_v1, %v789_v3  ;;  %v5712_v29 = vcombine.low %v785_v1, %v789_v3 }
 0x44e   :  { %v1037_v28 = vld [vmem:[#allocation12 + $0x9f0] sm:$0xff]  ;;  %v5856_v30 = vcombine.low %v929_v7, %v933_v8 }
 0x44f   :  { %4180 = vmatpush2.bf16.msra.mxu0 %v5760_v21  ;;  %4217 = vmatpush1.bf16.msra.mxu1 %v5776_v22  ;;  %v5857_v21 = vcombine.high %v929_v7, %v933_v8  ;;  %v921_v22 = vld [vmem:[#allocation12 + $0x650] sm:$0xff] }
 0x450   :  { %4181 = vmatprep.subr.bf16.mxu0 %v5753_v23  ;;  %4218 = vmatprep.subr.bf16.mxu1 %v5897_v24  ;;  %v925_v23 = vld [vmem:[#allocation12 + $0x670] sm:$0xff] }
 0x451   :  { %v1033_v24 = vld [vmem:[#allocation12 + $0x9d0] sm:$0xff]  ;;  %v5849_v31 = vcombine.high %v921_v22, %v925_v23  ;;  %v5848_v25 = vcombine.low %v921_v22, %v925_v23 }
 0x452   :  { %v1029_v11 = vld [vmem:[#allocation12 + $0x9b0] sm:$0xff]  ;;  %v5960_v12 = vcombine.low %v1033_v24, %v1037_v28 }
 0x453   :  { %4182 = vmatpush2.bf16.msra.mxu0 %v5752_v33  ;;  %4219 = vmatpush2.bf16.msra.mxu1 %v5896_v34  ;;  %v5961_v33 = vcombine.high %v1033_v24, %v1037_v28  ;;  %v913_v34 = vld [vmem:[#allocation12 + $0x610] sm:$0xff] }
 0x454   :  { %4183 = vmatprep.subr.bf16.mxu0 %v5745_v36  ;;  %4220 = vmatprep.subr.bf16.mxu1 %v5889_v38  ;;  %v917_v36 = vld [vmem:[#allocation12 + $0x630] sm:$0xff] }
 0x455   :  { %v1025_v38 = vld [vmem:[#allocation12 + $0x990] sm:$0xff]  ;;  %v5841_v13 = vcombine.high %v913_v34, %v917_v36  ;;  %v5840_v18 = vcombine.low %v913_v34, %v917_v36 }
 0x456   :  { %v1165_v44 = vld [vmem:[#allocation12 + $0xdf0] sm:$0xff] }
 0x457   :  { %4184 = vmatpush2.bf16.msra.mxu0 %v5744_v39  ;;  %4221 = vmatpush2.bf16.msra.mxu1 %v5888_v40  ;;  %v1017_v39 = vld [vmem:[#allocation12 + $0x950] sm:$0xff]  ;;  %v5953_v40 = vcombine.high %v1025_v38, %v1029_v11 }
 0x458   :  { %4185 = vmatprep.subr.bf16.mxu0 %v5737_v41  ;;  %4222 = vmatprep.subr.bf16.mxu1 %v5881_v42  ;;  %v1021_v41 = vld [vmem:[#allocation12 + $0x970] sm:$0xff] }
 0x459   :  { %v1161_v42 = vld [vmem:[#allocation12 + $0xdd0] sm:$0xff] }
 0x45a   :  { %v1009_v56 = vld [vmem:[#allocation12 + $0x910] sm:$0xff] }
 0x45b   :  { %4186 = vmatpush2.bf16.msra.mxu0 %v5736_v50  ;;  %4223 = vmatpush2.bf16.msra.mxu1 %v5880_v51  ;;  %v5952_v50 = vcombine.low %v1025_v38, %v1029_v11  ;;  %v1013_v57 = vld [vmem:[#allocation12 + $0x930] sm:$0xff] }
 0x45c   :  { %4187 = vmatprep.subr.bf16.mxu0 %v5729_v52  ;;  %4224 = vmatprep.subr.bf16.mxu1 %v5873_v53  ;;  %v5945_v52 = vcombine.high %v1017_v39, %v1021_v41  ;;  %v6089_v53 = vcombine.high %v1161_v42, %v1165_v44  ;;  %v5937_v1 = vcombine.high %v1009_v56, %v1013_v57  ;;  %v1001_v3 = vld [vmem:[#allocation12 + $0x8d0] sm:$0xff] }
 0x45d   :  { %v1005_v8 = vld [vmem:[#allocation12 + $0x8f0] sm:$0xff] }
 0x45e   :  { %v5929_v24 = vcombine.high %v1001_v3, %v1005_v8  ;;  %v1141_v34 = vld [vmem:[#allocation12 + $0xd30] sm:$0xff]  ;;  %v5928_v38 = vcombine.low %v1001_v3, %v1005_v8 }
 0x45f   :  { %4188 = vmatpush2.bf16.msra.mxu0 %v5728_v6  ;;  %4225 = vmatpush2.bf16.msra.mxu1 %v5872_v60  ;;  %v1153_v6 = vld [vmem:[#allocation12 + $0xd90] sm:$0xff] }
 0x460   :  { %4189 = vmatprep.subr.bf16.mxu0 %v5721_v61  ;;  %4226 = vmatprep.subr.bf16.mxu1 %v5865_v62  ;;  %v1157_v60 = vld [vmem:[#allocation12 + $0xdb0] sm:$0xff]  ;;  %v6088_v61 = vcombine.low %v1161_v42, %v1165_v44 }
 0x461   :  { %v6081_v7 = vcombine.high %v1153_v6, %v1157_v60  ;;  %v6080_v22 = vcombine.low %v1153_v6, %v1157_v60  ;;  %v1133_v42 = vld [vmem:[#allocation12 + $0xcf0] sm:$0xff] }
 0x462   :  { %v1097_v6 = vld [vmem:[#allocation12 + $0xbd0] sm:$0xff] }
 0x463   :  { %4190 = vmatpush2.bf16.msra.mxu0 %v5720_v9  ;;  %4227 = vmatpush2.bf16.msra.mxu1 %v5864_v14  ;;  %v1145_v9 = vld [vmem:[#allocation12 + $0xd50] sm:$0xff] }
 0x464   :  { %4191 = vmatprep.subr.bf16.mxu0 %v5713_v15  ;;  %4228 = vmatprep.subr.bf16.mxu1 %v5857_v21  ;;  %v1149_v14 = vld [vmem:[#allocation12 + $0xd70] sm:$0xff]  ;;  %v5936_v21 = vcombine.low %v1009_v56, %v1013_v57 }
 0x465   :  { %v6073_v28 = vcombine.high %v1145_v9, %v1149_v14  ;;  %v6072_v11 = vcombine.low %v1145_v9, %v1149_v14  ;;  %v1101_v60 = vld [vmem:[#allocation12 + $0xbf0] sm:$0xff] }
 0x466   :  { %v6025_v3 = vcombine.high %v1097_v6, %v1101_v60  ;;  %v1089_v8 = vld [vmem:[#allocation12 + $0xb90] sm:$0xff] }
 0x467   :  { %4192 = vmatpush2.bf16.msra.mxu0 %v5712_v29  ;;  %4229 = vmatpush2.bf16.msra.mxu1 %v5856_v30  ;;  %v993_v29 = vld [vmem:[#allocation12 + $0x890] sm:$0xff] }
 0x468   :  { %4230 = vmatprep.subr.bf16.mxu1 %v5849_v31  ;;  %4243 = vmatprep.subr.bf16.mxu0 %v5961_v33  ;;  %v997_v31 = vld [vmem:[#allocation12 + $0x8b0] sm:$0xff] }
 0x469   :  { %v1137_v33 = vld [vmem:[#allocation12 + $0xd10] sm:$0xff]  ;;  %v5920_v44 = vcombine.low %v993_v29, %v997_v31 }
 0x46a   :  { %v3949_v47 = vpop.f32.mrf.mxu0  ;;  %4194 = vmatmul.mubr.bf16.vlgmr.msra.gmra.mxu0 %v7044_v45  ;;  %v1093_v9 = vld [vmem:[#allocation12 + $0xbb0] sm:$0xff] }
 0x46b   :  { %v3950_v49 = vadd.f32 %v3949_v47, %v7100_v63  ;;  %4231 = vmatpush2.bf16.msra.mxu1 %v5848_v25  ;;  %4244 = vmatpush1.bf16.msra.mxu0 %v5960_v12  ;;  %v5944_v63 = vcombine.low %v1017_v39, %v1021_v41  ;;  %v5921_v12 = vcombine.high %v993_v29, %v997_v31  ;;  %v985_v39 = vld [vmem:[#allocation12 + $0x850] sm:$0xff] }
 0x46c   :  { %4275 = vmatprep.mubr.bf16.mxu0 %v7046_v48  ;;  %v3951_v51 = vpop.f32.mrf.mxu0  ;;  %4232 = vmatprep.subr.bf16.mxu1 %v5841_v13  ;;  %v6065_v13 = vcombine.high %v1137_v33, %v1141_v34  ;;  %v1129_v41 = vld [vmem:[#allocation12 + $0xcd0] sm:$0xff]  ;;  %v6064_v47 = vcombine.low %v1137_v33, %v1141_v34  ;;  %v6016_v34 = vcombine.low %v1089_v8, %v1093_v9 }
 0x46d   :  { %v3952_v54 = vadd.f32 %v3951_v51, %v7103_v10  ;;  %4245 = vmatprep.subr.bf16.mxu0 %v5953_v40  ;;  %v989_v40 = vld [vmem:[#allocation12 + $0x870] sm:$0xff]  ;;  %v6056_v56 = vcombine.low %v1129_v41, %v1133_v42 }
 0x46e   :  { %v3953_v59 = vpop.f32.mrf.mxu0  ;;  %v981_v51 = vld [vmem:[#allocation12 + $0x830] sm:$0xff] }
 0x46f   :  { %4233 = vmatpush2.bf16.msra.mxu1 %v5840_v18  ;;  %4246 = vmatpush1.bf16.msra.mxu0 %v5952_v50  ;;  %v6057_v18 = vcombine.high %v1129_v41, %v1133_v42  ;;  %v977_v50 = vld [vmem:[#allocation12 + $0x810] sm:$0xff] }
 0x470   :  { %v3954_v62 = vpop.f32.mrf.mxu0  ;;  %4247 = vmatprep.subr.bf16.mxu0 %v5945_v52  ;;  %4284 = vmatprep.subr.bf16.mxu1 %v6089_v53  ;;  %v1121_v52 = vld [vmem:[#allocation12 + $0xc90] sm:$0xff]  ;;  %v5905_v57 = vcombine.high %v977_v50, %v981_v51 }
 0x471   :  { %v1125_v53 = vld [vmem:[#allocation12 + $0xcb0] sm:$0xff]  ;;  %v5904_v62 = vcombine.low %v977_v50, %v981_v51 }
 0x472   :  { %v3990_v10 = vpop.f32.mrf.mxu1  ;;  %4235 = vmatmul.mubr.bf16.vlgmr.msra.gmra.mxu1 %v7057_v5  ;;  %v6049_v59 = vcombine.high %v1121_v52, %v1125_v53  ;;  %v1105_v14 = vld [vmem:[#allocation12 + $0xc10] sm:$0xff] }
 0x473   :  { %v7110_v15 = vadd.f32 %v3990_v10, %v3950_v49  ;;  %4248 = vmatpush1.bf16.msra.mxu0 %v5944_v63  ;;  %4285 = vmatpush1.bf16.msra.mxu1 %v6088_v61  ;;  %v5913_v49 = vcombine.high %v985_v39, %v989_v40  ;;  %v1113_v63 = vld [vmem:[#allocation12 + $0xc50] sm:$0xff] }
 0x474   :  { %4316 = vmatprep.mubr.bf16.mxu1 %v7066_v37  ;;  %v3992_v23 = vpop.f32.mrf.mxu1  ;;  %4249 = vmatprep.subr.bf16.mxu0 %v5937_v1  ;;  %v1117_v61 = vld [vmem:[#allocation12 + $0xc70] sm:$0xff]  ;;  %v6048_v1 = vcombine.low %v1121_v52, %v1125_v53 }
 0x475   :  { %v7113_v30 = vadd.f32 %v3992_v23, %v3952_v54  ;;  %4286 = vmatprep.subr.bf16.mxu1 %v6081_v7  ;;  %v5912_v54 = vcombine.low %v985_v39, %v989_v40  ;;  %v6041_v7 = vcombine.high %v1113_v63, %v1117_v61  ;;  %v1109_v10 = vld [vmem:[#allocation12 + $0xc30] sm:$0xff]  ;;  %v6017_v23 = vcombine.high %v1089_v8, %v1093_v9 }
 0x476   :  { %v3994_v36 = vpop.f32.mrf.mxu1  ;;  %v1085_v29 = vld [vmem:[#allocation12 + $0xb70] sm:$0xff] }
 0x477   :  { %4250 = vmatpush1.bf16.msra.mxu0 %v5936_v21  ;;  %4287 = vmatpush1.bf16.msra.mxu1 %v6080_v22  ;;  %v6024_v21 = vcombine.low %v1097_v6, %v1101_v60  ;;  %v6040_v22 = vcombine.low %v1113_v63, %v1117_v61  ;;  %v1225_v31 = vld [vmem:[#allocation12 + $0xfd0] sm:$0xff]  ;;  %v6032_v36 = vcombine.low %v1105_v14, %v1109_v10 }
 0x478   :  { %v3995_v25 = vpop.f32.mrf.mxu1  ;;  %4251 = vmatprep.subr.bf16.mxu0 %v5929_v24  ;;  %4288 = vmatprep.subr.bf16.mxu1 %v6073_v28  ;;  %v6033_v24 = vcombine.high %v1105_v14, %v1109_v10  ;;  %v1081_v28 = vld [vmem:[#allocation12 + $0xb50] sm:$0xff] }
 0x479   :  { %v1229_v33 = vld [vmem:[#allocation12 + $0xff0] sm:$0xff]  ;;  %v6008_v40 = vcombine.low %v1081_v28, %v1085_v29 }
 0x47a   :  { %v1073_v25 = vld [vmem:[#allocation12 + $0xb10] sm:$0xff]  ;;  %v6152_v41 = vcombine.low %v1225_v31, %v1229_v33 }
 0x47b   :  { %4252 = vmatpush1.bf16.msra.mxu0 %v5928_v38  ;;  %4289 = vmatpush1.bf16.msra.mxu1 %v6072_v11  ;;  %v6009_v38 = vcombine.high %v1081_v28, %v1085_v29  ;;  %v6153_v11 = vcombine.high %v1225_v31, %v1229_v33  ;;  %v1221_v39 = vld [vmem:[#allocation12 + $0xfb0] sm:$0xff] }
 0x47c   :  { %4253 = vmatprep.subr.bf16.mxu0 %v5921_v12  ;;  %4290 = vmatprep.subr.bf16.mxu1 %v6065_v13  ;;  %v1077_v12 = vld [vmem:[#allocation12 + $0xb30] sm:$0xff] }
 0x47d   :  { %v1217_v13 = vld [vmem:[#allocation12 + $0xf90] sm:$0xff]  ;;  %v6001_v42 = vcombine.high %v1073_v25, %v1077_v12  ;;  %v6000_v51 = vcombine.low %v1073_v25, %v1077_v12  ;;  %v782_v25 = vld [vmem:[#allocation12 + $0x1f8] sm:$0xff] }
 0x47e   :  { %v1213_v50 = vld [vmem:[#allocation12 + $0xf70] sm:$0xff]  ;;  %v6144_v52 = vcombine.low %v1217_v13, %v1221_v39 }
 0x47f   :  { %4254 = vmatpush1.bf16.msra.mxu0 %v5920_v44  ;;  %4291 = vmatpush1.bf16.msra.mxu1 %v6064_v47  ;;  %v6145_v44 = vcombine.high %v1217_v13, %v1221_v39  ;;  %v1065_v47 = vld [vmem:[#allocation12 + $0xad0] sm:$0xff] }
 0x480   :  { %4255 = vmatprep.subr.bf16.mxu0 %v5913_v49  ;;  %4292 = vmatprep.subr.bf16.mxu1 %v6057_v18  ;;  %v1069_v49 = vld [vmem:[#allocation12 + $0xaf0] sm:$0xff] }
 0x481   :  { %v1209_v18 = vld [vmem:[#allocation12 + $0xf50] sm:$0xff]  ;;  %v5993_v53 = vcombine.high %v1065_v47, %v1069_v49  ;;  %v5992_v60 = vcombine.low %v1065_v47, %v1069_v49  ;;  %v774_v47 = vld [vmem:[#allocation12 + $0x1b8] sm:$0xff] }
 0x482   :  { %v1205_v6 = vld [vmem:[#allocation12 + $0xf30] sm:$0xff]  ;;  %v6136_v63 = vcombine.low %v1209_v18, %v1213_v50 }
 0x483   :  { %4256 = vmatpush1.bf16.msra.mxu0 %v5912_v54  ;;  %4293 = vmatpush1.bf16.msra.mxu1 %v6056_v56  ;;  %v6137_v54 = vcombine.high %v1209_v18, %v1213_v50  ;;  %v1057_v56 = vld [vmem:[#allocation12 + $0xa90] sm:$0xff] }
 0x484   :  { %4257 = vmatprep.subr.bf16.mxu0 %v5905_v57  ;;  %4294 = vmatprep.subr.bf16.mxu1 %v6049_v59  ;;  %v1061_v57 = vld [vmem:[#allocation12 + $0xab0] sm:$0xff] }
 0x485   :  { %v1201_v59 = vld [vmem:[#allocation12 + $0xf10] sm:$0xff]  ;;  %v5985_v61 = vcombine.high %v1057_v56, %v1061_v57  ;;  %v5984_v9 = vcombine.low %v1057_v56, %v1061_v57  ;;  %v910_v56 = vld [vmem:[#allocation12 + $0x5f8] sm:$0xff] }
 0x486   :  { %v1197_v8 = vld [vmem:[#allocation12 + $0xef0] sm:$0xff]  ;;  %v6128_v14 = vcombine.low %v1201_v59, %v1205_v6 }
 0x487   :  { %4258 = vmatpush1.bf16.msra.mxu0 %v5904_v62  ;;  %4295 = vmatpush1.bf16.msra.mxu1 %v6048_v1  ;;  %v6129_v62 = vcombine.high %v1201_v59, %v1205_v6  ;;  %v1049_v1 = vld [vmem:[#allocation12 + $0xa50] sm:$0xff] }
 0x488   :  { %4259 = vmatprep.subr.bf16.mxu0 %v6025_v3  ;;  %4296 = vmatprep.subr.bf16.mxu1 %v6041_v7  ;;  %v1053_v3 = vld [vmem:[#allocation12 + $0xa70] sm:$0xff] }
 0x489   :  { %v1193_v7 = vld [vmem:[#allocation12 + $0xed0] sm:$0xff]  ;;  %v5977_v10 = vcombine.high %v1049_v1, %v1053_v3  ;;  %v5976_v29 = vcombine.low %v1049_v1, %v1053_v3  ;;  %v754_v1 = vld [vmem:[#allocation12 + $0x118] sm:$0xff] }
 0x48a   :  { %v1189_v28 = vld [vmem:[#allocation12 + $0xeb0] sm:$0xff]  ;;  %v6120_v31 = vcombine.low %v1193_v7, %v1197_v8  ;;  %v758_v3 = vld [vmem:[#allocation12 + $0x138] sm:$0xff] }
 0x48b   :  { %4260 = vmatpush2.bf16.msra.mxu0 %v6024_v21  ;;  %4297 = vmatpush1.bf16.msra.mxu1 %v6040_v22  ;;  %v6121_v21 = vcombine.high %v1193_v7, %v1197_v8  ;;  %v1041_v22 = vld [vmem:[#allocation12 + $0xa10] sm:$0xff]  ;;  %v898_v8 = vld [vmem:[#allocation12 + $0x598] sm:$0xff] }
 0x48c   :  { %4261 = vmatprep.subr.bf16.mxu0 %v6017_v23  ;;  %4298 = vmatprep.subr.bf16.mxu1 %v6033_v24  ;;  %v1045_v23 = vld [vmem:[#allocation12 + $0xa30] sm:$0xff] }
 0x48d   :  { %v1185_v24 = vld [vmem:[#allocation12 + $0xe90] sm:$0xff]  ;;  %v5969_v33 = vcombine.high %v1041_v22, %v1045_v23  ;;  %v5968_v12 = vcombine.low %v1041_v22, %v1045_v23  ;;  %v5683_v22 = vcombine.high %v754_v1, %v758_v3  ;;  %v746_v23 = vld [vmem:[#allocation12 + $0xd8] sm:$0xff] }
 0x48e   :  { %v6112_v13 = vcombine.low %v1185_v24, %v1189_v28 }
 0x48f   :  { %4262 = vmatpush2.bf16.msra.mxu0 %v6016_v34  ;;  %4299 = vmatpush1.bf16.msra.mxu1 %v6032_v36  ;;  %v6113_v34 = vcombine.high %v1185_v24, %v1189_v28  ;;  %v1177_v36 = vld [vmem:[#allocation12 + $0xe50] sm:$0xff] }
 0x490   :  { %4263 = vmatprep.subr.bf16.mxu0 %v6009_v38  ;;  %4300 = vmatprep.subr.bf16.mxu1 %v6153_v11  ;;  %v1181_v38 = vld [vmem:[#allocation12 + $0xe70] sm:$0xff]  ;;  %v778_v11 = vld [vmem:[#allocation12 + $0x1d8] sm:$0xff] }
 0x491   :  { %v6105_v39 = vcombine.high %v1177_v36, %v1181_v38  ;;  %v6104_v49 = vcombine.low %v1177_v36, %v1181_v38  ;;  %v5706_v18 = vcombine.low %v778_v11, %v782_v25  ;;  %v5682_v36 = vcombine.low %v754_v1, %v758_v3  ;;  %v870_v1 = vld [vmem:[#allocation12 + $0x4b8] sm:$0xff] }
 0x493   :  { %4264 = vmatpush2.bf16.msra.mxu0 %v6008_v40  ;;  %4301 = vmatpush2.bf16.msra.mxu1 %v6152_v41  ;;  %v5707_v40 = vcombine.high %v778_v11, %v782_v25  ;;  %v1169_v41 = vld [vmem:[#allocation12 + $0xe10] sm:$0xff] }
 0x494   :  { %4265 = vmatprep.subr.bf16.mxu0 %v6001_v42  ;;  %4302 = vmatprep.subr.bf16.mxu1 %v6145_v44  ;;  %v1173_v42 = vld [vmem:[#allocation12 + $0xe30] sm:$0xff]  ;;  %v770_v44 = vld [vmem:[#allocation12 + $0x198] sm:$0xff] }
 0x495   :  { %v6097_v50 = vcombine.high %v1169_v41, %v1173_v42  ;;  %v6096_v59 = vcombine.low %v1169_v41, %v1173_v42  ;;  %v5698_v6 = vcombine.low %v770_v44, %v774_v47  ;;  %v742_v41 = vld [vmem:[#allocation12 + $0xb8] sm:$0xff] }
 0x496   :  { %v882_v42 = vld [vmem:[#allocation12 + $0x518] sm:$0xff] }
 0x497   :  { %4266 = vmatpush2.bf16.msra.mxu0 %v6000_v51  ;;  %4303 = vmatpush2.bf16.msra.mxu1 %v6144_v52  ;;  %v762_v51 = vld [vmem:[#allocation12 + $0x158] sm:$0xff]  ;;  %v5699_v52 = vcombine.high %v770_v44, %v774_v47 }
 0x498   :  { %4267 = vmatprep.subr.bf16.mxu0 %v5993_v53  ;;  %4304 = vmatprep.subr.bf16.mxu1 %v6137_v54  ;;  %v766_v53 = vld [vmem:[#allocation12 + $0x178] sm:$0xff] }
 0x499   :  { %v906_v54 = vld [vmem:[#allocation12 + $0x5d8] sm:$0xff] }
 0x49a   :  { %v886_v44 = vld [vmem:[#allocation12 + $0x538] sm:$0xff] }
 0x49b   :  { %4268 = vmatpush2.bf16.msra.mxu0 %v5992_v60  ;;  %4305 = vmatpush2.bf16.msra.mxu1 %v6136_v63  ;;  %v5691_v63 = vcombine.high %v762_v51, %v766_v53 }
 0x49c   :  { %4269 = vmatprep.subr.bf16.mxu0 %v5985_v61  ;;  %4306 = vmatprep.subr.bf16.mxu1 %v6129_v62  ;;  %v5835_v61 = vcombine.high %v906_v54, %v910_v56  ;;  %v1244_v62 = vrot.slane %v7092_v35, %v7033_v27 }
 0x49f   :  { %4270 = vmatpush2.bf16.msra.mxu0 %v5984_v9  ;;  %4307 = vmatpush2.bf16.msra.mxu1 %v6128_v14  ;;  %v902_v9 = vld [vmem:[#allocation12 + $0x5b8] sm:$0xff]  ;;  %v1248_v14 = vrot.slane %v7092_v35, %v7036_v32 }
 0x4a0   :  { %4271 = vmatprep.subr.bf16.mxu0 %v5977_v10  ;;  %4308 = vmatprep.subr.bf16.mxu1 %v6121_v21  ;;  %v5690_v10 = vcombine.low %v762_v51, %v766_v53  ;;  %v5827_v28 = vcombine.high %v898_v8, %v902_v9  ;;  %v5826_v11 = vcombine.low %v898_v8, %v902_v9  ;;  %v734_v53 = vld [vmem:[#allocation12 + $0x78] sm:$0xff] }
 0x4a1   :  { %v5811_v51 = vcombine.high %v882_v42, %v886_v44 }
 0x4a3   :  { %4272 = vmatpush2.bf16.msra.mxu0 %v5976_v29  ;;  %4309 = vmatpush2.bf16.msra.mxu1 %v6120_v31  ;;  %v750_v29 = vld [vmem:[#allocation12 + $0xf8] sm:$0xff] }
 0x4a4   :  { %4273 = vmatprep.subr.bf16.mxu0 %v5969_v33  ;;  %4310 = vmatprep.subr.bf16.mxu1 %v6113_v34  ;;  %v890_v31 = vld [vmem:[#allocation12 + $0x558] sm:$0xff] }
 0x4a5   :  { %v894_v33 = vld [vmem:[#allocation12 + $0x578] sm:$0xff] }
 0x4a7   :  { %4274 = vmatpush2.bf16.msra.mxu0 %v5968_v12  ;;  %4311 = vmatpush2.bf16.msra.mxu1 %v6112_v13  ;;  %v5675_v12 = vcombine.high %v746_v23, %v750_v29  ;;  %v5819_v13 = vcombine.high %v890_v31, %v894_v33 }
 0x4a8   :  { %4312 = vmatprep.subr.bf16.mxu1 %v6105_v39  ;;  %4325 = vmatprep.subr.bf16.mxu0 %v5707_v40  ;;  %v738_v39 = vld [vmem:[#allocation12 + $0x98] sm:$0xff] }
 0x4aa   :  { %v4031_v57 = vpop.f32.mrf.mxu0  ;;  %4276 = vmatmul.mubr.bf16.vlgmr.msra.gmra.mxu0 %v7078_v46 }
 0x4ab   :  { %4313 = vmatpush2.bf16.msra.mxu1 %v6104_v49  ;;  %4326 = vmatpush1.bf16.msra.mxu0 %v5706_v18  ;;  %v4032_v24 = vadd.f32 %v4031_v57, %v1244_v62  ;;  %v5674_v49 = vcombine.low %v746_v23, %v750_v29  ;;  %v5818_v18 = vcombine.low %v890_v31, %v894_v33  ;;  %v866_v62 = vld [vmem:[#allocation12 + $0x498] sm:$0xff] }
 0x4ac   :  { %4357 = vmatprep.mubr.bf16.mxu0 %v7040_v43  ;;  %v4033_v60 = vpop.f32.mrf.mxu0  ;;  %4314 = vmatprep.subr.bf16.mxu1 %v6097_v50  ;;  %v5834_v43 = vcombine.low %v906_v54, %v910_v56  ;;  %v874_v54 = vld [vmem:[#allocation12 + $0x4d8] sm:$0xff]  ;;  %v5666_v57 = vcombine.low %v738_v39, %v742_v41  ;;  %v5795_v9 = vcombine.high %v866_v62, %v870_v1 }
 0x4ad   :  { %4327 = vmatprep.subr.bf16.mxu0 %v5699_v52  ;;  %v4034_v38 = vadd.f32 %v4033_v60, %v1248_v14  ;;  %v730_v52 = vld [vmem:[#allocation12 + $0x58] sm:$0xff]  ;;  %v5794_v23 = vcombine.low %v866_v62, %v870_v1 }
 0x4ae   :  { %v4035_v7 = vpop.f32.mrf.mxu0  ;;  %v878_v56 = vld [vmem:[#allocation12 + $0x4f8] sm:$0xff]  ;;  %v5658_v3 = vcombine.low %v730_v52, %v734_v53 }
 0x4af   :  { %4315 = vmatpush2.bf16.msra.mxu1 %v6096_v59  ;;  %4328 = vmatpush1.bf16.msra.mxu0 %v5698_v6  ;;  %v5810_v59 = vcombine.low %v882_v42, %v886_v44  ;;  %v5659_v6 = vcombine.high %v730_v52, %v734_v53  ;;  %v5803_v60 = vcombine.high %v874_v54, %v878_v56  ;;  %v842_v14 = vld [vmem:[#allocation12 + $0x3d8] sm:$0xff] }
 0x4b0   :  { %v4036_v21 = vpop.f32.mrf.mxu0  ;;  %4329 = vmatprep.subr.bf16.mxu0 %v5691_v63  ;;  %4366 = vmatprep.subr.bf16.mxu1 %v5835_v61  ;;  %v722_v63 = vld [vmem:[#allocation12 + $0x18] sm:$0xff]  ;;  %v5802_v7 = vcombine.low %v874_v54, %v878_v56 }
 0x4b1   :  { %v726_v61 = vld [vmem:[#allocation12 + $0x38] sm:$0xff] }
 0x4b2   :  { %v4072_v34 = vpop.f32.mrf.mxu1  ;;  %4317 = vmatmul.mubr.bf16.vlgmr.msra.gmra.mxu1 %v7083_v4  ;;  %v5651_v8 = vcombine.high %v722_v63, %v726_v61  ;;  %v862_v21 = vld [vmem:[#allocation12 + $0x478] sm:$0xff] }
 0x4b3   :  { %v7122_v35 = vadd.f32 %v4072_v34, %v4032_v24  ;;  %4330 = vmatpush1.bf16.msra.mxu0 %v5690_v10  ;;  %4367 = vmatpush1.bf16.msra.mxu1 %v5834_v43  ;;  %v846_v10 = vld [vmem:[#allocation12 + $0x3f8] sm:$0xff] }
 0x4b4   :  { %4398 = vmatprep.mubr.bf16.mxu1 %v7052_v2  ;;  %v4074_v25 = vpop.f32.mrf.mxu1  ;;  %4331 = vmatprep.subr.bf16.mxu0 %v5683_v22  ;;  %v5667_v2 = vcombine.high %v738_v39, %v742_v41  ;;  %v858_v43 = vld [vmem:[#allocation12 + $0x458] sm:$0xff]  ;;  %v5650_v22 = vcombine.low %v722_v63, %v726_v61  ;;  %v5771_v24 = vcombine.high %v842_v14, %v846_v10 }
 0x4b5   :  { %v7125_v40 = vadd.f32 %v4074_v25, %v4034_v38  ;;  %4368 = vmatprep.subr.bf16.mxu1 %v5827_v28  ;;  %v5787_v28 = vcombine.high %v858_v43, %v862_v21  ;;  %v834_v29 = vld [vmem:[#allocation12 + $0x398] sm:$0xff]  ;;  %v5786_v38 = vcombine.low %v858_v43, %v862_v21 }
 0x4b6   :  { %v4076_v47 = vpop.f32.mrf.mxu1  ;;  %v838_v31 = vld [vmem:[#allocation12 + $0x3b8] sm:$0xff] }
 0x4b7   :  { %4332 = vmatpush1.bf16.msra.mxu0 %v5682_v36  ;;  %4369 = vmatpush1.bf16.msra.mxu1 %v5826_v11  ;;  %v850_v33 = vld [vmem:[#allocation12 + $0x418] sm:$0xff]  ;;  %v5770_v36 = vcombine.low %v842_v14, %v846_v10  ;;  %v5763_v11 = vcombine.high %v834_v29, %v838_v31  ;;  %v5762_v42 = vcombine.low %v834_v29, %v838_v31 }
 0x4b8   :  { %v4077_v50 = vpop.f32.mrf.mxu1  ;;  %4333 = vmatprep.subr.bf16.mxu0 %v5675_v12  ;;  %4370 = vmatprep.subr.bf16.mxu1 %v5819_v13  ;;  %v854_v34 = vld [vmem:[#allocation12 + $0x438] sm:$0xff] }
 0x4b9   :  { %v5779_v25 = vcombine.high %v850_v33, %v854_v34  ;;  %v826_v12 = vld [vmem:[#allocation12 + $0x358] sm:$0xff]  ;;  %v5778_v44 = vcombine.low %v850_v33, %v854_v34 }
 0x4ba   :  { %v830_v13 = vld [vmem:[#allocation12 + $0x378] sm:$0xff] }
 0x4bb   :  { %4334 = vmatpush1.bf16.msra.mxu0 %v5674_v49  ;;  %4371 = vmatpush1.bf16.msra.mxu1 %v5818_v18  ;;  %v970_v39 = vld [vmem:[#allocation12 + $0x7d8] sm:$0xff]  ;;  %v5755_v47 = vcombine.high %v826_v12, %v830_v13  ;;  %v5754_v52 = vcombine.low %v826_v12, %v830_v13 }
 0x4bc   :  { %4335 = vmatprep.subr.bf16.mxu0 %v5667_v2  ;;  %4372 = vmatprep.subr.bf16.mxu1 %v5811_v51  ;;  %v974_v41 = vld [vmem:[#allocation12 + $0x7f8] sm:$0xff] }
 0x4bd   :  { %v5899_v49 = vcombine.high %v970_v39, %v974_v41  ;;  %v818_v18 = vld [vmem:[#allocation12 + $0x318] sm:$0xff]  ;;  %v5898_v53 = vcombine.low %v970_v39, %v974_v41 }
 0x4be   :  { %v822_v50 = vld [vmem:[#allocation12 + $0x338] sm:$0xff] }
 0x4bf   :  { %4336 = vmatpush1.bf16.msra.mxu0 %v5666_v57  ;;  %4373 = vmatpush1.bf16.msra.mxu1 %v5810_v59  ;;  %v962_v2 = vld [vmem:[#allocation12 + $0x798] sm:$0xff]  ;;  %v5747_v54 = vcombine.high %v818_v18, %v822_v50  ;;  %v5746_v63 = vcombine.low %v818_v18, %v822_v50 }
 0x4c0   :  { %4337 = vmatprep.subr.bf16.mxu0 %v5659_v6  ;;  %4374 = vmatprep.subr.bf16.mxu1 %v5803_v60  ;;  %v966_v51 = vld [vmem:[#allocation12 + $0x7b8] sm:$0xff] }
 0x4c1   :  { %v5891_v56 = vcombine.high %v962_v2, %v966_v51  ;;  %v810_v57 = vld [vmem:[#allocation12 + $0x2d8] sm:$0xff]  ;;  %v5890_v61 = vcombine.low %v962_v2, %v966_v51 }
 0x4c2   :  { %v814_v59 = vld [vmem:[#allocation12 + $0x2f8] sm:$0xff] }
 0x4c3   :  { %4338 = vmatpush1.bf16.msra.mxu0 %v5658_v3  ;;  %4375 = vmatpush1.bf16.msra.mxu1 %v5802_v7  ;;  %v954_v6 = vld [vmem:[#allocation12 + $0x758] sm:$0xff]  ;;  %v5739_v62 = vcombine.high %v810_v57, %v814_v59  ;;  %v5738_v14 = vcombine.low %v810_v57, %v814_v59 }
 0x4c4   :  { %4339 = vmatprep.subr.bf16.mxu0 %v5651_v8  ;;  %4376 = vmatprep.subr.bf16.mxu1 %v5795_v9  ;;  %v958_v60 = vld [vmem:[#allocation12 + $0x778] sm:$0xff] }
 0x4c5   :  { %v5883_v1 = vcombine.high %v954_v6, %v958_v60  ;;  %v802_v3 = vld [vmem:[#allocation12 + $0x298] sm:$0xff]  ;;  %v5882_v10 = vcombine.low %v954_v6, %v958_v60 }
 0x4c6   :  { %v806_v7 = vld [vmem:[#allocation12 + $0x2b8] sm:$0xff] }
 0x4c7   :  { %4340 = vmatpush1.bf16.msra.mxu0 %v5650_v22  ;;  %4377 = vmatpush1.bf16.msra.mxu1 %v5794_v23  ;;  %v946_v8 = vld [vmem:[#allocation12 + $0x718] sm:$0xff]  ;;  %v5731_v43 = vcombine.high %v802_v3, %v806_v7  ;;  %v5730_v29 = vcombine.low %v802_v3, %v806_v7 }
 0x4c8   :  { %4341 = vmatprep.subr.bf16.mxu0 %v5771_v24  ;;  %4378 = vmatprep.subr.bf16.mxu1 %v5787_v28  ;;  %v950_v9 = vld [vmem:[#allocation12 + $0x738] sm:$0xff] }
 0x4c9   :  { %v5875_v21 = vcombine.high %v946_v8, %v950_v9  ;;  %v794_v22 = vld [vmem:[#allocation12 + $0x258] sm:$0xff]  ;;  %v5874_v31 = vcombine.low %v946_v8, %v950_v9 }
 0x4ca   :  { %v798_v23 = vld [vmem:[#allocation12 + $0x278] sm:$0xff] }
 0x4cb   :  { %4342 = vmatpush2.bf16.msra.mxu0 %v5770_v36  ;;  %4379 = vmatpush1.bf16.msra.mxu1 %v5786_v38  ;;  %v938_v24 = vld [vmem:[#allocation12 + $0x6d8] sm:$0xff]  ;;  %v5723_v33 = vcombine.high %v794_v22, %v798_v23  ;;  %v5722_v12 = vcombine.low %v794_v22, %v798_v23 }
 0x4cc   :  { %4343 = vmatprep.subr.bf16.mxu0 %v5763_v11  ;;  %4380 = vmatprep.subr.bf16.mxu1 %v5779_v25  ;;  %v942_v28 = vld [vmem:[#allocation12 + $0x6f8] sm:$0xff] }
 0x4cd   :  { %v5867_v34 = vcombine.high %v938_v24, %v942_v28  ;;  %v786_v36 = vld [vmem:[#allocation12 + $0x218] sm:$0xff]  ;;  %v5866_v13 = vcombine.low %v938_v24, %v942_v28 }
 0x4ce   :  { %v790_v38 = vld [vmem:[#allocation12 + $0x238] sm:$0xff] }
 0x4cf   :  { %4344 = vmatpush2.bf16.msra.mxu0 %v5762_v42  ;;  %4381 = vmatpush1.bf16.msra.mxu1 %v5778_v44  ;;  %v930_v11 = vld [vmem:[#allocation12 + $0x698] sm:$0xff]  ;;  %v5715_v39 = vcombine.high %v786_v36, %v790_v38  ;;  %v5714_v18 = vcombine.low %v786_v36, %v790_v38 }
 0x4d0   :  { %4345 = vmatprep.subr.bf16.mxu0 %v5755_v47  ;;  %4382 = vmatprep.subr.bf16.mxu1 %v5899_v49  ;;  %v934_v25 = vld [vmem:[#allocation12 + $0x6b8] sm:$0xff] }
 0x4d1   :  { %v5859_v41 = vcombine.high %v930_v11, %v934_v25  ;;  %v922_v42 = vld [vmem:[#allocation12 + $0x658] sm:$0xff]  ;;  %v5858_v50 = vcombine.low %v930_v11, %v934_v25 }
 0x4d2   :  { %v926_v44 = vld [vmem:[#allocation12 + $0x678] sm:$0xff] }
 0x4d3   :  { %4346 = vmatpush2.bf16.msra.mxu0 %v5754_v52  ;;  %4383 = vmatpush2.bf16.msra.mxu1 %v5898_v53  ;;  %v1034_v47 = vld [vmem:[#allocation12 + $0x9d8] sm:$0xff]  ;;  %v5851_v2 = vcombine.high %v922_v42, %v926_v44  ;;  %v5850_v57 = vcombine.low %v922_v42, %v926_v44 }
 0x4d4   :  { %4347 = vmatprep.subr.bf16.mxu0 %v5747_v54  ;;  %4384 = vmatprep.subr.bf16.mxu1 %v5891_v56  ;;  %v1038_v49 = vld [vmem:[#allocation12 + $0x9f8] sm:$0xff] }
 0x4d5   :  { %v5963_v51 = vcombine.high %v1034_v47, %v1038_v49  ;;  %v914_v52 = vld [vmem:[#allocation12 + $0x618] sm:$0xff]  ;;  %v5962_v59 = vcombine.low %v1034_v47, %v1038_v49 }
 0x4d6   :  { %v918_v53 = vld [vmem:[#allocation12 + $0x638] sm:$0xff] }
 0x4d7   :  { %4348 = vmatpush2.bf16.msra.mxu0 %v5746_v63  ;;  %4385 = vmatpush2.bf16.msra.mxu1 %v5890_v61  ;;  %v1026_v54 = vld [vmem:[#allocation12 + $0x998] sm:$0xff]  ;;  %v5843_v6 = vcombine.high %v914_v52, %v918_v53  ;;  %v5842_v8 = vcombine.low %v914_v52, %v918_v53 }
 0x4d8   :  { %4349 = vmatprep.subr.bf16.mxu0 %v5739_v62  ;;  %4386 = vmatprep.subr.bf16.mxu1 %v5883_v1  ;;  %v1030_v56 = vld [vmem:[#allocation12 + $0x9b8] sm:$0xff] }
 0x4d9   :  { %v1018_v60 = vld [vmem:[#allocation12 + $0x958] sm:$0xff]  ;;  %v5955_v63 = vcombine.high %v1026_v54, %v1030_v56  ;;  %v5954_v9 = vcombine.low %v1026_v54, %v1030_v56 }
 0x4da   :  { %v1022_v61 = vld [vmem:[#allocation12 + $0x978] sm:$0xff] }
 0x4db   :  { %4350 = vmatpush2.bf16.msra.mxu0 %v5738_v14  ;;  %4387 = vmatpush2.bf16.msra.mxu1 %v5882_v10  ;;  %v1162_v62 = vld [vmem:[#allocation12 + $0xdd8] sm:$0xff]  ;;  %v5947_v10 = vcombine.high %v1018_v60, %v1022_v61 }
 0x4dc   :  { %4351 = vmatprep.subr.bf16.mxu0 %v5731_v43  ;;  %4388 = vmatprep.subr.bf16.mxu1 %v5875_v21  ;;  %v1166_v1 = vld [vmem:[#allocation12 + $0xdf8] sm:$0xff] }
 0x4dd   :  { %v6091_v43 = vcombine.high %v1162_v62, %v1166_v1  ;;  %v1010_v21 = vld [vmem:[#allocation12 + $0x918] sm:$0xff] }
 0x4de   :  { %v1014_v22 = vld [vmem:[#allocation12 + $0x938] sm:$0xff] }
 0x4df   :  { %4352 = vmatpush2.bf16.msra.mxu0 %v5730_v29  ;;  %4389 = vmatpush2.bf16.msra.mxu1 %v5874_v31  ;;  %v1154_v24 = vld [vmem:[#allocation12 + $0xd98] sm:$0xff]  ;;  %v5939_v31 = vcombine.high %v1010_v21, %v1014_v22 }
 0x4e0   :  { %4353 = vmatprep.subr.bf16.mxu0 %v5723_v33  ;;  %4390 = vmatprep.subr.bf16.mxu1 %v5867_v34  ;;  %v1158_v28 = vld [vmem:[#allocation12 + $0xdb8] sm:$0xff] }
 0x4e1   :  { %v6083_v33 = vcombine.high %v1154_v24, %v1158_v28  ;;  %v1006_v34 = vld [vmem:[#allocation12 + $0x8f8] sm:$0xff] }
 0x4e2   :  { %v1146_v36 = vld [vmem:[#allocation12 + $0xd58] sm:$0xff] }
 0x4e3   :  { %4354 = vmatpush2.bf16.msra.mxu0 %v5722_v12  ;;  %4391 = vmatpush2.bf16.msra.mxu1 %v5866_v13  ;;  %v1150_v38 = vld [vmem:[#allocation12 + $0xd78] sm:$0xff]  ;;  %v5938_v12 = vcombine.low %v1010_v21, %v1014_v22  ;;  %v6082_v13 = vcombine.low %v1154_v24, %v1158_v28 }
 0x4e4   :  { %4355 = vmatprep.subr.bf16.mxu0 %v5715_v39  ;;  %4392 = vmatprep.subr.bf16.mxu1 %v5859_v41  ;;  %v6075_v42 = vcombine.high %v1146_v36, %v1150_v38  ;;  %v994_v44 = vld [vmem:[#allocation12 + $0x898] sm:$0xff] }
 0x4e5   :  { %v998_v47 = vld [vmem:[#allocation12 + $0x8b8] sm:$0xff] }
 0x4e6   :  { %v1138_v49 = vld [vmem:[#allocation12 + $0xd18] sm:$0xff]  ;;  %v5923_v52 = vcombine.high %v994_v44, %v998_v47 }
 0x4e7   :  { %4356 = vmatpush2.bf16.msra.mxu0 %v5714_v18  ;;  %4393 = vmatpush2.bf16.msra.mxu1 %v5858_v50  ;;  %v1142_v18 = vld [vmem:[#allocation12 + $0xd38] sm:$0xff] }
 0x4e8   :  { %4394 = vmatprep.subr.bf16.mxu1 %v5851_v2  ;;  %4407 = vmatprep.subr.bf16.mxu0 %v5963_v51  ;;  %v6074_v2 = vcombine.low %v1146_v36, %v1150_v38  ;;  %v986_v53 = vld [vmem:[#allocation12 + $0x858] sm:$0xff] }
 0x4e9   :  { %v990_v54 = vld [vmem:[#allocation12 + $0x878] sm:$0xff] }
 0x4ea   :  { %v4113_v3 = vpop.f32.mrf.mxu0  ;;  %4358 = vmatmul.mubr.bf16.vlgmr.msra.gmra.mxu0 %v7044_v45  ;;  %v5946_v45 = vcombine.low %v1018_v60, %v1022_v61  ;;  %v1130_v56 = vld [vmem:[#allocation12 + $0xcd8] sm:$0xff]  ;;  %v5915_v60 = vcombine.high %v986_v53, %v990_v54 }
 0x4eb   :  { %v4114_v7 = vadd.f32 %v4113_v3, %v7122_v35  ;;  %4395 = vmatpush2.bf16.msra.mxu1 %v5850_v57  ;;  %4408 = vmatpush1.bf16.msra.mxu0 %v5962_v59  ;;  %v6090_v35 = vcombine.low %v1162_v62, %v1166_v1  ;;  %v1134_v57 = vld [vmem:[#allocation12 + $0xcf8] sm:$0xff]  ;;  %v5922_v59 = vcombine.low %v994_v44, %v998_v47 }
 0x4ec   :  { %4439 = vmatprep.mubr.bf16.mxu0 %v7046_v48  ;;  %v7130_v14 = vpop.f32.mrf.mxu0  ;;  %4396 = vmatprep.subr.bf16.mxu1 %v5843_v6  ;;  %v1002_v48 = vld [vmem:[#allocation12 + $0x8d8] sm:$0xff]  ;;  %v6066_v6 = vcombine.low %v1138_v49, %v1142_v18 }
 0x4ed   :  { %4409 = vmatprep.subr.bf16.mxu0 %v5955_v63  ;;  %v5931_v41 = vcombine.high %v1002_v48, %v1006_v34  ;;  %v6059_v63 = vcombine.high %v1130_v56, %v1134_v57  ;;  %v978_v61 = vld [vmem:[#allocation12 + $0x818] sm:$0xff] }
 0x4ee   :  { %v4117_v23 = vpop.f32.mrf.mxu0  ;;  %v982_v62 = vld [vmem:[#allocation12 + $0x838] sm:$0xff] }
 0x4ef   :  { %4397 = vmatpush2.bf16.msra.mxu1 %v5842_v8  ;;  %4410 = vmatpush1.bf16.msra.mxu0 %v5954_v9  ;;  %v1122_v1 = vld [vmem:[#allocation12 + $0xc98] sm:$0xff]  ;;  %v6058_v8 = vcombine.low %v1130_v56, %v1134_v57  ;;  %v5907_v9 = vcombine.high %v978_v61, %v982_v62  ;;  %v5906_v24 = vcombine.low %v978_v61, %v982_v62 }
 0x4f0   :  { %v4118_v29 = vpop.f32.mrf.mxu0  ;;  %4411 = vmatprep.subr.bf16.mxu0 %v5947_v10  ;;  %4448 = vmatprep.subr.bf16.mxu1 %v6091_v43  ;;  %v1126_v3 = vld [vmem:[#allocation12 + $0xcb8] sm:$0xff] }
 0x4f1   :  { %v6051_v10 = vcombine.high %v1122_v1, %v1126_v3  ;;  %v1098_v43 = vld [vmem:[#allocation12 + $0xbd8] sm:$0xff]  ;;  %v6050_v28 = vcombine.low %v1122_v1, %v1126_v3 }
 0x4f2   :  { %v4154_v11 = vpop.f32.mrf.mxu1  ;;  %4399 = vmatmul.mubr.bf16.vlgmr.msra.gmra.mxu1 %v7057_v5  ;;  %v5930_v5 = vcombine.low %v1002_v48, %v1006_v34  ;;  %v1102_v21 = vld [vmem:[#allocation12 + $0xbf8] sm:$0xff] }
 0x4f3   :  { %v7133_v25 = vadd.f32 %v4154_v11, %v4114_v7  ;;  %4412 = vmatpush1.bf16.msra.mxu0 %v5946_v45  ;;  %4449 = vmatpush1.bf16.msra.mxu1 %v6090_v35  ;;  %v5914_v7 = vcombine.low %v986_v53, %v990_v54  ;;  %v1114_v22 = vld [vmem:[#allocation12 + $0xc58] sm:$0xff]  ;;  %v6027_v45 = vcombine.high %v1098_v43, %v1102_v21 }
 0x4f4   :  { %4480 = vmatprep.mubr.bf16.mxu1 %v7066_v37  ;;  %v7136_v39 = vpop.f32.mrf.mxu1  ;;  %4413 = vmatprep.subr.bf16.mxu0 %v5939_v31  ;;  %v6067_v37 = vcombine.high %v1138_v49, %v1142_v18  ;;  %v1118_v23 = vld [vmem:[#allocation12 + $0xc78] sm:$0xff]  ;;  %v6026_v34 = vcombine.low %v1098_v43, %v1102_v21 }
 0x4f5   :  { %4450 = vmatprep.subr.bf16.mxu1 %v6083_v33  ;;  %v6043_v35 = vcombine.high %v1114_v22, %v1118_v23  ;;  %v1090_v29 = vld [vmem:[#allocation12 + $0xb98] sm:$0xff]  ;;  %v6042_v36 = vcombine.low %v1114_v22, %v1118_v23 }
 0x4f6   :  { %v4158_v50 = vpop.f32.mrf.mxu1  ;;  %v1094_v31 = vld [vmem:[#allocation12 + $0xbb8] sm:$0xff] }
 0x4f7   :  { %4414 = vmatpush1.bf16.msra.mxu0 %v5938_v12  ;;  %4451 = vmatpush1.bf16.msra.mxu1 %v6082_v13  ;;  %v1106_v48 = vld [vmem:[#allocation12 + $0xc18] sm:$0xff]  ;;  %v6019_v38 = vcombine.high %v1090_v29, %v1094_v31  ;;  %v6018_v44 = vcombine.low %v1090_v29, %v1094_v31 }
 0x4f8   :  { %v4159_v51 = vpop.f32.mrf.mxu1  ;;  %4415 = vmatprep.subr.bf16.mxu0 %v5931_v41  ;;  %4452 = vmatprep.subr.bf16.mxu1 %v6075_v42  ;;  %v1110_v33 = vld [vmem:[#allocation12 + $0xc38] sm:$0xff] }
 0x4f9   :  { %v6035_v11 = vcombine.high %v1106_v48, %v1110_v33  ;;  %v1082_v12 = vld [vmem:[#allocation12 + $0xb58] sm:$0xff]  ;;  %v6034_v47 = vcombine.low %v1106_v48, %v1110_v33 }
 0x4fa   :  { %v1086_v13 = vld [vmem:[#allocation12 + $0xb78] sm:$0xff] }
 0x4fb   :  { %4416 = vmatpush1.bf16.msra.mxu0 %v5930_v5  ;;  %4453 = vmatpush1.bf16.msra.mxu1 %v6074_v2  ;;  %v1226_v41 = vld [vmem:[#allocation12 + $0xfd8] sm:$0xff]  ;;  %v6011_v49 = vcombine.high %v1082_v12, %v1086_v13 }
 0x4fc   :  { %4417 = vmatprep.subr.bf16.mxu0 %v5923_v52  ;;  %4454 = vmatprep.subr.bf16.mxu1 %v6067_v37  ;;  %v1230_v42 = vld [vmem:[#allocation12 + $0xff8] sm:$0xff]  ;;  %v6010_v52 = vcombine.low %v1082_v12, %v1086_v13 }
 0x4fd   :  { %v6155_v18 = vcombine.high %v1226_v41, %v1230_v42  ;;  %v1074_v50 = vld [vmem:[#allocation12 + $0xb18] sm:$0xff]  ;;  %v6154_v37 = vcombine.low %v1226_v41, %v1230_v42 }
 0x4fe   :  { %v1078_v5 = vld [vmem:[#allocation12 + $0xb38] sm:$0xff] }
 0x4ff   :  { %4418 = vmatpush1.bf16.msra.mxu0 %v5922_v59  ;;  %4455 = vmatpush1.bf16.msra.mxu1 %v6066_v6  ;;  %v1218_v2 = vld [vmem:[#allocation12 + $0xf98] sm:$0xff]  ;;  %v6003_v53 = vcombine.high %v1074_v50, %v1078_v5 }
 0x500   :  { %4419 = vmatprep.subr.bf16.mxu0 %v5915_v60  ;;  %4456 = vmatprep.subr.bf16.mxu1 %v6059_v63  ;;  %v1222_v51 = vld [vmem:[#allocation12 + $0xfb8] sm:$0xff]  ;;  %v6002_v60 = vcombine.low %v1074_v50, %v1078_v5 }
 0x501   :  { %v6147_v54 = vcombine.high %v1218_v2, %v1222_v51  ;;  %v1066_v56 = vld [vmem:[#allocation12 + $0xad8] sm:$0xff]  ;;  %v6146_v63 = vcombine.low %v1218_v2, %v1222_v51  ;;  %v4490_v2 = vmax.f32 %v7113_v30, 0.0 }
 0x502   :  { %v1070_v57 = vld [vmem:[#allocation12 + $0xaf8] sm:$0xff] }
 0x503   :  { %4420 = vmatpush1.bf16.msra.mxu0 %v5914_v7  ;;  %4457 = vmatpush1.bf16.msra.mxu1 %v6058_v8  ;;  %v1210_v59 = vld [vmem:[#allocation12 + $0xf58] sm:$0xff]  ;;  %v5995_v61 = vcombine.high %v1066_v56, %v1070_v57 }
 0x504   :  { %4421 = vmatprep.subr.bf16.mxu0 %v5907_v9  ;;  %4458 = vmatprep.subr.bf16.mxu1 %v6051_v10  ;;  %v1214_v6 = vld [vmem:[#allocation12 + $0xf78] sm:$0xff]  ;;  %v5994_v9 = vcombine.low %v1066_v56, %v1070_v57  ;;  %v4498_v56 = vpack.c.bf16 %v4490_v2, %v4490_v2  ;;  %v6495_v2 = vld [vmem:[%s7583_s10 + $0x130] sm:$0xff]  }
 0x505   :  { %v6139_v62 = vcombine.high %v1210_v59, %v1214_v6  ;;  %v1058_v1 = vld [vmem:[#allocation12 + $0xa98] sm:$0xff]  ;;  %v6138_v10 = vcombine.low %v1210_v59, %v1214_v6 }
 0x506   :  { %v1062_v3 = vld [vmem:[#allocation12 + $0xab8] sm:$0xff] }
 0x507   :  { %4422 = vmatpush1.bf16.msra.mxu0 %v5906_v24  ;;  %4459 = vmatpush1.bf16.msra.mxu1 %v6050_v28  ;;  %v1202_v7 = vld [vmem:[#allocation12 + $0xf18] sm:$0xff]  ;;  %v5987_v43 = vcombine.high %v1058_v1, %v1062_v3 }
 0x508   :  { %4423 = vmatprep.subr.bf16.mxu0 %v6027_v45  ;;  %4460 = vmatprep.subr.bf16.mxu1 %v6043_v35  ;;  %v1206_v8 = vld [vmem:[#allocation12 + $0xf38] sm:$0xff]  ;;  %v5986_v45 = vcombine.low %v1058_v1, %v1062_v3  ;;  %v6469_v3 = vld [vmem:[%s7583_s10 + $0xf0] sm:$0xff]  }
 0x509   :  { %v6131_v21 = vcombine.high %v1202_v7, %v1206_v8  ;;  %v1050_v22 = vld [vmem:[#allocation12 + $0xa58] sm:$0xff]  ;;  %v6130_v35 = vcombine.low %v1202_v7, %v1206_v8 }
 0x50a   :  { %v1054_v23 = vld [vmem:[#allocation12 + $0xa78] sm:$0xff] }
 0x50b   :  { %4424 = vmatpush2.bf16.msra.mxu0 %v6026_v34  ;;  %4461 = vmatpush1.bf16.msra.mxu1 %v6042_v36  ;;  %v1194_v24 = vld [vmem:[#allocation12 + $0xed8] sm:$0xff]  ;;  %v5979_v29 = vcombine.high %v1050_v22, %v1054_v23 }
 0x50c   :  { %4425 = vmatprep.subr.bf16.mxu0 %v6019_v38  ;;  %4462 = vmatprep.subr.bf16.mxu1 %v6035_v11  ;;  %v1198_v28 = vld [vmem:[#allocation12 + $0xef8] sm:$0xff]  ;;  %v5978_v38 = vcombine.low %v1050_v22, %v1054_v23  ;;  %v6474_v23 = vld [vmem:[%s7583_s10 + $0x18] sm:$0xff]  }
 0x50d   :  { %v6123_v31 = vcombine.high %v1194_v24, %v1198_v28  ;;  %v1042_v48 = vld [vmem:[#allocation12 + $0xa18] sm:$0xff]  ;;  %v6122_v11 = vcombine.low %v1194_v24, %v1198_v28 }
 0x50e   :  { %v1046_v33 = vld [vmem:[#allocation12 + $0xa38] sm:$0xff] }
 0x50f   :  { %4426 = vmatpush2.bf16.msra.mxu0 %v6018_v44  ;;  %4463 = vmatpush1.bf16.msra.mxu1 %v6034_v47  ;;  %v1186_v34 = vld [vmem:[#allocation12 + $0xe98] sm:$0xff]  ;;  %v5971_v12 = vcombine.high %v1042_v48, %v1046_v33  ;;  %v5970_v44 = vcombine.low %v1042_v48, %v1046_v33  ;;  %v6481_v33 = vld [vmem:[%s7583_s10 + $0xd8] sm:$0xff]  }
 0x510   :  { %4427 = vmatprep.subr.bf16.mxu0 %v6011_v49  ;;  %4464 = vmatprep.subr.bf16.mxu1 %v6155_v18  ;;  %v1190_v36 = vld [vmem:[#allocation12 + $0xeb8] sm:$0xff]  ;;  %v6460_v18 = vld [vmem:[%s7583_s10 + $0x78] sm:$0xff]  }
 0x511   :  { %v6115_v13 = vcombine.high %v1186_v34, %v1190_v36  ;;  %v1178_v41 = vld [vmem:[#allocation12 + $0xe58] sm:$0xff]  ;;  %v6114_v47 = vcombine.low %v1186_v34, %v1190_v36  ;;  %v6483_v36 = vld [vmem:[%s7583_s10 + $0x98] sm:$0xff]  }
 0x512   :  { %v1182_v42 = vld [vmem:[#allocation12 + $0xe78] sm:$0xff] }
 0x513   :  { %4428 = vmatpush2.bf16.msra.mxu0 %v6010_v52  ;;  %4465 = vmatpush2.bf16.msra.mxu1 %v6154_v37  ;;  %v6107_v49 = vcombine.high %v1178_v41, %v1182_v42  ;;  %v1170_v50 = vld [vmem:[#allocation12 + $0xe18] sm:$0xff]  ;;  %v6106_v51 = vcombine.low %v1178_v41, %v1182_v42  ;;  %v6461_v52 = vld [vmem:[%s7583_s10 + $0x38] sm:$0xff]   ;;  %v4116_v37 = vadd.f32 %v7130_v14, %v7125_v40  ;;  %v6463_v40 = vld [vmem:[%s7583_s10 + $0x30] sm:$0xff]   ;;  %v4489_v41 = vmax.f32 %v7110_v15, 0.0 }
 0x514   :  { %4429 = vmatprep.subr.bf16.mxu0 %v6003_v53  ;;  %4466 = vmatprep.subr.bf16.mxu1 %v6147_v54  ;;  %v1174_v5 = vld [vmem:[#allocation12 + $0xe38] sm:$0xff]  ;;  %v6462_v54 = vld [vmem:[%s7583_s10 + $0x70] sm:$0xff]   ;;  %v6493_v15 = vld [vmem:[%s7583_s10 + $0x138] sm:$0xff]  }
 0x515   :  { %v6099_v53 = vcombine.high %v1170_v50, %v1174_v5  ;;  %v4157_v30 = vadd.f32 %v7136_v39, %v4116_v37  ;;  %v6098_v59 = vcombine.low %v1170_v50, %v1174_v5  ;;  %v6464_v6 = vld [vmem:[%s7583_s10 + $0x68] sm:$0xff]   ;;  %v6465_v39 = vld [vmem:[%s7583_s10 + $0xf8] sm:$0xff]   ;;  %v6468_v1 = vld [vmem:[%s7583_s10 + $0x60] sm:$0xff]  }
 0x516   :  { %v6475_v24 = vld [vmem:[%s7583_s10 + $0xa8] sm:$0xff]   ;;  %v6494_v50 = vld [vmem:[%s7583_s10 + $0x170] sm:$0xff]   ;;  %v6491_v5 = vld [vmem:[%s7583_s10 + $0x80] sm:$0xff]  }
 0x517   :  { %4430 = vmatpush2.bf16.msra.mxu0 %v6002_v60  ;;  %4467 = vmatpush2.bf16.msra.mxu1 %v6146_v63  ;;  %v6466_v63 = vld [vmem:[%s7583_s10 + $0x28] sm:$0xff]   ;;  %v6508_v37 = vld [vmem:[%s7583_s10 + $0x1f8] sm:$0xff]  }
 0x518   :  { %4431 = vmatprep.subr.bf16.mxu0 %v5995_v61  ;;  %4468 = vmatprep.subr.bf16.mxu1 %v6139_v62  ;;  %v6467_v61 = vld [vmem:[%s7583_s10 + $0xb8] sm:$0xff]   ;;  %v6480_v48 = vld [vmem:[%s7583_s10 + $0x48] sm:$0xff]  }
 0x519   :  { %v6482_v34 = vld [vmem:[%s7583_s10 + $0x8] sm:$0xff]  }
 0x51a   :  { %v6488_v42 = vld [vmem:[%s7583_s10 + $0xc8] sm:$0xff]  }
 0x51b   :  { %4432 = vmatpush2.bf16.msra.mxu0 %v5994_v9  ;;  %4469 = vmatpush2.bf16.msra.mxu1 %v6138_v10  ;;  %v6470_v9 = vld [vmem:[%s7583_s10 + $0x20] sm:$0xff]   ;;  %v6471_v10 = vld [vmem:[%s7583_s10 + $0xb0] sm:$0xff]  }
 0x51c   :  { %4433 = vmatprep.subr.bf16.mxu0 %v5987_v43  ;;  %4470 = vmatprep.subr.bf16.mxu1 %v6131_v21  ;;  %v6472_v21 = vld [vmem:[%s7583_s10 + $0x58] sm:$0xff]  }
 0x51f   :  { %4434 = vmatpush2.bf16.msra.mxu0 %v5986_v45  ;;  %4471 = vmatpush2.bf16.msra.mxu1 %v6130_v35  ;;  %v6476_v45 = vld [vmem:[%s7583_s10 + $0x50] sm:$0xff]   ;;  %v6477_v35 = vld [vmem:[%s7583_s10 + $0xe0] sm:$0xff]  }
 0x520   :  { %4435 = vmatprep.subr.bf16.mxu0 %v5979_v29  ;;  %4472 = vmatprep.subr.bf16.mxu1 %v6123_v31  ;;  %v6478_v29 = vld [vmem:[%s7583_s10 + $0x10] sm:$0xff]   ;;  %v6479_v31 = vld [vmem:[%s7583_s10 + $0xa0] sm:$0xff]  }
 0x523   :  { %4436 = vmatpush2.bf16.msra.mxu0 %v5978_v38  ;;  %4473 = vmatpush2.bf16.msra.mxu1 %v6122_v11  ;;  %v6484_v38 = vld [vmem:[%s7583_s10 + $0x40] sm:$0xff]   ;;  %v6485_v11 = vld [vmem:[%s7583_s10 + $0xd0] sm:$0xff]  }
 0x524   :  { %4437 = vmatprep.subr.bf16.mxu0 %v5971_v12  ;;  %4474 = vmatprep.subr.bf16.mxu1 %v6115_v13  ;;  %v6486_v12 = vld [vmem:[%s7583_s10] sm:$0xff]   ;;  %v6487_v13 = vld [vmem:[%s7583_s10 + $0x90] sm:$0xff]  }
 0x527   :  { %4438 = vmatpush2.bf16.msra.mxu0 %v5970_v44  ;;  %4475 = vmatpush2.bf16.msra.mxu1 %v6114_v47  ;;  %v6492_v44 = vld [vmem:[%s7583_s10 + $0x178] sm:$0xff]   ;;  %v6489_v47 = vld [vmem:[%s7583_s10 + $0x88] sm:$0xff]  }
 0x528   :  { %4476 = vmatprep.subr.bf16.mxu1 %v6107_v49  ;;  %6243 = vmatprep.subr.bf16.mxu0 %v6460_v18  ;;  %v4497_v49 = vpack.c.bf16 %v4489_v41, %v4489_v41  ;;  %v6490_v18 = vld [vmem:[%s7583_s10 + $0xc0] sm:$0xff]  }
 0x52a   :  { %v7151_v57 = vpop.f32.mrf.mxu0  ;;  %4440 = vmatmul.mubr.bf16.vlgmr.msra.gmra.mxu0 %v7078_v46  ;;  %v4492_v46 = vmax.f32 %v4157_v30, 0.0  ;;  %v6510_v30 = vld [vmem:[%s7583_s10 + $0x1f0] sm:$0xff]  }
 0x52b   :  { %4477 = vmatpush2.bf16.msra.mxu1 %v6106_v51  ;;  %6244 = vmatpush3.bf16.msra.mxu0 %v6461_v52  ;;  %v4491_v51 = vmax.f32 %v7133_v25, 0.0  ;;  %v6496_v52 = vld [vmem:[%s7583_s10 + $0x168] sm:$0xff]   ;;  %v6509_v25 = vld [vmem:[%s7583_s10 + $0x1b8] sm:$0xff]  }
 0x52c   :  { %5056 = vmatprep.mubr.bf16.mxu0 %v4498_v56  ;;  %v7157_v14 = vpop.f32.mrf.mxu0  ;;  %4478 = vmatprep.subr.bf16.mxu1 %v6099_v53  ;;  %v4500_v7 = vpack.c.bf16 %v4492_v46, %v4492_v46  ;;  %v6497_v53 = vld [vmem:[%s7583_s10 + $0x128] sm:$0xff]   ;;  %v6498_v56 = vld [vmem:[%s7583_s10 + $0x160] sm:$0xff]   ;;  %v6501_v46 = vld [vmem:[%s7583_s10 + $0x118] sm:$0xff]  }
 0x52d   :  { %6245 = vmatprep.subr.bf16.mxu0 %v6462_v54  ;;  %v4499_v54 = vpack.c.bf16 %v4491_v51, %v4491_v51 }
 0x52e   :  { %v4199_v60 = vpop.f32.mrf.mxu0 }
 0x52f   :  { %4479 = vmatpush2.bf16.msra.mxu1 %v6098_v59  ;;  %6246 = vmatpush3.bf16.msra.mxu0 %v6463_v40  ;;  %v6499_v59 = vld [vmem:[%s7583_s10 + $0x120] sm:$0xff]   ;;  %v6511_v40 = vld [vmem:[%s7583_s10 + $0x1b0] sm:$0xff]   ;;  %v6513_v60 = vld [vmem:[%s7583_s10 + $0x1a8] sm:$0xff]  }
 0x530   :  { %v4200_v62 = vpop.f32.mrf.mxu0  ;;  %6247 = vmatprep.subr.bf16.mxu0 %v6464_v6  ;;  %6265 = vmatprep.subr.bf16.mxu1 %v6465_v39  ;;  %v6500_v6 = vld [vmem:[%s7583_s10 + $0x158] sm:$0xff]   ;;  %v6512_v39 = vld [vmem:[%s7583_s10 + $0x1e8] sm:$0xff]  }
 0x531   :  { %v6503_v62 = vld [vmem:[%s7583_s10 + $0x110] sm:$0xff]  }
 0x532   :  { %v7177_v8 = vpop.f32.mrf.mxu1  ;;  %4481 = vmatmul.mubr.bf16.vlgmr.msra.gmra.mxu1 %v7083_v4  ;;  %v6473_v4 = vld [vmem:[%s7583_s10 + $0xe8] sm:$0xff]  }
 0x533   :  { %6248 = vmatpush3.bf16.msra.mxu0 %v6466_v63  ;;  %6266 = vmatpush3.bf16.msra.mxu1 %v6467_v61  ;;  %v6502_v63 = vld [vmem:[%s7583_s10 + $0x150] sm:$0xff]   ;;  %v6514_v61 = vld [vmem:[%s7583_s10 + $0x1e0] sm:$0xff]  }
 0x534   :  { %5096 = vmatprep.mubr.bf16.mxu1 %v4500_v7  ;;  %v7186_v43 = vpop.f32.mrf.mxu1  ;;  %6249 = vmatprep.subr.bf16.mxu0 %v6468_v1  ;;  %v6515_v1 = vld [vmem:[%s7583_s10 + $0x1a0] sm:$0xff]   ;;  %v6505_v7 = vld [vmem:[%s7583_s10 + $0x108] sm:$0xff]  }
 0x535   :  { %6267 = vmatprep.subr.bf16.mxu1 %v6469_v3  ;;  %v6504_v3 = vld [vmem:[%s7583_s10 + $0x148] sm:$0xff]  }
 0x536   :  { %v4240_v22 = vpop.f32.mrf.mxu1 }
 0x537   :  { %6250 = vmatpush3.bf16.msra.mxu0 %v6470_v9  ;;  %6268 = vmatpush3.bf16.msra.mxu1 %v6471_v10  ;;  %v6506_v9 = vld [vmem:[%s7583_s10 + $0x140] sm:$0xff]  }
 0x538   :  { %v4241_v28 = vpop.f32.mrf.mxu1  ;;  %6251 = vmatprep.subr.bf16.mxu0 %v6472_v21  ;;  %6269 = vmatprep.subr.bf16.mxu1 %v6473_v4  ;;  %v6507_v10 = vld [vmem:[%s7583_s10 + $0x100] sm:$0xff]   ;;  %v6528_v21 = vld [vmem:[#allocation13] sm:$0xff] }
 0x539   :  { %v1252_v4 = vrot.slane %v6528_v21, %v434_v58 }
 0x53b   :  { %6252 = vmatpush3.bf16.msra.mxu0 %v6474_v23  ;;  %6270 = vmatpush3.bf16.msra.mxu1 %v6475_v24  ;;  %v1256_v23 = vrot.slane %v6528_v21, %v438_v20  ;;  %v6516_v24 = vld [vmem:[%s7583_s10 + $0x1d8] sm:$0xff]   ;;  %v6518_v20 = vld [vmem:[%s7583_s10 + $0x1d0] sm:$0xff]  }
 0x53c   :  { %6253 = vmatprep.subr.bf16.mxu0 %v6476_v45  ;;  %6271 = vmatprep.subr.bf16.mxu1 %v6477_v35  ;;  %v6517_v45 = vld [vmem:[%s7583_s10 + $0x198] sm:$0xff]   ;;  %v4196_v35 = vadd.f32 %v7151_v57, %v1252_v4 }
 0x53d   :  { %v4198_v58 = vadd.f32 %v7157_v14, %v1256_v23  ;;  %v6520_v14 = vld [vmem:[%s7583_s10 + $0x1c8] sm:$0xff]  }
 0x53f   :  { %6254 = vmatpush3.bf16.msra.mxu0 %v6478_v29  ;;  %6272 = vmatpush3.bf16.msra.mxu1 %v6479_v31  ;;  %v4237_v31 = vadd.f32 %v7177_v8, %v4196_v35  ;;  %v6156_v35 = vld [vmem:[#allocation15] ss:$0 sm:$0xff] }
 0x540   :  { %6255 = vmatprep.subr.bf16.mxu0 %v6480_v48  ;;  %6273 = vmatprep.subr.bf16.mxu1 %v6481_v33  ;;  %v6519_v33 = vld [vmem:[%s7583_s10 + $0x190] sm:$0xff]  }
 0x543   :  { %6256 = vmatpush3.bf16.msra.mxu0 %v6482_v34  ;;  %6274 = vmatpush3.bf16.msra.mxu1 %v6483_v36  ;;  %v4239_v34 = vadd.f32 %v7186_v43, %v4198_v58 }
 0x544   :  { %6257 = vmatprep.subr.bf16.mxu0 %v6484_v38  ;;  %6275 = vmatprep.subr.bf16.mxu1 %v6485_v11 }
 0x547   :  { %6258 = vmatpush3.bf16.msra.mxu0 %v6486_v12  ;;  %6276 = vmatpush3.bf16.msra.mxu1 %v6487_v13  ;;  %v6521_v12 = vld [vmem:[%s7583_s10 + $0x188] sm:$0xff]  }
 0x548   :  { %6277 = vmatprep.subr.bf16.mxu1 %v6488_v42  ;;  %6287 = vmatprep.subr.bf16.mxu0 %v6492_v44  ;;  %v6522_v44 = vld [vmem:[%s7583_s10 + $0x1c0] sm:$0xff]  }
 0x54a   :  { %5057 = vmatmul.mubr.bf16.vlgmr.msra.gmra.mxu0 %v4497_v49 }
 0x54b   :  { %6278 = vmatpush3.bf16.msra.mxu1 %v6489_v47  ;;  %6288 = vmatpush3.bf16.msra.mxu0 %v6493_v15  ;;  %v6523_v15 = vld [vmem:[%s7583_s10 + $0x180] sm:$0xff]  }
 0x54c   :  { %6279 = vmatprep.subr.bf16.mxu1 %v6490_v18  ;;  %6289 = vmatprep.subr.bf16.mxu0 %v6494_v50 }
 0x54f   :  { %6280 = vmatpush3.bf16.msra.mxu1 %v6491_v5  ;;  %6290 = vmatpush3.bf16.msra.mxu0 %v6495_v2 }
 0x550   :  { %6291 = vmatprep.subr.bf16.mxu0 %v6496_v52  ;;  %6309 = vmatprep.subr.bf16.mxu1 %v6508_v37 }
 0x552   :  { %5097 = vmatmul.mubr.bf16.vlgmr.msra.gmra.mxu1 %v4499_v54  ;;  %v1260_v54 = vrot.slane %v6528_v21, %v442_v26 }
 0x553   :  { %6292 = vmatpush3.bf16.msra.mxu0 %v6497_v53  ;;  %6310 = vmatpush3.bf16.msra.mxu1 %v6509_v25 }
 0x554   :  { %6293 = vmatprep.subr.bf16.mxu0 %v6498_v56  ;;  %6311 = vmatprep.subr.bf16.mxu1 %v6510_v30  ;;  %v1264_v30 = vrot.slane %v6528_v21, %v446_v55 }
 0x557   :  { %6294 = vmatpush3.bf16.msra.mxu0 %v6499_v59  ;;  %6312 = vmatpush3.bf16.msra.mxu1 %v6511_v40 }
 0x558   :  { %6295 = vmatprep.subr.bf16.mxu0 %v6500_v6  ;;  %6313 = vmatprep.subr.bf16.mxu1 %v6512_v39 }
 0x55b   :  { %6296 = vmatpush3.bf16.msra.mxu0 %v6501_v46  ;;  %6314 = vmatpush3.bf16.msra.mxu1 %v6513_v60 }
 0x55c   :  { %6297 = vmatprep.subr.bf16.mxu0 %v6502_v63  ;;  %6315 = vmatprep.subr.bf16.mxu1 %v6514_v61 }
 0x55f   :  { %6298 = vmatpush3.bf16.msra.mxu0 %v6503_v62  ;;  %6316 = vmatpush3.bf16.msra.mxu1 %v6515_v1 }
 0x560   :  { %6299 = vmatprep.subr.bf16.mxu0 %v6504_v3  ;;  %6317 = vmatprep.subr.bf16.mxu1 %v6516_v24 }
 0x563   :  { %6300 = vmatpush3.bf16.msra.mxu0 %v6505_v7  ;;  %6318 = vmatpush3.bf16.msra.mxu1 %v6517_v45 }
 0x564   :  { %6301 = vmatprep.subr.bf16.mxu0 %v6506_v9  ;;  %6319 = vmatprep.subr.bf16.mxu1 %v6518_v20 }
 0x567   :  { %6302 = vmatpush3.bf16.msra.mxu0 %v6507_v10  ;;  %6320 = vmatpush3.bf16.msra.mxu1 %v6519_v33 }
 0x568   :  { %6321 = vmatprep.subr.bf16.mxu1 %v6520_v14 }
 0x56a   :  { %v4277_v22 = vpop.f32.mrf.mxu0 }
 0x56b   :  { %v4278_v36 = vadd.f32 %v4277_v22, %v4237_v31  ;;  %6322 = vmatpush3.bf16.msra.mxu1 %v6521_v12  ;;  %v5211_v12 = vld [vmem:[#allocation16 + $0x20] sm:$0xff] }
 0x56c   :  { %v4279_v28 = vpop.f32.mrf.mxu0  ;;  %6323 = vmatprep.subr.bf16.mxu1 %v6522_v44 }
 0x56d   :  { %v4280_v38 = vadd.f32 %v4279_v28, %v4239_v34 }
 0x56e   :  { %v4281_v29 = vpop.f32.mrf.mxu0 }
 0x56f   :  { %6324 = vmatpush3.bf16.msra.mxu1 %v6523_v15 }
 0x570   :  { %v4282_v48 = vpop.f32.mrf.mxu0 }
 0x572   :  { %v4318_v57 = vpop.f32.mrf.mxu1 }
 0x573   :  { %v4319_v11 = vadd.f32 %v4318_v57, %v4278_v36 }
 0x574   :  { %v4320_v8 = vpop.f32.mrf.mxu1 }
 0x575   :  { %v4321_v13 = vadd.f32 %v4320_v8, %v4280_v38  ;;  %v4493_v41 = vmax.f32 %v4319_v11, 0.0 }
 0x576   :  { %v4322_v42 = vpop.f32.mrf.mxu1 }
 0x577   :  { %v4494_v43 = vmax.f32 %v4321_v13, 0.0  ;;  %v4501_v18 = vpack.c.bf16 %v4493_v41, %v4493_v41  ;;  %v5214_v13 = vld [vmem:[#allocation16 + $0x38] sm:$0xff]  ;;  %v5213_v41 = vld [vmem:[#allocation16 + $0x30] sm:$0xff]  ;;  %v5208_v42 = vld [vmem:[#allocation16 + $0x8] sm:$0xff] }
 0x578   :  { %v4323_v47 = vpop.f32.mrf.mxu1  ;;  %5340 = vmatprep.subr.mxu1 %v5214_v13  ;;  %v5443_v13 = vld [vmem:[%s7587_s14 + $0x1c0] sm:$0xff] }
 0x579   :  { %v4502_v49 = vpack.c.bf16 %v4494_v43, %v4494_v43 }
 0x57b   :  { %5136 = vmatprep.mubr.bf16.mxu0 %v4502_v49 }
 0x57c   :  { %5137 = vmatmul.mubr.bf16.vlgmr.msra.gmra.mxu0 %v4501_v18 }
 0x57d   :  { %5305 = vmatprep.mubr.f32.mxu0 %v6799_v0 }
 0x5aa   :  { %v4359_v50 = vpop.f32.mrf.mxu0 }
 0x5ab   :  { %v4360_v40 = vadd.f32 %v4359_v50, %v1260_v54  ;;  %v5210_v54 = vld [vmem:[#allocation16 + $0x18] sm:$0xff] }
 0x5ac   :  { %v4361_v5 = vpop.f32.mrf.mxu0 }
 0x5ad   :  { %v4362_v39 = vadd.f32 %v4361_v5, %v1264_v30 }
 0x5ae   :  { %v4363_v2 = vpop.f32.mrf.mxu0 }
 0x5b0   :  { %v4364_v51 = vpop.f32.mrf.mxu0 }
 0x5b2   :  { %v4400_v52 = vpop.f32.mrf.mxu1 }
 0x5b3   :  { %v4401_v46 = vadd.f32 %v4400_v52, %v4360_v40  ;;  %v5450_v40 = vld [vmem:[%s7587_s14 + $0x1f8] sm:$0xff] }
 0x5b4   :  { %v4402_v37 = vpop.f32.mrf.mxu1 }
 0x5b5   :  { %v4403_v63 = vadd.f32 %v4402_v37, %v4362_v39 }
 0x5b6   :  { %v4404_v53 = vpop.f32.mrf.mxu1 }
 0x5b8   :  { %v4405_v25 = vpop.f32.mrf.mxu1 }
 0x5b9   :  { %v5207_v25 = vld [vmem:[#allocation16] sm:$0xff] }
 0x5ea   :  { %v4441_v56 = vpop.f32.mrf.mxu0 }
 0x5eb   :  { %v4442_v61 = vadd.f32 %v4441_v56, %v4401_v46  ;;  %v5209_v56 = vld [vmem:[#allocation16 + $0x10] sm:$0xff] }
 0x5ec   :  { %v4443_v59 = vpop.f32.mrf.mxu0 }
 0x5ed   :  { %v4444_v1 = vadd.f32 %v4443_v59, %v4403_v63  ;;  %v5418_v59 = vld [vmem:[%s7587_s14 + $0xf8] sm:$0xff] }
 0x5ee   :  { %v4445_v6 = vpop.f32.mrf.mxu0 }
 0x5f0   :  { %v4446_v60 = vpop.f32.mrf.mxu0 }
 0x5f2   :  { %v4482_v62 = vpop.f32.mrf.mxu1 }
 0x5f3   :  { %v4483_v3 = vadd.f32 %v4482_v62, %v4442_v61 }
 0x5f4   :  { %v4484_v7 = vpop.f32.mrf.mxu1 }
 0x5f5   :  { %v4485_v9 = vadd.f32 %v4484_v7, %v4444_v1  ;;  %v4495_v10 = vmax.f32 %v4483_v3, 0.0  ;;  %v5200_v1 = vld [vmem:[#allocation2] sm:$0x3] }
 0x5f6   :  { %v4486_v4 = vpop.f32.mrf.mxu1 }
 0x5f7   :  { %v4496_v26 = vmax.f32 %v4485_v9, 0.0  ;;  %v4503_v16 = vpack.c.bf16 %v4495_v10, %v4495_v10  ;;  %v5402_v10 = vld [vmem:[%s7587_s14 + $0x78] sm:$0xff] }
 0x5f8   :  { %v4487_v22 = vpop.f32.mrf.mxu1  ;;  %v5434_v4 = vld [vmem:[%s7587_s14 + $0x178] sm:$0xff] }
 0x5f9   :  { %v4504_v23 = vpack.c.bf16 %v4496_v26, %v4496_v26  ;;  %v5417_v26 = vld [vmem:[%s7587_s14 + $0xf0] sm:$0xff] }
 0x5fa   :  { %v5449_v22 = vld [vmem:[%s7587_s14 + $0x1f0] sm:$0xff] }
 0x5fb   :  { %5176 = vmatprep.mubr.bf16.mxu1 %v4504_v23  ;;  %v5401_v23 = vld [vmem:[%s7587_s14 + $0x70] sm:$0xff] }
 0x5fc   :  { %5177 = vmatmul.mubr.bf16.vlgmr.msra.gmra.mxu1 %v4503_v16  ;;  %v5433_v16 = vld [vmem:[%s7587_s14 + $0x170] sm:$0xff] }
 0x5fd   :  { %5376 = vmatprep.mubr.f32.mxu1 %v6799_v0  ;;  %v5212_v0 = vld [vmem:[#allocation16 + $0x28] sm:$0xff]  ;;  %5341 = vmatpush1.msra.mxu1 %v5213_v41 }
 0x5fe   :  { %5269 = vmatprep.subr.mxu0 %v5212_v0  ;;  %5342 = vmatprep.subr.mxu1 %v5210_v54  ;;  %v5428_v0 = vld [vmem:[%s7587_s14 + $0x148] sm:$0xff]  ;;  %v5395_v41 = vld [vmem:[%s7587_s14 + $0x40] sm:$0xff] }
 0x5ff   :  { %5270 = vmatpush1.msra.mxu0 %v5211_v12  ;;  %5343 = vmatpush1.msra.mxu1 %v5209_v56  ;;  %v5411_v12 = vld [vmem:[%s7587_s14 + $0xc0] sm:$0xff] }
 0x600   :  { %5271 = vmatprep.subr.mxu0 %v5208_v42  ;;  %6366 = vmatprep.subr.mxu1 %v5450_v40  ;;  %v5427_v42 = vld [vmem:[%s7587_s14 + $0x140] sm:$0xff]  ;;  %v5438_v40 = vld [vmem:[%s7587_s14 + $0x198] sm:$0xff] }
 0x601   :  { %5272 = vmatpush1.msra.mxu0 %v5207_v25  ;;  %v5407_v25 = vld [vmem:[%s7587_s14 + $0xa0] sm:$0xff] }
 0x602   :  { %6331 = vmatprep.subr.mxu0 %v5418_v59  ;;  %v5439_v54 = vld [vmem:[%s7587_s14 + $0x1a0] sm:$0xff]  ;;  %v5406_v59 = vld [vmem:[%s7587_s14 + $0x98] sm:$0xff] }
 0x603   :  { %v5391_v56 = vld [vmem:[%s7587_s14 + $0x20] sm:$0xff] }
 0x60a   :  { %v6259_v55 = vpop.f32.mrf.mxu0 }
 0x60c   :  { %v6260_v21 = vpop.f32.mrf.mxu0 }
 0x60d   :  { %v6261_v24 = vadd.f32 %v6260_v21, %v6259_v55  ;;  %v5416_v55 = vld [vmem:[%s7587_s14 + $0xe8] sm:$0xff] }
 0x60e   :  { %v6262_v28 = vpop.f32.mrf.mxu0  ;;  %v5448_v21 = vld [vmem:[%s7587_s14 + $0x1e8] sm:$0xff] }
 0x60f   :  { %v5059_v31 = vadd.f32 %v6261_v24, %v6156_v35  ;;  %v5400_v24 = vld [vmem:[%s7587_s14 + $0x68] sm:$0xff]  ;;  %v5447_v35 = vld [vmem:[%s7587_s14 + $0x1e0] sm:$0xff] }
 0x610   :  { %v6263_v45 = vpop.f32.mrf.mxu0  ;;  %v5432_v28 = vld [vmem:[%s7587_s14 + $0x168] sm:$0xff] }
 0x611   :  { %v5415_v45 = vld [vmem:[%s7587_s14 + $0xe0] sm:$0xff] }
 0x612   :  { %v6281_v29 = vpop.f32.mrf.mxu1 }
 0x614   :  { %v6282_v58 = vpop.f32.mrf.mxu1 }
 0x615   :  { %v6283_v20 = vadd.f32 %v6282_v58, %v6281_v29  ;;  %v5399_v29 = vld [vmem:[%s7587_s14 + $0x60] sm:$0xff] }
 0x616   :  { %v6284_v48 = vpop.f32.mrf.mxu1  ;;  %v5431_v58 = vld [vmem:[%s7587_s14 + $0x160] sm:$0xff] }
 0x617   :  { %v5099_v33 = vadd.f32 %v6283_v20, %v5059_v31  ;;  %v5414_v31 = vld [vmem:[%s7587_s14 + $0xd8] sm:$0xff] }
 0x618   :  { %v6285_v34 = vpop.f32.mrf.mxu1  ;;  %v5446_v20 = vld [vmem:[%s7587_s14 + $0x1d8] sm:$0xff] }
 0x619   :  { %v5398_v48 = vld [vmem:[%s7587_s14 + $0x58] sm:$0xff]  ;;  %v5413_v34 = vld [vmem:[%s7587_s14 + $0xd0] sm:$0xff] }
 0x63c   :  { %v6303_v36 = vpop.f32.mrf.mxu0 }
 0x63e   :  { %v6304_v57 = vpop.f32.mrf.mxu0 }
 0x63f   :  { %v6305_v38 = vadd.f32 %v6304_v57, %v6303_v36  ;;  %v5445_v36 = vld [vmem:[%s7587_s14 + $0x1d0] sm:$0xff] }
 0x640   :  { %v6306_v11 = vpop.f32.mrf.mxu0  ;;  %v5397_v57 = vld [vmem:[%s7587_s14 + $0x50] sm:$0xff] }
 0x641   :  { %v5139_v14 = vadd.f32 %v6305_v38, %v5099_v33  ;;  %v5430_v33 = vld [vmem:[%s7587_s14 + $0x158] sm:$0xff]  ;;  %v5429_v38 = vld [vmem:[%s7587_s14 + $0x150] sm:$0xff]  ;;  %v5412_v11 = vld [vmem:[%s7587_s14 + $0xc8] sm:$0xff] }
 0x642   :  { %v6307_v8 = vpop.f32.mrf.mxu0 }
 0x643   :  { %v5396_v8 = vld [vmem:[%s7587_s14 + $0x48] sm:$0xff] }
 0x6bc   :  { %v6325_v43 = vpop.f32.mrf.mxu1 }
 0x6be   :  { %v6326_v44 = vpop.f32.mrf.mxu1 }
 0x6bf   :  { %v6327_v47 = vadd.f32 %v6326_v44, %v6325_v43  ;;  %v5410_v43 = vld [vmem:[%s7587_s14 + $0xb8] sm:$0xff] }
 0x6c0   :  { %v6328_v15 = vpop.f32.mrf.mxu1  ;;  %v5442_v44 = vld [vmem:[%s7587_s14 + $0x1b8] sm:$0xff] }
 0x6c1   :  { %v7360_v49 = vadd.f32 %v6327_v47, %v5139_v14  ;;  %v5444_v14 = vld [vmem:[%s7587_s14 + $0x1c8] sm:$0xff]  ;;  %v5394_v47 = vld [vmem:[%s7587_s14 + $0x38] sm:$0xff] }
 0x6c2   :  { %v6329_v18 = vpop.f32.mrf.mxu1  ;;  %v5426_v15 = vld [vmem:[%s7587_s14 + $0x138] sm:$0xff] }
 0x6c3   :  { %v6221_v50 = vadd.f32 -5.0, %v7360_v49  ;;  %v5409_v18 = vld [vmem:[%s7587_s14 + $0xb0] sm:$0xff] }
 0x6c5   :  { %v5186_v5 = vand.u32 2147483647, %v6221_v50  ;;  %v5185_v63 = vmax.f32 %v6221_v50, 0.0  ;;  %v5441_v50 = vld [vmem:[%s7587_s14 + $0x1b0] sm:$0xff] }
 0x6c7   :  { %v5187_v2 = vsub.f32 0.0, %v5186_v5  ;;  %v5393_v5 = vld [vmem:[%s7587_s14 + $0x30] sm:$0xff] }
 0x6c9   :  { %v5188_v51 = vmul.f32 1.442695, %v5187_v2  ;;  %v5425_v2 = vld [vmem:[%s7587_s14 + $0x130] sm:$0xff] }
 0x6cb   :  { %6524 = vpow2.f32 %v5188_v51  ;;  %v5408_v51 = vld [vmem:[%s7587_s14 + $0xa8] sm:$0xff] }
 0x6d8   :  { %v6525_v52 = vpop.eup %6524 }
 0x6d9   :  { %v5190_v37 = vadd.f32 1.0, %v6525_v52  ;;  %v5193_v53 = vmul.f32 -0.5, %v6525_v52  ;;  %v5196_v6 = vand.u32 2147483647, %v6525_v52 }
 0x6db   :  { %6526 = vlog2.f32 %v5190_v37  ;;  %v5194_v30 = vadd.f32 1.0, %v5193_v53  ;;  %vm5197_vm4 = vcmp.lt.f32.partialorder %v5196_v6, 0.0004427343  ;;  %v5392_v37 = vld [vmem:[%s7587_s14 + $0x28] sm:$0xff]  ;;  %v5390_v6 = vld [vmem:[%s7587_s14 + $0x18] sm:$0xff] }
 0x6dc   :  { %v5424_v53 = vld [vmem:[%s7587_s14 + $0x128] sm:$0xff] }
 0x6dd   :  { %v5195_v60 = vmul.f32 %v6525_v52, %v5194_v30  ;;  %v5440_v52 = vld [vmem:[%s7587_s14 + $0x1a8] sm:$0xff]  ;;  %v5423_v30 = vld [vmem:[%s7587_s14 + $0x120] sm:$0xff] }
 0x6e8   :  { %v6527_v39 = vpop.eup %6526 }
 0x6e9   :  { %v5192_v46 = vmul.f32 0.6931472, %v6527_v39  ;;  %v5422_v39 = vld [vmem:[%s7587_s14 + $0x118] sm:$0xff] }
 0x6eb   :  { %v5198_v61 = vsel %vm5197_vm4, %v5195_v60, %v5192_v46  ;;  %v5405_v46 = vld [vmem:[%s7587_s14 + $0x90] sm:$0xff] }
 0x6ec   :  { %v7369_v62 = vadd.f32 %v5198_v61, %v5185_v63  ;;  %v5437_v60 = vld [vmem:[%s7587_s14 + $0x190] sm:$0xff] }
 0x6ed   :  { %v5389_v63 = vld [vmem:[%s7587_s14 + $0x10] sm:$0xff] }
 0x6ee   :  { %5202 = vrot.lane.b32.xlu1 %v7369_v62, %s6803_s28  ;;  %v5421_v61 = vld [vmem:[%s7587_s14 + $0x110] sm:$0xff] }
 0x760   :  { %v5203_v3 = vpop.permute.xlu1 %5202 }
 0x761   :  { %v5205_v7 = vmul.f32 %v5203_v3, %v5200_v1  ;;  %v5404_v1 = vld [vmem:[%s7587_s14 + $0x88] sm:$0xff] }
 0x762   :  { %v5436_v3 = vld [vmem:[%s7587_s14 + $0x188] sm:$0xff] }
 0x763   :  { %v5206_v9 = vadd.f32 %v5205_v7, %v7360_v49  ;;  %v5388_v7 = vld [vmem:[%s7587_s14 + $0x8] sm:$0xff] }
 0x765   :  { %6222 = vmatmul.mubr.msk.f32.vlgmr.msra.gmra.mxu0 %vm5237_vm5, %v5206_v9  ;;  %6223 = vmatmul.mubr.msk.f32.vlgmr.msra.gmra.mxu1 %vm5237_vm5, %v5206_v9  ;;  %v5420_v9 = vld [vmem:[%s7587_s14 + $0x108] sm:$0xff] }
 0x766   :  { %6332 = vmatpush3.msra.mxu0 %v5402_v10  ;;  %6367 = vmatpush3.msra.mxu1 %v5434_v4  ;;  %v5403_v10 = vld [vmem:[%s7587_s14 + $0x80] sm:$0xff] }
 0x767   :  { %6333 = vmatprep.subr.mxu0 %v5417_v26  ;;  %6368 = vmatprep.subr.mxu1 %v5449_v22  ;;  %v5435_v4 = vld [vmem:[%s7587_s14 + $0x180] sm:$0xff] }
 0x768   :  { %6334 = vmatpush3.msra.mxu0 %v5401_v23  ;;  %6369 = vmatpush3.msra.mxu1 %v5433_v16  ;;  %v5387_v26 = vld [vmem:[%s7587_s14] sm:$0xff]  ;;  %v5215_v23 = vld [vmem:[#allocation18] sm:$0xf] }
 0x769   :  { %6335 = vmatprep.subr.mxu0 %v5416_v55  ;;  %6370 = vmatprep.subr.mxu1 %v5448_v21  ;;  %v5419_v22 = vld [vmem:[%s7587_s14 + $0x100] sm:$0xff]  ;;  %v5220_v16 = vrot.slane %v5215_v23, %v7015_v17  ;;  %v5228_v55 = vrot.slane %v5215_v23, %v7033_v27  ;;  %v5224_v21 = vrot.slane %v5215_v23, %v7020_v19  ;;  %v6224_v27 = vld [vmem:[#allocation19] ss:$0 sm:$0xff] }
 0x76a   :  { %6336 = vmatpush3.msra.mxu0 %v5400_v24  ;;  %6371 = vmatpush3.msra.mxu1 %v5432_v28  ;;  %v5232_v24 = vrot.slane %v5215_v23, %v7036_v32 }
 0x76b   :  { %6337 = vmatprep.subr.mxu0 %v5415_v45  ;;  %6372 = vmatprep.subr.mxu1 %v5447_v35 }
 0x76c   :  { %6338 = vmatpush3.msra.mxu0 %v5399_v29  ;;  %6373 = vmatpush3.msra.mxu1 %v5431_v58 }
 0x76d   :  { %6339 = vmatprep.subr.mxu0 %v5414_v31  ;;  %6374 = vmatprep.subr.mxu1 %v5446_v20 }
 0x76e   :  { %6340 = vmatpush3.msra.mxu0 %v5398_v48  ;;  %6375 = vmatpush3.msra.mxu1 %v5430_v33 }
 0x76f   :  { %6341 = vmatprep.subr.mxu0 %v5413_v34  ;;  %6376 = vmatprep.subr.mxu1 %v5445_v36 }
 0x770   :  { %6342 = vmatpush3.msra.mxu0 %v5397_v57  ;;  %6377 = vmatpush3.msra.mxu1 %v5429_v38 }
 0x771   :  { %6343 = vmatprep.subr.mxu0 %v5412_v11  ;;  %6378 = vmatprep.subr.mxu1 %v5444_v14 }
 0x772   :  { %6344 = vmatpush3.msra.mxu0 %v5396_v8  ;;  %6379 = vmatpush3.msra.mxu1 %v5428_v0 }
 0x773   :  { %6345 = vmatprep.subr.mxu0 %v5411_v12  ;;  %6380 = vmatprep.subr.mxu1 %v5443_v13  ;;  %v5602_v13 = vsel %vm5237_vm5, %v7360_v49, %v7369_v62 }
 0x774   :  { %6346 = vmatpush3.msra.mxu0 %v5395_v41  ;;  %6381 = vmatpush3.msra.mxu1 %v5427_v42 }
 0x775   :  { %6347 = vmatprep.subr.mxu0 %v5410_v43  ;;  %6382 = vmatprep.subr.mxu1 %v5442_v44 }
 0x776   :  { %6348 = vmatpush3.msra.mxu0 %v5394_v47  ;;  %6383 = vmatpush3.msra.mxu1 %v5426_v15 }
 0x777   :  { %6349 = vmatprep.subr.mxu0 %v5409_v18  ;;  %6384 = vmatprep.subr.mxu1 %v5441_v50 }
 0x778   :  { %6350 = vmatpush3.msra.mxu0 %v5393_v5  ;;  %6385 = vmatpush3.msra.mxu1 %v5425_v2 }
 0x779   :  { %6351 = vmatprep.subr.mxu0 %v5408_v51  ;;  %6386 = vmatprep.subr.mxu1 %v5440_v52 }
 0x77a   :  { %6352 = vmatpush3.msra.mxu0 %v5392_v37  ;;  %6387 = vmatpush3.msra.mxu1 %v5424_v53 }
 0x77b   :  { %6353 = vmatprep.subr.mxu0 %v5407_v25  ;;  %6388 = vmatprep.subr.mxu1 %v5439_v54 }
 0x77c   :  { %6354 = vmatpush3.msra.mxu0 %v5391_v56  ;;  %6389 = vmatpush3.msra.mxu1 %v5423_v30 }
 0x77d   :  { %6355 = vmatprep.subr.mxu0 %v5406_v59  ;;  %6390 = vmatprep.subr.mxu1 %v5438_v40 }
 0x77e   :  { %6356 = vmatpush3.msra.mxu0 %v5390_v6  ;;  %6391 = vmatpush3.msra.mxu1 %v5422_v39 }
 0x77f   :  { %6357 = vmatprep.subr.mxu0 %v5405_v46  ;;  %6392 = vmatprep.subr.mxu1 %v5437_v60 }
 0x780   :  { %6358 = vmatpush3.msra.mxu0 %v5389_v63  ;;  %6393 = vmatpush3.msra.mxu1 %v5421_v61 }
 0x781   :  { %6359 = vmatprep.subr.mxu0 %v5404_v1  ;;  %6394 = vmatprep.subr.mxu1 %v5436_v3 }
 0x782   :  { %6360 = vmatpush3.msra.mxu0 %v5388_v7  ;;  %6395 = vmatpush3.msra.mxu1 %v5420_v9 }
 0x783   :  { %6361 = vmatprep.subr.mxu0 %v5403_v10  ;;  %6396 = vmatprep.subr.mxu1 %v5435_v4 }
 0x784   :  { %6362 = vmatpush3.msra.mxu0 %v5387_v26  ;;  %6397 = vmatpush3.msra.mxu1 %v5419_v22 }
 0x825   :  { %v5307_v28 = vpop.f32.mrf.mxu0  ;;  %v5378_v45 = vpop.f32.mrf.mxu1 }
 0x826   :  { %v5308_v35 = vadd.f32 %v5307_v28, %v5220_v16  ;;  %v5379_v29 = vadd.f32 %v5378_v45, %v5228_v55 }
 0x827   :  { %v5309_v58 = vpop.f32.mrf.mxu0  ;;  %v5380_v31 = vpop.f32.mrf.mxu1 }
 0x828   :  { %v5310_v20 = vadd.f32 %v5309_v58, %v5224_v21  ;;  %v5381_v48 = vadd.f32 %v5380_v31, %v5232_v24  ;;  %v5383_v36 = vmax.f32 %v5308_v35, 0.0  ;;  %v5385_v57 = vmax.f32 %v5379_v29, 0.0 }
 0x82a   :  { %v5384_v33 = vmax.f32 %v5310_v20, 0.0  ;;  %v5386_v34 = vmax.f32 %v5381_v48, 0.0 }
 0x82c   :  { %5522 = vmatprep.mubr.f32.mxu0 %v5384_v33  ;;  %5592 = vmatprep.mubr.f32.mxu1 %v5386_v34 }
 0x82d   :  { %5523 = vmatmul.mubr.f32.vlgmr.msra.gmra.mxu0 %v5383_v36  ;;  %5593 = vmatmul.mubr.f32.vlgmr.msra.gmra.mxu1 %v5385_v57 }
 0x8ed   :  { %v6363_v17 = vpop.f32.mrf.mxu0  ;;  %v6398_v19 = vpop.f32.mrf.mxu1 }
 0x8ef   :  { %v6364_v32 = vpop.f32.mrf.mxu0  ;;  %v6399_v38 = vpop.f32.mrf.mxu1 }
 0x8f0   :  { %v6365_v11 = vadd.f32 %v6364_v32, %v6363_v17  ;;  %v6400_v8 = vadd.f32 %v6399_v38, %v6398_v19 }
 0x8f2   :  { %v5525_v14 = vadd.f32 %v6365_v11, %v6224_v27 }
 0x8f4   :  { %v5595_v0 = vadd.f32 %v6400_v8, %v5525_v14 }
 0x8f6   :  { %5599 = vrot.lane.b32.xlu1 %v5595_v0, %s6790_s0 }
 0x968   :  { %v5600_v12 = vpop.permute.xlu1 %5599 }
 0x969   :  { %v5603_v41 = vsel %vm214_vm1, %v5602_v13, %v5600_v12 }
 0x96a   :  { %v5605_v42 = vsel %vm5604_vm6, %v5603_v41, 0.0 }
 0x96b   :  { %5606 = vst [vmem:[%s7589_s16] sm:$0x3] %v5605_v42 }
 0x96c   :  { %5611 = vsyncpa [#allocation3], 1 }
 0x96d   :  { %5612 = vsyncpa [#allocation5], 1 }
 0x96e   :  { %5613 = vsyncpa [#allocation8], 1 }
 0x96f   :  { %5614 = vsyncpa [#allocation11], 1 }
 0x970   :  { %5615 = vsyncpa [#allocation14], 1 }
 0x971   :  { %5616 = vsyncpa [#allocation17], 1 }
 0x972   :  { %5617 = vsyncpa [#allocation20], 1 }

</bundles_post_ra>
